<compile_context>
chip_gen: v7x
topology: tpu7x:2x2x1
jax: 0.10.0
libtpu: 0.0.40
codegen_flags: <defaults>
</compile_context>

<pallas_src>
import functools

import jax
import jax.numpy as jnp
from jax import lax
from jax.experimental import pallas as pl
from jax.experimental.pallas import tpu as pltpu


def _round_up(a, m):
    return ((a + m - 1) // m) * m


def _const_index_map(ndim):
    return lambda i: (0,) * ndim


def _vmem_capacity_bytes():
    try:
        return int(pltpu.get_tpu_info().vmem_capacity_bytes)
    except Exception:
        return 64 * 1024 * 1024  # conservative: v7x per-TensorCore VMEM


def _pick_tiling(N, x_row_elems):
    """Generation-aware tile / VMEM budget (v5e/v6e: 128 MiB, v7x: 64 MiB)."""
    cap = _vmem_capacity_bytes()
    vmem_limit = (cap * 3) // 4          # leave Mosaic scratch / pipeline headroom
    tile_n = 512 if cap >= 100 * 1024 * 1024 else 256
    # Keep the double-buffered bf16 x block within ~1/3 of the VMEM budget.
    row_bytes = 2 * x_row_elems
    max_tile = max(8, ((vmem_limit // 3) // (2 * row_bytes)) // 8 * 8)
    tile_n = min(tile_n, max_tile)
    # Guarantee >=2 grid steps so both v7x TensorCores get work, and shrink
    # the tile to N so small calls don't waste a step on padding.
    steps = pl.cdiv(N, tile_n)
    if steps < 2 and N > 8:
        steps = 2
    tile_n = max(8, _round_up(pl.cdiv(N, steps), 8))
    n_pad = _round_up(N, tile_n)
    return tile_n, n_pad, int(vmem_limit)


# ---------------------------------------------------------------------------
# Kernels
# ---------------------------------------------------------------------------

def _scr_dense_kernel(x_ref, w1_ref, b1_ref, w2_ref, b2_ref, w3_ref, b3_ref,
                      w4_ref, b4_ref, out_ref):
    """Fat-K path (small channels): x_ref is (tile_n, u*v*c0).

    Four bf16 dots with f32 accumulation; block-structured weights built in
    the wrapper mean there are no in-kernel slices, reshapes or copies.
    """
    cdt = x_ref.dtype  # bf16 compute dtype; bias + ReLU stay in f32
    y = jnp.dot(x_ref[...], w1_ref[...], preferred_element_type=jnp.float32)
    y = jnp.maximum(y + b1_ref[...], 0.0).astype(cdt)
    y = jnp.dot(y, w2_ref[...], preferred_element_type=jnp.float32)
    y = jnp.maximum(y + b2_ref[...], 0.0).astype(cdt)
    y = jnp.dot(y, w3_ref[...], preferred_element_type=jnp.float32)
    y = jnp.maximum(y + b3_ref[...], 0.0).astype(cdt)
    y = jnp.dot(y, w4_ref[...], preferred_element_type=jnp.float32)
    out_ref[...] = (y + b4_ref[...]).astype(out_ref.dtype)


def _scr_tap_kernel(x_ref, w1_ref, b1_ref, wc1_ref, b2_ref, wc2_ref, b3_ref,
                    w4_ref, b4_ref, out_ref, *, ksize, u, v):
    """Tap path (wide channels): x_ref is (u*v, tile_n, c0).

    Stage 1 is one long-M dot; stages 2+3 are fused as a loop over the
    u2 x v2 output cells of the first VALID conv.  Every dot LHS is a
    contiguous (tile_n, c) slab (static leading-dim index of a value), so
    there are no value-slice copies or lane concatenations in the kernel.
    """
    uv, tn, c0 = x_ref.shape
    c1 = w1_ref.shape[1]
    k = ksize
    u2, v2 = u - k + 1, v - k + 1
    cdt = x_ref.dtype  # bf16 compute dtype; accumulation + bias/ReLU in f32

    # Stage 1: 1x1 conv (+ folded BN) + ReLU as ONE dot with M = u*v*tile_n.
    y1 = jnp.dot(x_ref[...].reshape(uv * tn, c0), w1_ref[...],
                 preferred_element_type=jnp.float32)
    y1 = jnp.maximum(y1 + b1_ref[...], 0.0).astype(cdt).reshape(u, v, tn, c1)

    # Stages 2+3: two VALID convs over (u, v); the second collapses to 1x1.
    acc3 = None
    for p in range(u2):
        for q in range(v2):
            acc2 = None
            for i in range(k):
                for j in range(k):
                    d = jnp.dot(y1[p + i, q + j], wc1_ref[i, j],
                                preferred_element_type=jnp.float32)
                    acc2 = d if acc2 is None else acc2 + d
            y2 = jnp.maximum(acc2 + b2_ref[...], 0.0).astype(cdt)
            d3 = jnp.dot(y2, wc2_ref[p, q], preferred_element_type=jnp.float32)
            acc3 = d3 if acc3 is None else acc3 + d3
    y3 = jnp.maximum(acc3 + b3_ref[...], 0.0).astype(cdt)

    # Stage 4: 1x1 conv (+ folded BN), lane-dense bf16 store.
    y4 = jnp.dot(y3, w4_ref[...], preferred_element_type=jnp.float32)
    out_ref[...] = (y4 + b4_ref[...]).astype(out_ref.dtype)


# ---------------------------------------------------------------------------
# Wrapper
# ---------------------------------------------------------------------------

def scr_forward(x, params):
    b, c0, h, w, u, v = x.shape
    k = params["wc1"].shape[0]
    assert u - 2 * (k - 1) == 1 and v - 2 * (k - 1) == 1, (
        "SCR requires the (u, v) window to collapse to 1x1 after two valid convs")

    c1 = params["w1"].shape[1]
    c2 = params["wc1"].shape[3]
    c3 = params["wc2"].shape[3]
    c4 = params["w4"].shape[1]
    u2, v2 = u - k + 1, v - k + 1
    uv, uv2 = u * v, u2 * v2

    N = b * h * w
    tile_n, n_pad, vmem_limit = _pick_tiling(N, uv * c0)
    n_steps = n_pad // tile_n

    cdt = jnp.bfloat16  # MXU compute dtype (accumulation stays f32 in-kernel)

    # Fold inference-mode BN scales into the conv weights (f32 math, then cast
    # to bf16); shifts stay as f32 biases added post-dot.
    w1 = params["w1"] * params["s1"]                           # (c0, c1)
    wc1 = params["wc1"] * params["s2"].reshape(1, 1, 1, c2)    # (k, k, c1, c2)
    wc2 = params["wc2"] * params["s3"].reshape(1, 1, 1, c3)    # (k, k, c2, c3)
    b1, b2, b3 = params["b1"], params["b2"], params["b3"]

    # Lane-dense output: pad c4 to a multiple of 128 -> unmasked bf16 stores.
    c4_pad = _round_up(c4, 128)
    w4 = jnp.pad(params["w4"] * params["s4"], ((0, 0), (0, c4_pad - c4)))
    b4 = jnp.pad(params["b4"], ((0, 0), (0, c4_pad - c4)))

    # Fat-K (dense block-structured weights) only pays off when channels are
    # narrow; wide configs (640-channel SCR) keep the tap form where K >= 128.
    use_fat_k = uv * max(c0, c1) <= 2048

    if use_fat_k:
        # x as (N, u*v*c0): all correlation cells packed along the lane axis.
        x_t = jnp.transpose(x, (0, 2, 3, 4, 5, 1)).reshape(N, uv * c0).astype(cdt)

        # Stage 1: block-diagonal 1x1 weight, (u*v*c0, u*v*c1).
        diag = jnp.arange(uv)
        W1 = jnp.zeros((uv, c0, uv, c1), jnp.float32).at[diag, :, diag, :].set(w1)
        W1 = W1.reshape(uv * c0, uv * c1)
        B1 = jnp.tile(b1, (1, uv))
        # Stage 2: block-structured VALID-conv weight, (u*v*c1, u2*v2*c2).
        W2 = jnp.zeros((u, v, c1, u2, v2, c2), jnp.float32)
        for p in range(u2):
            for q in range(v2):
                W2 = W2.at[p:p + k, q:q + k, :, p, q, :].set(wc1)
        W2 = W2.reshape(uv * c1, uv2 * c2)
        B2 = jnp.tile(b2, (1, uv2))
        # Stage 3: second VALID conv; (u2, v2) == (k, k) collapses to 1x1.
        W3 = wc2.reshape(uv2 * c2, c3)

        weights = [W1.astype(cdt), B1.astype(jnp.float32),
                   W2.astype(cdt), B2.astype(jnp.float32),
                   W3.astype(cdt), b3.astype(jnp.float32),
                   w4.astype(cdt), b4.astype(jnp.float32)]
        kernel = _scr_dense_kernel
        x_block = (tile_n, uv * c0)
        x_index_map = lambda i: (i, 0)
        pad_axis = 0
    else:
        # x as (u*v, N, c0): c0 itself is lane-dense (>= 128 channels).
        x_t = jnp.transpose(x, (4, 5, 0, 2, 3, 1)).reshape(uv, N, c0).astype(cdt)
        weights = [w1.astype(cdt), b1.astype(jnp.float32),
                   wc1.astype(cdt), b2.astype(jnp.float32),
                   wc2.astype(cdt), b3.astype(jnp.float32),
                   w4.astype(cdt), b4.astype(jnp.float32)]
        kernel = functools.partial(_scr_tap_kernel, ksize=k, u=u, v=v)
        x_block = (uv, tile_n, c0)
        x_index_map = lambda i: (0, i, 0)
        pad_axis = 1

    if n_pad != N:
        pad = [(0, 0)] * x_t.ndim
        pad[pad_axis] = (0, n_pad - N)
        # Padded rows flow through bias+ReLU and are sliced off below; nothing
        # in-kernel reduces across the N axis, so they are inert.
        x_t = jnp.pad(x_t, pad)

    def _launch(conservative):
        pm_kwargs = {} if conservative else {"pipeline_mode": pl.Buffered(1)}
        in_specs = [pl.BlockSpec(x_block, x_index_map)]
        in_specs += [pl.BlockSpec(a.shape, _const_index_map(a.ndim), **pm_kwargs)
                     for a in weights]
        cp = dict(dimension_semantics=("parallel",),
                  vmem_limit_bytes=vmem_limit)
        if not conservative:
            # Lets XLA fuse the channels-last transpose into the pallas_call
            # input when this wrapper is jitted together with its producer.
            cp["allow_input_fusion"] = [True] + [False] * len(weights)
        return pl.pallas_call(
            kernel,
            out_shape=jax.ShapeDtypeStruct((n_pad, c4_pad), jnp.bfloat16),
            grid_spec=pltpu.PrefetchScalarGridSpec(
                num_scalar_prefetch=0,
                grid=(n_steps,),
                in_specs=in_specs,
                out_specs=pl.BlockSpec((tile_n, c4_pad), lambda i: (i, 0)),
            ),
            compiler_params=pltpu.CompilerParams(**cp),
        )(x_t, *weights)

    try:
        out_flat = _launch(conservative=False)
    except Exception:
        # TODO(synk): pipeline_mode=pl.Buffered(1) / allow_input_fusion are not
        # available on every jax/libtpu build; retry with conservative params.
        out_flat = _launch(conservative=True)

    out = out_flat[:N, :c4].astype(jnp.float32)
    return jnp.transpose(out.reshape(b, h, w, c4), (0, 3, 1, 2))


# ---------------------------------------------------------------------------
# Params + reference
# ---------------------------------------------------------------------------

def make_params(key, planes=(32, 16, 16, 16, 32), ksize=3, eps=1e-5):
    c0, c1, c2, c3, c4 = planes
    keys = jax.random.split(key, 8)

    def bn(kk, c):
        k1, k2, k3, k4 = jax.random.split(kk, 4)
        gamma = 1.0 + 0.1 * jax.random.normal(k1, (c,), jnp.float32)
        beta = 0.1 * jax.random.normal(k2, (c,), jnp.float32)
        mean = 0.1 * jax.random.normal(k3, (c,), jnp.float32)
        var = 1.0 + 0.1 * jax.random.uniform(k4, (c,), jnp.float32)
        scale = gamma / jnp.sqrt(var + eps)
        shift = beta - mean * scale
        return scale.reshape(1, c), shift.reshape(1, c)

    w1 = jax.random.normal(keys[0], (c0, c1), jnp.float32) / jnp.sqrt(c0)
    wc1 = jax.random.normal(keys[1], (ksize, ksize, c1, c2),
                            jnp.float32) / jnp.sqrt(c1 * ksize * ksize)
    wc2 = jax.random.normal(keys[2], (ksize, ksize, c2, c3),
                            jnp.float32) / jnp.sqrt(c2 * ksize * ksize)
    w4 = jax.random.normal(keys[3], (c3, c4), jnp.float32) / jnp.sqrt(c3)
    s1, b1 = bn(keys[4], c1)
    s2, b2 = bn(keys[5], c2)
    s3, b3 = bn(keys[6], c3)
    s4, b4 = bn(keys[7], c4)
    return dict(w1=w1, s1=s1, b1=b1, wc1=wc1, s2=s2, b2=b2,
                wc2=wc2, s3=s3, b3=b3, w4=w4, s4=s4, b4=b4)


def scr_ref(x, params):
    """Independent pure-JAX reference (XLA conv) mirroring the PyTorch forward."""
    b, c0, h, w, u, v = x.shape
    N = b * h * w
    x_cl = jnp.transpose(x, (0, 2, 3, 4, 5, 1)).reshape(N, u, v, c0)
    y1 = jnp.einsum('nuvc,cd->nuvd', x_cl, params['w1'])
    y1 = jnp.maximum(y1 * params['s1'][0] + params['b1'][0], 0.0)
    y2 = lax.conv_general_dilated(y1, params['wc1'], (1, 1), 'VALID',
                                  dimension_numbers=('NHWC', 'HWIO', 'NHWC'))
    y2 = jnp.maximum(y2 * params['s2'][0] + params['b2'][0], 0.0)
    y3 = lax.conv_general_dilated(y2, params['wc2'], (1, 1), 'VALID',
                                  dimension_numbers=('NHWC', 'HWIO', 'NHWC'))
    y3 = jnp.maximum(y3 * params['s3'][0] + params['b3'][0], 0.0)
    y3 = y3.reshape(N, -1)
    y4 = y3 @ params['w4'] * params['s4'][0] + params['b4'][0]
    c4 = y4.shape[1]
    return jnp.transpose(y4.reshape(b, h, w, c4), (0, 3, 1, 2))


if __name__ == "__main__":
    key = jax.random.PRNGKey(0)
    k1, k2, k3, k4 = jax.random.split(key, 4)
    b, h, w, u, v = 2, 4, 4, 5, 5

    # 1) Small-channel config -> fat-K (block-structured weights) path.
    planes_a = (32, 16, 16, 16, 32)
    xa = jax.random.normal(k1, (b, planes_a[0], h, w, u, v), jnp.float32)
    pa = make_params(k2, planes=planes_a, ksize=3)
    outa = jax.block_until_ready(scr_forward(xa, pa))
    refa = scr_ref(xa, pa)
    assert outa.shape == (b, planes_a[4], h, w)
    assert jnp.allclose(outa, refa, rtol=2e-2, atol=5e-2), \
        float(jnp.max(jnp.abs(outa - refa)))

    # 2) Wide-channel config (c0 >= 128) -> tap path (contiguous-slab dots).
    planes_b = (128, 64, 64, 64, 128)
    xb = jax.random.normal(k3, (b, planes_b[0], h, w, u, v), jnp.float32)
    pb = make_params(k4, planes=planes_b, ksize=3)
    outb = jax.block_until_ready(scr_forward(xb, pb))
    refb = scr_ref(xb, pb)
    assert outb.shape == (b, planes_b[4], h, w)
    assert jnp.allclose(outb, refb, rtol=2e-2, atol=5e-2), \
        float(jnp.max(jnp.abs(outb - refb)))

    print("KERNEL_OK")
</pallas_src>

<mosaic_0001>
module attributes {stable_mosaic.version = 11 : i64} {
  func.func @_scr_dense_kernel(%arg0: i32, %arg1: memref<16x800xbf16, #tpu.memory_space<vmem>>, %arg2: memref<800x400xbf16, #tpu.memory_space<vmem>>, %arg3: memref<1x400xf32, #tpu.memory_space<vmem>>, %arg4: memref<400x144xbf16, #tpu.memory_space<vmem>>, %arg5: memref<1x144xf32, #tpu.memory_space<vmem>>, %arg6: memref<144x16xbf16, #tpu.memory_space<vmem>>, %arg7: memref<1x16xf32, #tpu.memory_space<vmem>>, %arg8: memref<16x128xbf16, #tpu.memory_space<vmem>>, %arg9: memref<1x128xf32, #tpu.memory_space<vmem>>, %arg10: memref<16x128xbf16, #tpu.memory_space<vmem>>) attributes {dimension_semantics = [#tpu.dimension_semantics<parallel>], iteration_bounds = array<i64: 2>, scalar_prefetch = 0 : i64, scratch_operands = 0 : i64, tpu.core_type = #tpu.core_type<tc>, window_params = [{transform_indices = @transform_0, window_bounds = array<i64: 16, 800>}, {pipeline_mode = #tpu.pipeline_mode<synchronous>, transform_indices = @transform_1, window_bounds = array<i64: 800, 400>}, {pipeline_mode = #tpu.pipeline_mode<synchronous>, transform_indices = @transform_2, window_bounds = array<i64: 1, 400>}, {pipeline_mode = #tpu.pipeline_mode<synchronous>, transform_indices = @transform_3, window_bounds = array<i64: 400, 144>}, {pipeline_mode = #tpu.pipeline_mode<synchronous>, transform_indices = @transform_4, window_bounds = array<i64: 1, 144>}, {pipeline_mode = #tpu.pipeline_mode<synchronous>, transform_indices = @transform_5, window_bounds = array<i64: 144, 16>}, {pipeline_mode = #tpu.pipeline_mode<synchronous>, transform_indices = @transform_6, window_bounds = array<i64: 1, 16>}, {pipeline_mode = #tpu.pipeline_mode<synchronous>, transform_indices = @transform_7, window_bounds = array<i64: 16, 128>}, {pipeline_mode = #tpu.pipeline_mode<synchronous>, transform_indices = @transform_8, window_bounds = array<i64: 1, 128>}, {transform_indices = @transform_9, window_bounds = array<i64: 16, 128>}]} {
    %c0 = arith.constant 0 : index
    %c0_0 = arith.constant 0 : index
    %0 = vector.load %arg1[%c0, %c0_0] : memref<16x800xbf16, #tpu.memory_space<vmem>>, vector<16x800xbf16>
    %c0_1 = arith.constant 0 : index
    %c0_2 = arith.constant 0 : index
    %1 = vector.load %arg2[%c0_1, %c0_2] : memref<800x400xbf16, #tpu.memory_space<vmem>>, vector<800x400xbf16>
    %cst = arith.constant dense<0.000000e+00> : vector<16x400xf32>
    %2 = tpu.matmul %0, %1, %cst {dimension_numbers = #tpu.dot_dimension_numbers<[1], [0], [0], [1], [0, 0, 1, 1], [], []>} : vector<16x800xbf16>, vector<800x400xbf16>, vector<16x400xf32> -> vector<16x400xf32>
    %c0_3 = arith.constant 0 : index
    %c0_4 = arith.constant 0 : index
    %3 = vector.load %arg3[%c0_3, %c0_4] : memref<1x400xf32, #tpu.memory_space<vmem>>, vector<1x400xf32>
    %4 = vector.broadcast %3 : vector<1x400xf32> to vector<16x400xf32>
    %5 = arith.addf %2, %4 : vector<16x400xf32>
    %cst_5 = arith.constant 0.000000e+00 : f32
    %6 = vector.broadcast %cst_5 : f32 to vector<16x400xf32>
    %7 = arith.maximumf %5, %6 : vector<16x400xf32>
    %8 = arith.truncf %7 : vector<16x400xf32> to vector<16x400xbf16>
    %c0_6 = arith.constant 0 : index
    %c0_7 = arith.constant 0 : index
    %9 = vector.load %arg4[%c0_6, %c0_7] : memref<400x144xbf16, #tpu.memory_space<vmem>>, vector<400x144xbf16>
    %cst_8 = arith.constant dense<0.000000e+00> : vector<16x144xf32>
    %10 = tpu.matmul %8, %9, %cst_8 {dimension_numbers = #tpu.dot_dimension_numbers<[1], [0], [0], [1], [0, 0, 1, 1], [], []>} : vector<16x400xbf16>, vector<400x144xbf16>, vector<16x144xf32> -> vector<16x144xf32>
    %c0_9 = arith.constant 0 : index
    %c0_10 = arith.constant 0 : index
    %11 = vector.load %arg5[%c0_9, %c0_10] : memref<1x144xf32, #tpu.memory_space<vmem>>, vector<1x144xf32>
    %12 = vector.broadcast %11 : vector<1x144xf32> to vector<16x144xf32>
    %13 = arith.addf %10, %12 : vector<16x144xf32>
    %cst_11 = arith.constant 0.000000e+00 : f32
    %14 = vector.broadcast %cst_11 : f32 to vector<16x144xf32>
    %15 = arith.maximumf %13, %14 : vector<16x144xf32>
    %16 = arith.truncf %15 : vector<16x144xf32> to vector<16x144xbf16>
    %c0_12 = arith.constant 0 : index
    %c0_13 = arith.constant 0 : index
    %17 = vector.load %arg6[%c0_12, %c0_13] : memref<144x16xbf16, #tpu.memory_space<vmem>>, vector<144x16xbf16>
    %cst_14 = arith.constant dense<0.000000e+00> : vector<16x16xf32>
    %18 = tpu.matmul %16, %17, %cst_14 {dimension_numbers = #tpu.dot_dimension_numbers<[1], [0], [0], [1], [0, 0, 1, 1], [], []>} : vector<16x144xbf16>, vector<144x16xbf16>, vector<16x16xf32> -> vector<16x16xf32>
    %c0_15 = arith.constant 0 : index
    %c0_16 = arith.constant 0 : index
    %19 = vector.load %arg7[%c0_15, %c0_16] : memref<1x16xf32, #tpu.memory_space<vmem>>, vector<1x16xf32>
    %20 = vector.broadcast %19 : vector<1x16xf32> to vector<16x16xf32>
    %21 = arith.addf %18, %20 : vector<16x16xf32>
    %cst_17 = arith.constant 0.000000e+00 : f32
    %22 = vector.broadcast %cst_17 : f32 to vector<16x16xf32>
    %23 = arith.maximumf %21, %22 : vector<16x16xf32>
    %24 = arith.truncf %23 : vector<16x16xf32> to vector<16x16xbf16>
    %c0_18 = arith.constant 0 : index
    %c0_19 = arith.constant 0 : index
    %25 = vector.load %arg8[%c0_18, %c0_19] : memref<16x128xbf16, #tpu.memory_space<vmem>>, vector<16x128xbf16>
    %cst_20 = arith.constant dense<0.000000e+00> : vector<16x128xf32>
    %26 = tpu.matmul %24, %25, %cst_20 {dimension_numbers = #tpu.dot_dimension_numbers<[1], [0], [0], [1], [0, 0, 1, 1], [], []>} : vector<16x16xbf16>, vector<16x128xbf16>, vector<16x128xf32> -> vector<16x128xf32>
    %c0_21 = arith.constant 0 : index
    %c0_22 = arith.constant 0 : index
    %27 = vector.load %arg9[%c0_21, %c0_22] : memref<1x128xf32, #tpu.memory_space<vmem>>, vector<1x128xf32>
    %28 = vector.broadcast %27 : vector<1x128xf32> to vector<16x128xf32>
    %29 = arith.addf %26, %28 : vector<16x128xf32>
    %30 = arith.truncf %29 : vector<16x128xf32> to vector<16x128xbf16>
    %c0_23 = arith.constant 0 : index
    %c0_24 = arith.constant 0 : index
    %31 = vector.load %arg10[%c0_23, %c0_24] : memref<16x128xbf16, #tpu.memory_space<vmem>>, vector<16x128xbf16>
    tpu.vector_store %arg10[%c0_23, %c0_24], %30 {strides = array<i32>} : memref<16x128xbf16, #tpu.memory_space<vmem>>, vector<16x128xbf16>,
    return
  }
  func.func @transform_0(%arg0: i32) -> (i32, i32) {
    %c0_i32 = arith.constant 0 : i32
    %c0_i32_0 = arith.constant 0 : i32
    return %arg0, %c0_i32 : i32, i32
  }
  func.func @transform_1(%arg0: i32) -> (i32, i32) {
    %c0_i32 = arith.constant 0 : i32
    %c0_i32_0 = arith.constant 0 : i32
    %c0_i32_1 = arith.constant 0 : i32
    return %c0_i32, %c0_i32_0 : i32, i32
  }
  func.func @transform_2(%arg0: i32) -> (i32, i32) {
    %c0_i32 = arith.constant 0 : i32
    %c0_i32_0 = arith.constant 0 : i32
    %c0_i32_1 = arith.constant 0 : i32
    return %c0_i32, %c0_i32_0 : i32, i32
  }
  func.func @transform_3(%arg0: i32) -> (i32, i32) {
    %c0_i32 = arith.constant 0 : i32
    %c0_i32_0 = arith.constant 0 : i32
    %c0_i32_1 = arith.constant 0 : i32
    return %c0_i32, %c0_i32_0 : i32, i32
  }
  func.func @transform_4(%arg0: i32) -> (i32, i32) {
    %c0_i32 = arith.constant 0 : i32
    %c0_i32_0 = arith.constant 0 : i32
    %c0_i32_1 = arith.constant 0 : i32
    return %c0_i32, %c0_i32_0 : i32, i32
  }
  func.func @transform_5(%arg0: i32) -> (i32, i32) {
    %c0_i32 = arith.constant 0 : i32
    %c0_i32_0 = arith.constant 0 : i32
    %c0_i32_1 = arith.constant 0 : i32
    return %c0_i32, %c0_i32_0 : i32, i32
  }
  func.func @transform_6(%arg0: i32) -> (i32, i32) {
    %c0_i32 = arith.constant 0 : i32
    %c0_i32_0 = arith.constant 0 : i32
    %c0_i32_1 = arith.constant 0 : i32
    return %c0_i32, %c0_i32_0 : i32, i32
  }
  func.func @transform_7(%arg0: i32) -> (i32, i32) {
    %c0_i32 = arith.constant 0 : i32
    %c0_i32_0 = arith.constant 0 : i32
    %c0_i32_1 = arith.constant 0 : i32
    return %c0_i32, %c0_i32_0 : i32, i32
  }
  func.func @transform_8(%arg0: i32) -> (i32, i32) {
    %c0_i32 = arith.constant 0 : i32
    %c0_i32_0 = arith.constant 0 : i32
    %c0_i32_1 = arith.constant 0 : i32
    return %c0_i32, %c0_i32_0 : i32, i32
  }
  func.func @transform_9(%arg0: i32) -> (i32, i32) {
    %c0_i32 = arith.constant 0 : i32
    %c0_i32_0 = arith.constant 0 : i32
    return %arg0, %c0_i32 : i32, i32
  }
}

module attributes {stable_mosaic.version = 11 : i64} {
  func.func @_scr_dense_kernel(%arg0: i32, %arg1: memref<16x800xbf16, #tpu.memory_space<vmem>>, %arg2: memref<800x400xbf16, #tpu.memory_space<vmem>>, %arg3: memref<1x400xf32, #tpu.memory_space<vmem>>, %arg4: memref<400x144xbf16, #tpu.memory_space<vmem>>, %arg5: memref<1x144xf32, #tpu.memory_space<vmem>>, %arg6: memref<144x16xbf16, #tpu.memory_space<vmem>>, %arg7: memref<1x16xf32, #tpu.memory_space<vmem>>, %arg8: memref<16x128xbf16, #tpu.memory_space<vmem>>, %arg9: memref<1x128xf32, #tpu.memory_space<vmem>>, %arg10: memref<16x128xbf16, #tpu.memory_space<vmem>>) attributes {dimension_semantics = [#tpu.dimension_semantics<parallel>], iteration_bounds = array<i64: 2>, scalar_prefetch = 0 : i64, scratch_operands = 0 : i64, tpu.core_type = #tpu.core_type<tc>, window_params = [{transform_indices = @transform_0, window_bounds = array<i64: 16, 800>}, {pipeline_mode = #tpu.pipeline_mode<synchronous>, transform_indices = @transform_1, window_bounds = array<i64: 800, 400>}, {pipeline_mode = #tpu.pipeline_mode<synchronous>, transform_indices = @transform_2, window_bounds = array<i64: 1, 400>}, {pipeline_mode = #tpu.pipeline_mode<synchronous>, transform_indices = @transform_3, window_bounds = array<i64: 400, 144>}, {pipeline_mode = #tpu.pipeline_mode<synchronous>, transform_indices = @transform_4, window_bounds = array<i64: 1, 144>}, {pipeline_mode = #tpu.pipeline_mode<synchronous>, transform_indices = @transform_5, window_bounds = array<i64: 144, 16>}, {pipeline_mode = #tpu.pipeline_mode<synchronous>, transform_indices = @transform_6, window_bounds = array<i64: 1, 16>}, {pipeline_mode = #tpu.pipeline_mode<synchronous>, transform_indices = @transform_7, window_bounds = array<i64: 16, 128>}, {pipeline_mode = #tpu.pipeline_mode<synchronous>, transform_indices = @transform_8, window_bounds = array<i64: 1, 128>}, {transform_indices = @transform_9, window_bounds = array<i64: 16, 128>}]} {
    %c0 = arith.constant 0 : index
    %c0_0 = arith.constant 0 : index
    %0 = vector.load %arg1[%c0, %c0_0] : memref<16x800xbf16, #tpu.memory_space<vmem>>, vector<16x800xbf16>
    %c0_1 = arith.constant 0 : index
    %c0_2 = arith.constant 0 : index
    %1 = vector.load %arg2[%c0_1, %c0_2] : memref<800x400xbf16, #tpu.memory_space<vmem>>, vector<800x400xbf16>
    %cst = arith.constant dense<0.000000e+00> : vector<16x400xf32>
    %2 = tpu.matmul %0, %1, %cst {dimension_numbers = #tpu.dot_dimension_numbers<[1], [0], [0], [1], [0, 0, 1, 1], [], []>} : vector<16x800xbf16>, vector<800x400xbf16>, vector<16x400xf32> -> vector<16x400xf32>
    %c0_3 = arith.constant 0 : index
    %c0_4 = arith.constant 0 : index
    %3 = vector.load %arg3[%c0_3, %c0_4] : memref<1x400xf32, #tpu.memory_space<vmem>>, vector<1x400xf32>
    %4 = vector.broadcast %3 : vector<1x400xf32> to vector<16x400xf32>
    %5 = arith.addf %2, %4 : vector<16x400xf32>
    %cst_5 = arith.constant 0.000000e+00 : f32
    %6 = vector.broadcast %cst_5 : f32 to vector<16x400xf32>
    %7 = arith.maximumf %5, %6 : vector<16x400xf32>
    %8 = arith.truncf %7 : vector<16x400xf32> to vector<16x400xbf16>
    %c0_6 = arith.constant 0 : index
    %c0_7 = arith.constant 0 : index
    %9 = vector.load %arg4[%c0_6, %c0_7] : memref<400x144xbf16, #tpu.memory_space<vmem>>, vector<400x144xbf16>
    %cst_8 = arith.constant dense<0.000000e+00> : vector<16x144xf32>
    %10 = tpu.matmul %8, %9, %cst_8 {dimension_numbers = #tpu.dot_dimension_numbers<[1], [0], [0], [1], [0, 0, 1, 1], [], []>} : vector<16x400xbf16>, vector<400x144xbf16>, vector<16x144xf32> -> vector<16x144xf32>
    %c0_9 = arith.constant 0 : index
    %c0_10 = arith.constant 0 : index
    %11 = vector.load %arg5[%c0_9, %c0_10] : memref<1x144xf32, #tpu.memory_space<vmem>>, vector<1x144xf32>
    %12 = vector.broadcast %11 : vector<1x144xf32> to vector<16x144xf32>
    %13 = arith.addf %10, %12 : vector<16x144xf32>
    %cst_11 = arith.constant 0.000000e+00 : f32
    %14 = vector.broadcast %cst_11 : f32 to vector<16x144xf32>
    %15 = arith.maximumf %13, %14 : vector<16x144xf32>
    %16 = arith.truncf %15 : vector<16x144xf32> to vector<16x144xbf16>
    %c0_12 = arith.constant 0 : index
    %c0_13 = arith.constant 0 : index
    %17 = vector.load %arg6[%c0_12, %c0_13] : memref<144x16xbf16, #tpu.memory_space<vmem>>, vector<144x16xbf16>
    %cst_14 = arith.constant dense<0.000000e+00> : vector<16x16xf32>
    %18 = tpu.matmul %16, %17, %cst_14 {dimension_numbers = #tpu.dot_dimension_numbers<[1], [0], [0], [1], [0, 0, 1, 1], [], []>} : vector<16x144xbf16>, vector<144x16xbf16>, vector<16x16xf32> -> vector<16x16xf32>
    %c0_15 = arith.constant 0 : index
    %c0_16 = arith.constant 0 : index
    %19 = vector.load %arg7[%c0_15, %c0_16] : memref<1x16xf32, #tpu.memory_space<vmem>>, vector<1x16xf32>
    %20 = vector.broadcast %19 : vector<1x16xf32> to vector<16x16xf32>
    %21 = arith.addf %18, %20 : vector<16x16xf32>
    %cst_17 = arith.constant 0.000000e+00 : f32
    %22 = vector.broadcast %cst_17 : f32 to vector<16x16xf32>
    %23 = arith.maximumf %21, %22 : vector<16x16xf32>
    %24 = arith.truncf %23 : vector<16x16xf32> to vector<16x16xbf16>
    %c0_18 = arith.constant 0 : index
    %c0_19 = arith.constant 0 : index
    %25 = vector.load %arg8[%c0_18, %c0_19] : memref<16x128xbf16, #tpu.memory_space<vmem>>, vector<16x128xbf16>
    %cst_20 = arith.constant dense<0.000000e+00> : vector<16x128xf32>
    %26 = tpu.matmul %24, %25, %cst_20 {dimension_numbers = #tpu.dot_dimension_numbers<[1], [0], [0], [1], [0, 0, 1, 1], [], []>} : vector<16x16xbf16>, vector<16x128xbf16>, vector<16x128xf32> -> vector<16x128xf32>
    %c0_21 = arith.constant 0 : index
    %c0_22 = arith.constant 0 : index
    %27 = vector.load %arg9[%c0_21, %c0_22] : memref<1x128xf32, #tpu.memory_space<vmem>>, vector<1x128xf32>
    %28 = vector.broadcast %27 : vector<1x128xf32> to vector<16x128xf32>
    %29 = arith.addf %26, %28 : vector<16x128xf32>
    %30 = arith.truncf %29 : vector<16x128xf32> to vector<16x128xbf16>
    %c0_23 = arith.constant 0 : index
    %c0_24 = arith.constant 0 : index
    %31 = vector.load %arg10[%c0_23, %c0_24] : memref<16x128xbf16, #tpu.memory_space<vmem>>, vector<16x128xbf16>
    tpu.vector_store %arg10[%c0_23, %c0_24], %30 {strides = array<i32>} : memref<16x128xbf16, #tpu.memory_space<vmem>>, vector<16x128xbf16>,
    return
  }
  func.func @transform_0(%arg0: i32) -> (i32, i32) {
    %c0_i32 = arith.constant 0 : i32
    %c0_i32_0 = arith.constant 0 : i32
    return %arg0, %c0_i32 : i32, i32
  }
  func.func @transform_1(%arg0: i32) -> (i32, i32) {
    %c0_i32 = arith.constant 0 : i32
    %c0_i32_0 = arith.constant 0 : i32
    %c0_i32_1 = arith.constant 0 : i32
    return %c0_i32, %c0_i32_0 : i32, i32
  }
  func.func @transform_2(%arg0: i32) -> (i32, i32) {
    %c0_i32 = arith.constant 0 : i32
    %c0_i32_0 = arith.constant 0 : i32
    %c0_i32_1 = arith.constant 0 : i32
    return %c0_i32, %c0_i32_0 : i32, i32
  }
  func.func @transform_3(%arg0: i32) -> (i32, i32) {
    %c0_i32 = arith.constant 0 : i32
    %c0_i32_0 = arith.constant 0 : i32
    %c0_i32_1 = arith.constant 0 : i32
    return %c0_i32, %c0_i32_0 : i32, i32
  }
  func.func @transform_4(%arg0: i32) -> (i32, i32) {
    %c0_i32 = arith.constant 0 : i32
    %c0_i32_0 = arith.constant 0 : i32
    %c0_i32_1 = arith.constant 0 : i32
    return %c0_i32, %c0_i32_0 : i32, i32
  }
  func.func @transform_5(%arg0: i32) -> (i32, i32) {
    %c0_i32 = arith.constant 0 : i32
    %c0_i32_0 = arith.constant 0 : i32
    %c0_i32_1 = arith.constant 0 : i32
    return %c0_i32, %c0_i32_0 : i32, i32
  }
  func.func @transform_6(%arg0: i32) -> (i32, i32) {
    %c0_i32 = arith.constant 0 : i32
    %c0_i32_0 = arith.constant 0 : i32
    %c0_i32_1 = arith.constant 0 : i32
    return %c0_i32, %c0_i32_0 : i32, i32
  }
  func.func @transform_7(%arg0: i32) -> (i32, i32) {
    %c0_i32 = arith.constant 0 : i32
    %c0_i32_0 = arith.constant 0 : i32
    %c0_i32_1 = arith.constant 0 : i32
    return %c0_i32, %c0_i32_0 : i32, i32
  }
  func.func @transform_8(%arg0: i32) -> (i32, i32) {
    %c0_i32 = arith.constant 0 : i32
    %c0_i32_0 = arith.constant 0 : i32
    %c0_i32_1 = arith.constant 0 : i32
    return %c0_i32, %c0_i32_0 : i32, i32
  }
  func.func @transform_9(%arg0: i32) -> (i32, i32) {
    %c0_i32 = arith.constant 0 : i32
    %c0_i32_0 = arith.constant 0 : i32
    return %arg0, %c0_i32 : i32, i32
  }
}

</mosaic_0001>

<bundles_post_ra>
// kernel: tpu_custom_call.1
= control target key start
LH: loop header
LB: loop body
LE: loop exit
PB: predicated region body
PF: predicated region fallthrough
CT: control target
= control target key end

     0   :  { %14 = vsyncpa [#allocation3], 0  ;;  %s4477_s0 = inlined_call_operand.vmem [shape: bf16[32,800], index: 0, kind: input, shape index: {}]   ;;  %s4478_s1 = inlined_call_operand.vmem [shape: bf16[800,400], index: 1, kind: input, shape index: {}]   ;;  %s4479_s2 = inlined_call_operand.vmem [shape: f32[1,400], index: 2, kind: input, shape index: {}]   ;;  %s4480_s3 = inlined_call_operand.vmem [shape: bf16[400,144], index: 3, kind: input, shape index: {}]   ;;  %s4481_s4 = inlined_call_operand.vmem [shape: f32[1,144], index: 4, kind: input, shape index: {}]   ;;  %s4482_s5 = inlined_call_operand.vmem [shape: bf16[144,16], index: 5, kind: input, shape index: {}]   ;;  %s4483_s6 = inlined_call_operand.vmem [shape: f32[1,16], index: 6, kind: input, shape index: {}]   ;;  %s4484_s7 = inlined_call_operand.vmem [shape: bf16[16,128], index: 7, kind: input, shape index: {}]   ;;  %s4485_s8 = inlined_call_operand.vmem [shape: f32[1,128], index: 8, kind: input, shape index: {}]   ;;  %s4486_s9 = inlined_call_operand.hbm [shape: bf16[32,128], index: 9, kind: output, shape index: {}]  }
   0x1   :  { %16 = vsyncpa [#allocation3 + $0x1], 0  ;;  %s3546_s30 = smov 0   ;;  %s3548_s10 = smov 0  }
   0x2   :  { %s3550_s11 = smov 0   ;;  %s3552_s12 = smov 0  }
   0x3 LB: > { %s3567_s13 = sadd.s32 4294967295, %s3488_s12   ;;  %s2642_s14 = sadd.s32 4294967294, %s3488_s12   ;;  %s3488_s12 = sphi %s3552_s12, %s4492_s12   ;;  %s3484_s11 = sphi %s3550_s11, %s4491_s11   ;;  %s3480_s10 = sphi %s3548_s10, %s4490_s10   ;;  %s3476_s30 = sphi %s3546_s30, %s4489_s30  }
   0x4   : > { %s3571_s15 = sadd.s32 1, %s3488_s12   ;;  %s223_s16 = sadd.s32 1, %s3484_s11 }
   0x5   : > { %s220_s17 = ssub.s32 %s3488_s12, %s3571_s15  ;;  %p233_p0 = scmp.ne.s32.totalorder %s3484_s11, %s3480_s10 }
   0x6   : > { %p221_p1 = scmp.eq.s32.totalorder %s220_s17, 0  ;;  %p234_p2 = scmp.eq.s32.totalorder %s3567_s13, 1 }
   0x7   : > { %p239_p3 = scmp.ne.s32.totalorder %s3480_s10, %s3476_s30  ;;  %p240_p4 = scmp.eq.s32.totalorder %s2642_s14, 1 }
   0x8   : > { %s3582_s18 = scalar_select %p221_p1, %s3484_s11, %s223_s16  }
   0x9   : > { %p3584_p5 = por %p234_p2, %p233_p0  ;;  %p3588_p6 = por %p240_p4, %p239_p3 }
   0xa   : > { %p2645_p7 = scmp.ge.s32.totalorder %s3488_s12, 1  ;;  %p292_p8 = scmp.lt.s32.totalorder %s3488_s12, 3 }
   0xc   : > { %p293_p9 = pnand %p2645_p7, %p292_p8 }
   0xd   : > { %v3031_v0 = vld [vmem:[%s4478_s1 + $0x4] ss:$16 sps:$4 sm:$0xff] (!%p293_p9)   ;;  %v3033_v1 = vld [vmem:[%s4478_s1 + $0xc] ss:$16 sps:$4 sm:$0xff] (!%p293_p9)   ;;  %v3035_v2 = vld [vmem:[%s4478_s1] ss:$16 sps:$4 sm:$0xff] (!%p293_p9)  }
   0xe   : > { %296 = sbr.rel (%p293_p9) target bundleno = 1123 (0x463), region = 56  ;;  %1607 = vmatprep.subr.bf16.mxu0 (!%p293_p9), %v3031_v0  ;;  %v3036_v3 = vld [vmem:[%s4478_s1 + $0x8] ss:$16 sps:$4 sm:$0xff] (!%p293_p9)   ;;  %1779 = vmatprep.subr.bf16.mxu1 (!%p293_p9), %v3033_v1  ;;  %v3037_v4 = vld [vmem:[%s4478_s1 + $0x24] ss:$16 sps:$4 sm:$0xff] (!%p293_p9)   ;;  %s2647_s21 = sshll.u32 (!%p293_p9), %s3567_s13, 1 }
   0xf   : > { %1608 = vmatpush1.bf16.msra.mxu0 (!%p293_p9), %v3035_v2  ;;  %1780 = vmatpush1.bf16.msra.mxu1 (!%p293_p9), %v3036_v3  ;;  %v3039_v5 = vld [vmem:[%s4478_s1 + $0x2c] ss:$16 sps:$4 sm:$0xff] (!%p293_p9)   ;;  %v3041_v6 = vld [vmem:[%s4478_s1 + $0x20] ss:$16 sps:$4 sm:$0xff] (!%p293_p9)   ;;  %v3042_v7 = vld [vmem:[%s4478_s1 + $0x28] ss:$16 sps:$4 sm:$0xff] (!%p293_p9)  }
  0x10   : > { %1609 = vmatprep.subr.bf16.mxu0 (!%p293_p9), %v3037_v4  ;;  %1781 = vmatprep.subr.bf16.mxu1 (!%p293_p9), %v3039_v5  ;;  %v3043_v8 = vld [vmem:[%s4478_s1 + $0x44] ss:$16 sps:$4 sm:$0xff] (!%p293_p9)   ;;  %v3045_v9 = vld [vmem:[%s4478_s1 + $0x4c] ss:$16 sps:$4 sm:$0xff] (!%p293_p9)   ;;  %v3047_v10 = vld [vmem:[%s4478_s1 + $0x40] ss:$16 sps:$4 sm:$0xff] (!%p293_p9)  }
  0x11   : > { %v3048_v11 = vld [vmem:[%s4478_s1 + $0x48] ss:$16 sps:$4 sm:$0xff] (!%p293_p9)   ;;  %v3049_v12 = vld [vmem:[%s4478_s1 + $0x64] ss:$16 sps:$4 sm:$0xff] (!%p293_p9)   ;;  %v3051_v13 = vld [vmem:[%s4478_s1 + $0x6c] ss:$16 sps:$4 sm:$0xff] (!%p293_p9)  }
  0x12   : > { %v3053_v14 = vld [vmem:[%s4478_s1 + $0x60] ss:$16 sps:$4 sm:$0xff] (!%p293_p9)   ;;  %v3054_v15 = vld [vmem:[%s4478_s1 + $0x68] ss:$16 sps:$4 sm:$0xff] (!%p293_p9)   ;;  %v3055_v16 = vld [vmem:[%s4478_s1 + $0x84] ss:$16 sps:$4 sm:$0xff] (!%p293_p9)  }
  0x13   : > { %1610 = vmatpush1.bf16.msra.mxu0 (!%p293_p9), %v3041_v6  ;;  %1782 = vmatpush1.bf16.msra.mxu1 (!%p293_p9), %v3042_v7  ;;  %v3057_v17 = vld [vmem:[%s4478_s1 + $0x8c] ss:$16 sps:$4 sm:$0xff] (!%p293_p9)   ;;  %v3059_v18 = vld [vmem:[%s4478_s1 + $0x80] ss:$16 sps:$4 sm:$0xff] (!%p293_p9)   ;;  %v3060_v19 = vld [vmem:[%s4478_s1 + $0x88] ss:$16 sps:$4 sm:$0xff] (!%p293_p9)  }
  0x14   : > { %1611 = vmatprep.subr.bf16.mxu0 (!%p293_p9), %v3043_v8  ;;  %1783 = vmatprep.subr.bf16.mxu1 (!%p293_p9), %v3045_v9  ;;  %v3061_v20 = vld [vmem:[%s4478_s1 + $0xa4] ss:$16 sps:$4 sm:$0xff] (!%p293_p9)   ;;  %v3063_v21 = vld [vmem:[%s4478_s1 + $0xac] ss:$16 sps:$4 sm:$0xff] (!%p293_p9)   ;;  %v3065_v22 = vld [vmem:[%s4478_s1 + $0xa0] ss:$16 sps:$4 sm:$0xff] (!%p293_p9)  }
  0x15   : > { %v3066_v23 = vld [vmem:[%s4478_s1 + $0xa8] ss:$16 sps:$4 sm:$0xff]   ;;  %v3067_v24 = vld [vmem:[%s4478_s1 + $0xc4] ss:$16 sps:$4 sm:$0xff]   ;;  %v3069_v25 = vld [vmem:[%s4478_s1 + $0xcc] ss:$16 sps:$4 sm:$0xff]  }
  0x16   : > { %v3071_v26 = vld [vmem:[%s4478_s1 + $0xc0] ss:$16 sps:$4 sm:$0xff]   ;;  %v3072_v27 = vld [vmem:[%s4478_s1 + $0xc8] ss:$16 sps:$4 sm:$0xff]   ;;  %v3073_v28 = vld [vmem:[%s4478_s1 + $0xe4] ss:$16 sps:$4 sm:$0xff]  }
  0x17   : > { %1612 = vmatpush1.bf16.msra.mxu0 %v3047_v10  ;;  %1784 = vmatpush1.bf16.msra.mxu1 %v3048_v11  ;;  %v3075_v29 = vld [vmem:[%s4478_s1 + $0xec] ss:$16 sps:$4 sm:$0xff]   ;;  %v3077_v30 = vld [vmem:[%s4478_s1 + $0xe0] ss:$16 sps:$4 sm:$0xff]   ;;  %v3078_v31 = vld [vmem:[%s4478_s1 + $0xe8] ss:$16 sps:$4 sm:$0xff]  }
  0x18   : > { %1613 = vmatprep.subr.bf16.mxu0 %v3049_v12  ;;  %1785 = vmatprep.subr.bf16.mxu1 %v3051_v13  ;;  %v3079_v32 = vld [vmem:[%s4478_s1 + $0x104] ss:$16 sps:$4 sm:$0xff]   ;;  %p330_p10 = scmp.lt.s32.totalorder %s2647_s21, 3  ;;  %v3081_v33 = vld [vmem:[%s4478_s1 + $0x10c] ss:$16 sps:$4 sm:$0xff]   ;;  %vm1603_vm0 = vcmask 261120  }
  0x19   : > { %v3083_v34 = vld [vmem:[%s4478_s1 + $0x100] ss:$16 sps:$4 sm:$0xff]   ;;  %v3084_v35 = vld [vmem:[%s4478_s1 + $0x108] ss:$16 sps:$4 sm:$0xff]   ;;  %v3085_v36 = vld [vmem:[%s4478_s1 + $0x124] ss:$16 sps:$4 sm:$0xff]  }
  0x1a   : > { %s4494_s21 = smov (!%p330_p10, %s2647_s21), 3  ;;  %v3087_v37 = vld [vmem:[%s4478_s1 + $0x12c] ss:$16 sps:$4 sm:$0xff]   ;;  %v3089_v38 = vld [vmem:[%s4478_s1 + $0x120] ss:$16 sps:$4 sm:$0xff]   ;;  %vm2275_vm1 = vcmask 130048  }
  0x1b   : > { %1614 = vmatpush1.bf16.msra.mxu0 %v3053_v14  ;;  %1786 = vmatpush1.bf16.msra.mxu1 %v3054_v15  ;;  %v3090_v39 = vld [vmem:[%s4478_s1 + $0x128] ss:$16 sps:$4 sm:$0xff]   ;;  %v3091_v40 = vld [vmem:[%s4478_s1 + $0x144] ss:$16 sps:$4 sm:$0xff]   ;;  %s2986_s22 = smul.u32 28, %s4494_s21  ;;  %vm3492_vm2 = vmmov 0  }
  0x1c   : > { %1615 = vmatprep.subr.bf16.mxu0 %v3055_v16  ;;  %1787 = vmatprep.subr.bf16.mxu1 %v3057_v17  ;;  %v3093_v41 = vld [vmem:[%s4478_s1 + $0x14c] ss:$16 sps:$4 sm:$0xff]   ;;  %v3095_v42 = vld [vmem:[%s4478_s1 + $0x140] ss:$16 sps:$4 sm:$0xff]   ;;  %v3096_v43 = vld [vmem:[%s4478_s1 + $0x148] ss:$16 sps:$4 sm:$0xff]  }
  0x1d   : > { %v3097_v44 = vld [vmem:[%s4478_s1 + $0x164] ss:$16 sps:$4 sm:$0xff]   ;;  %s3733_s17 = scalar_lea.vmem %s4477_s0, %s2986_s22  ;;  %v3099_v45 = vld [vmem:[%s4478_s1 + $0x16c] ss:$16 sps:$4 sm:$0xff]   ;;  %v3101_v46 = vld [vmem:[%s4478_s1 + $0x160] ss:$16 sps:$4 sm:$0xff]  }
  0x1e   : > { %v3102_v47 = vld [vmem:[%s4478_s1 + $0x168] ss:$16 sps:$4 sm:$0xff]   ;;  %v3129_v48 = vld [vmem:[%s3733_s17 + $0x4] ss:$28 sps:$4 sm:$0xff]   ;;  %v3105_v50 = vld [vmem:[%s4478_s1 + $0x18c] ss:$16 sps:$4 sm:$0xff]  }
  0x1f   : > { %1616 = vmatpush1.bf16.msra.mxu0 %v3059_v18  ;;  %1788 = vmatpush1.bf16.msra.mxu1 %v3060_v19  ;;  %v3103_v49 = vld [vmem:[%s4478_s1 + $0x184] ss:$16 sps:$4 sm:$0xff]   ;;  %v3107_v51 = vld [vmem:[%s4478_s1 + $0x180] ss:$16 sps:$4 sm:$0xff]   ;;  %v3108_v52 = vld [vmem:[%s4478_s1 + $0x188] ss:$16 sps:$4 sm:$0xff]  }
  0x20   : > { %1617 = vmatprep.subr.bf16.mxu0 %v3061_v20  ;;  %1789 = vmatprep.subr.bf16.mxu1 %v3063_v21  ;;  %v3109_v53 = vld [vmem:[%s4478_s1 + $0x1a4] ss:$16 sps:$4 sm:$0xff]   ;;  %v3111_v54 = vld [vmem:[%s4478_s1 + $0x1ac] ss:$16 sps:$4 sm:$0xff]   ;;  %v3113_v55 = vld [vmem:[%s4478_s1 + $0x1a0] ss:$16 sps:$4 sm:$0xff]  }
  0x21   : > { %1639 = vmatprep.mubr.bf16.mxu0 %v3129_v48  ;;  %1811 = vmatprep.mubr.bf16.mxu1 %v3129_v48  ;;  %v3114_v56 = vld [vmem:[%s4478_s1 + $0x1a8] ss:$16 sps:$4 sm:$0xff]   ;;  %v3115_v57 = vld [vmem:[%s4478_s1 + $0x1c4] ss:$16 sps:$4 sm:$0xff]   ;;  %v3117_v58 = vld [vmem:[%s4478_s1 + $0x1cc] ss:$16 sps:$4 sm:$0xff]  }
  0x22   : > { %v3119_v59 = vld [vmem:[%s4478_s1 + $0x1c0] ss:$16 sps:$4 sm:$0xff]   ;;  %v3120_v60 = vld [vmem:[%s4478_s1 + $0x1c8] ss:$16 sps:$4 sm:$0xff]   ;;  %v3121_v61 = vld [vmem:[%s4478_s1 + $0x1e4] ss:$16 sps:$4 sm:$0xff]  }
  0x23   : > { %1618 = vmatpush1.bf16.msra.mxu0 %v3065_v22  ;;  %1790 = vmatpush1.bf16.msra.mxu1 %v3066_v23  ;;  %v3123_v62 = vld [vmem:[%s4478_s1 + $0x1ec] ss:$16 sps:$4 sm:$0xff]   ;;  %v3125_v63 = vld [vmem:[%s4478_s1 + $0x1e0] ss:$16 sps:$4 sm:$0xff]   ;;  %v3126_v0 = vld [vmem:[%s4478_s1 + $0x1e8] ss:$16 sps:$4 sm:$0xff]  }
  0x24   : > { %1619 = vmatprep.subr.bf16.mxu0 %v3067_v24  ;;  %1791 = vmatprep.subr.bf16.mxu1 %v3069_v25  ;;  %v3132_v1 = vld [vmem:[%s4478_s1 + $0x204] ss:$16 sps:$4 sm:$0xff]   ;;  %v3135_v2 = vld [vmem:[%s4478_s1 + $0x20c] ss:$16 sps:$4 sm:$0xff]   ;;  %v3130_v4 = vld [vmem:[%s4478_s1 + $0x200] ss:$16 sps:$4 sm:$0xff]  }
  0x25   : > { %v3127_v3 = vld [vmem:[%s3733_s17] ss:$28 sps:$4 sm:$0xff]   ;;  %v3133_v5 = vld [vmem:[%s4478_s1 + $0x208] ss:$16 sps:$4 sm:$0xff]   ;;  %v3138_v6 = vld [vmem:[%s4478_s1 + $0x224] ss:$16 sps:$4 sm:$0xff]  }
  0x26   : > { %v3141_v7 = vld [vmem:[%s4478_s1 + $0x22c] ss:$16 sps:$4 sm:$0xff]   ;;  %v3136_v8 = vld [vmem:[%s4478_s1 + $0x220] ss:$16 sps:$4 sm:$0xff]   ;;  %v3139_v9 = vld [vmem:[%s4478_s1 + $0x228] ss:$16 sps:$4 sm:$0xff]  }
  0x27   : > { %1620 = vmatpush1.bf16.msra.mxu0 %v3071_v26  ;;  %1792 = vmatpush1.bf16.msra.mxu1 %v3072_v27  ;;  %v3144_v10 = vld [vmem:[%s4478_s1 + $0x244] ss:$16 sps:$4 sm:$0xff]   ;;  %v3147_v11 = vld [vmem:[%s4478_s1 + $0x24c] ss:$16 sps:$4 sm:$0xff]   ;;  %v3142_v12 = vld [vmem:[%s4478_s1 + $0x240] ss:$16 sps:$4 sm:$0xff]  }
  0x28   : > { %1621 = vmatprep.subr.bf16.mxu0 %v3073_v28  ;;  %1793 = vmatprep.subr.bf16.mxu1 %v3075_v29  ;;  %v3145_v13 = vld [vmem:[%s4478_s1 + $0x248] ss:$16 sps:$4 sm:$0xff]   ;;  %v3150_v14 = vld [vmem:[%s4478_s1 + $0x264] ss:$16 sps:$4 sm:$0xff]   ;;  %v3153_v15 = vld [vmem:[%s4478_s1 + $0x26c] ss:$16 sps:$4 sm:$0xff]  }
  0x29   : > { %v3148_v16 = vld [vmem:[%s4478_s1 + $0x260] ss:$16 sps:$4 sm:$0xff]   ;;  %v3151_v17 = vld [vmem:[%s4478_s1 + $0x268] ss:$16 sps:$4 sm:$0xff]   ;;  %v3156_v18 = vld [vmem:[%s4478_s1 + $0x284] ss:$16 sps:$4 sm:$0xff]  }
  0x2a   : > { %v3159_v19 = vld [vmem:[%s4478_s1 + $0x28c] ss:$16 sps:$4 sm:$0xff]   ;;  %v3154_v20 = vld [vmem:[%s4478_s1 + $0x280] ss:$16 sps:$4 sm:$0xff]   ;;  %v3157_v21 = vld [vmem:[%s4478_s1 + $0x288] ss:$16 sps:$4 sm:$0xff]  }
  0x2b   : > { %1622 = vmatpush1.bf16.msra.mxu0 %v3077_v30  ;;  %1794 = vmatpush1.bf16.msra.mxu1 %v3078_v31  ;;  %v3162_v22 = vld [vmem:[%s4478_s1 + $0x2a4] ss:$16 sps:$4 sm:$0xff]   ;;  %v3165_v23 = vld [vmem:[%s4478_s1 + $0x2ac] ss:$16 sps:$4 sm:$0xff]   ;;  %v3160_v24 = vld [vmem:[%s4478_s1 + $0x2a0] ss:$16 sps:$4 sm:$0xff]  }
  0x2c   : > { %1623 = vmatprep.subr.bf16.mxu0 %v3079_v32  ;;  %1795 = vmatprep.subr.bf16.mxu1 %v3081_v33  ;;  %v3163_v25 = vld [vmem:[%s4478_s1 + $0x2a8] ss:$16 sps:$4 sm:$0xff]   ;;  %v3168_v26 = vld [vmem:[%s4478_s1 + $0x2c4] ss:$16 sps:$4 sm:$0xff]   ;;  %v3171_v27 = vld [vmem:[%s4478_s1 + $0x2cc] ss:$16 sps:$4 sm:$0xff]  }
  0x2d   : > { %v3166_v28 = vld [vmem:[%s4478_s1 + $0x2c0] ss:$16 sps:$4 sm:$0xff]   ;;  %v3169_v29 = vld [vmem:[%s4478_s1 + $0x2c8] ss:$16 sps:$4 sm:$0xff]   ;;  %v3174_v31 = vld [vmem:[%s4478_s1 + $0x2e4] ss:$16 sps:$4 sm:$0xff]  }
  0x2e   : > { %v3228_v30 = vld [vmem:[%s3733_s17 + $0xc] ss:$28 sps:$4 sm:$0xff]   ;;  %v3172_v33 = vld [vmem:[%s4478_s1 + $0x2e0] ss:$16 sps:$4 sm:$0xff]   ;;  %s326_s14 = sand.u32 1, %s3480_s10   ;;  %s2932_s25 = sshll.u32 %s3567_s13, 7 }
  0x2f   : > { %1624 = vmatpush1.bf16.msra.mxu0 %v3083_v34  ;;  %1796 = vmatpush1.bf16.msra.mxu1 %v3084_v35  ;;  %v3177_v32 = vld [vmem:[%s4478_s1 + $0x2ec] ss:$16 sps:$4 sm:$0xff]   ;;  %v3175_v34 = vld [vmem:[%s4478_s1 + $0x2e8] ss:$16 sps:$4 sm:$0xff]   ;;  %v3180_v35 = vld [vmem:[%s4478_s1 + $0x304] ss:$16 sps:$4 sm:$0xff]   ;;  %s4434_s28 = scalar_lea.hbm %s4486_s9, %s2932_s25 }
  0x30   : > { %1625 = vmatprep.subr.bf16.mxu0 %v3085_v36  ;;  %1797 = vmatprep.subr.bf16.mxu1 %v3087_v37  ;;  %v3183_v36 = vld [vmem:[%s4478_s1 + $0x30c] ss:$16 sps:$4 sm:$0xff]   ;;  %v3178_v37 = vld [vmem:[%s4478_s1 + $0x300] ss:$16 sps:$4 sm:$0xff]   ;;  %s2646_s21 = sshll.u32 %s326_s14, 3  ;;  %s4436_s22 = scalar_lea.sflag [#allocation3], %s326_s14 }
  0x31   : > { %v3201_v48 = vld [vmem:[%s4478_s1 + $0x36c] ss:$16 sps:$4 sm:$0xff]   ;;  %s328_s23 = scalar_lea.vmem [#allocation2], %s2646_s21  ;;  %s3493_s13 = smov [#allocation2]  }
  0x32   : > { %s2580_s24 = sshll.u32 %s328_s23, 4  ;;  %s3430_s21 = sshll.u32 %s3493_s13, 4  ;;  %s4429_s24 = int_to_ptr.vmem [resolvable:$true] %s2580_s24  ;;  %s3431_s21 = int_to_ptr.vmem [resolvable:$false] %s3430_s21 }
  0x33   : > { %1626 = vmatpush1.bf16.msra.mxu0 %v3089_v38  ;;  %1798 = vmatpush1.bf16.msra.mxu1 %v3090_v39  ;;  %v3181_v38 = vld [vmem:[%s4478_s1 + $0x308] ss:$16 sps:$4 sm:$0xff]   ;;  %v3186_v39 = vld [vmem:[%s4478_s1 + $0x324] ss:$16 sps:$4 sm:$0xff]   ;;  %s3426_s29 = scalar_lea.vmem %s4429_s24, 128  ;;  %s3432_s16 = scalar_lea.vmem %s3431_s21, 256 }
  0x34   : > { %1627 = vmatprep.subr.bf16.mxu0 %v3091_v40  ;;  %1799 = vmatprep.subr.bf16.mxu1 %v3093_v41  ;;  %v3189_v40 = vld [vmem:[%s4478_s1 + $0x32c] ss:$16 sps:$4 sm:$0xff]   ;;  %v3184_v41 = vld [vmem:[%s4478_s1 + $0x320] ss:$16 sps:$4 sm:$0xff]   ;;  %p3427_p11 = scmp.ne.s32.totalorder %s4429_s24, %s3426_s29  ;;  %p3433_p0 = scmp.lt.s32.totalorder %s4429_s24, %s3431_s21 }
  0x35   : > { %p3434_p1 = scmp.lt.s32.totalorder %s3432_s16, %s3426_s29 }
  0x36   : > { %p3428_p12 = pnand %p3427_p11, %p3584_p5 }
  0x37   : > { %1628 = vmatpush1.bf16.msra.mxu0 %v3095_v42  ;;  %1800 = vmatpush1.bf16.msra.mxu1 %v3096_v43  ;;  %v3187_v42 = vld [vmem:[%s4478_s1 + $0x328] ss:$16 sps:$4 sm:$0xff]   ;;  %v3192_v43 = vld [vmem:[%s4478_s1 + $0x344] ss:$16 sps:$4 sm:$0xff]   ;;  %p3435_p2 = por %p3434_p1, %p3433_p0 }
  0x38   : > { %1629 = vmatprep.subr.bf16.mxu0 %v3097_v44  ;;  %1801 = vmatprep.subr.bf16.mxu1 %v3099_v45  ;;  %v3195_v44 = vld [vmem:[%s4478_s1 + $0x34c] ss:$16 sps:$4 sm:$0xff]   ;;  %v3190_v45 = vld [vmem:[%s4478_s1 + $0x340] ss:$16 sps:$4 sm:$0xff]   ;;  %p3429_p13 = pneg %p3428_p12 }
  0x3a   : > { %p3436_p3 = pnand %p3435_p2, %p3429_p13 }
  0x3b   : > { %1630 = vmatpush1.bf16.msra.mxu0 %v3101_v46  ;;  %1802 = vmatpush1.bf16.msra.mxu1 %v3102_v47  ;;  %v3193_v46 = vld [vmem:[%s4478_s1 + $0x348] ss:$16 sps:$4 sm:$0xff]   ;;  %v3198_v47 = vld [vmem:[%s4478_s1 + $0x364] ss:$16 sps:$4 sm:$0xff]  }
  0x3c   : > { %1631 = vmatprep.subr.bf16.mxu0 %v3103_v49  ;;  %1803 = vmatprep.subr.bf16.mxu1 %v3105_v50  ;;  %v3196_v49 = vld [vmem:[%s4478_s1 + $0x360] ss:$16 sps:$4 sm:$0xff]   ;;  %v3199_v50 = vld [vmem:[%s4478_s1 + $0x368] ss:$16 sps:$4 sm:$0xff]  }
  0x3f   : > { %1632 = vmatpush1.bf16.msra.mxu0 %v3107_v51  ;;  %1804 = vmatpush1.bf16.msra.mxu1 %v3108_v52  ;;  %v3204_v51 = vld [vmem:[%s4478_s1 + $0x384] ss:$16 sps:$4 sm:$0xff]   ;;  %v3207_v52 = vld [vmem:[%s4478_s1 + $0x38c] ss:$16 sps:$4 sm:$0xff]  }
  0x40   : > { %1633 = vmatprep.subr.bf16.mxu0 %v3109_v53  ;;  %1805 = vmatprep.subr.bf16.mxu1 %v3111_v54  ;;  %v3202_v53 = vld [vmem:[%s4478_s1 + $0x380] ss:$16 sps:$4 sm:$0xff]   ;;  %v3205_v54 = vld [vmem:[%s4478_s1 + $0x388] ss:$16 sps:$4 sm:$0xff]  }
  0x43   : > { %1634 = vmatpush1.bf16.msra.mxu0 %v3113_v55  ;;  %1806 = vmatpush1.bf16.msra.mxu1 %v3114_v56  ;;  %v3210_v55 = vld [vmem:[%s4478_s1 + $0x3a4] ss:$16 sps:$4 sm:$0xff]   ;;  %v3213_v56 = vld [vmem:[%s4478_s1 + $0x3ac] ss:$16 sps:$4 sm:$0xff]  }
  0x44   : > { %1635 = vmatprep.subr.bf16.mxu0 %v3115_v57  ;;  %1807 = vmatprep.subr.bf16.mxu1 %v3117_v58  ;;  %v3208_v57 = vld [vmem:[%s4478_s1 + $0x3a0] ss:$16 sps:$4 sm:$0xff]   ;;  %v3211_v58 = vld [vmem:[%s4478_s1 + $0x3a8] ss:$16 sps:$4 sm:$0xff]  }
  0x47   : > { %1636 = vmatpush1.bf16.msra.mxu0 %v3119_v59  ;;  %1808 = vmatpush1.bf16.msra.mxu1 %v3120_v60  ;;  %v3216_v59 = vld [vmem:[%s4478_s1 + $0x3c4] ss:$16 sps:$4 sm:$0xff]   ;;  %v3219_v60 = vld [vmem:[%s4478_s1 + $0x3cc] ss:$16 sps:$4 sm:$0xff]  }
  0x48   : > { %1637 = vmatprep.subr.bf16.mxu0 %v3121_v61  ;;  %1809 = vmatprep.subr.bf16.mxu1 %v3123_v62  ;;  %v3214_v61 = vld [vmem:[%s4478_s1 + $0x3c0] ss:$16 sps:$4 sm:$0xff]   ;;  %v3217_v62 = vld [vmem:[%s4478_s1 + $0x3c8] ss:$16 sps:$4 sm:$0xff]  }
  0x4b   : > { %1638 = vmatpush1.bf16.msra.mxu0 %v3125_v63  ;;  %1810 = vmatpush1.bf16.msra.mxu1 %v3126_v0  ;;  %v3222_v63 = vld [vmem:[%s4478_s1 + $0x3e4] ss:$16 sps:$4 sm:$0xff]   ;;  %v3225_v0 = vld [vmem:[%s4478_s1 + $0x3ec] ss:$16 sps:$4 sm:$0xff]  }
  0x4c   : > { %1650 = vmatprep.subr.bf16.mxu0 %v3132_v1  ;;  %1822 = vmatprep.subr.bf16.mxu1 %v3135_v2  ;;  %v3220_v1 = vld [vmem:[%s4478_s1 + $0x3e0] ss:$16 sps:$4 sm:$0xff]   ;;  %v3223_v2 = vld [vmem:[%s4478_s1 + $0x3e8] ss:$16 sps:$4 sm:$0xff]  }
  0x4e   : > { %1640 = vmatmul.mubr.bf16.vlgmr.msra.gmra.mrb[0].mxu0 %v3127_v3  ;;  %1812 = vmatmul.mubr.bf16.vlgmr.msra.gmra.mrb[0].mxu1 %v3127_v3  ;;  %v3231_v3 = vld [vmem:[%s4478_s1 + $0x404] ss:$16 sps:$4 sm:$0xff]  }
  0x4f   : > { %1651 = vmatpush1.bf16.msra.mxu0 %v3130_v4  ;;  %1823 = vmatpush1.bf16.msra.mxu1 %v3133_v5  ;;  %v3234_v4 = vld [vmem:[%s4478_s1 + $0x40c] ss:$16 sps:$4 sm:$0xff]   ;;  %v3226_v5 = vld [vmem:[%s3733_s17 + $0x8] ss:$28 sps:$4 sm:$0xff]  }
  0x50   : > { %1652 = vmatprep.subr.bf16.mxu0 %v3138_v6  ;;  %1824 = vmatprep.subr.bf16.mxu1 %v3141_v7  ;;  %v3229_v6 = vld [vmem:[%s4478_s1 + $0x400] ss:$16 sps:$4 sm:$0xff]   ;;  %v3232_v7 = vld [vmem:[%s4478_s1 + $0x408] ss:$16 sps:$4 sm:$0xff]  }
  0x51   : > { %1682 = vmatprep.mubr.bf16.mxu0 %v3228_v30  ;;  %1854 = vmatprep.mubr.bf16.mxu1 %v3228_v30  ;;  %v3270_v30 = vld [vmem:[%s4478_s1 + $0x4cc] ss:$16 sps:$4 sm:$0xff]  }
  0x53   : > { %1653 = vmatpush1.bf16.msra.mxu0 %v3136_v8  ;;  %1825 = vmatpush1.bf16.msra.mxu1 %v3139_v9  ;;  %v3237_v8 = vld [vmem:[%s4478_s1 + $0x424] ss:$16 sps:$4 sm:$0xff]   ;;  %v3240_v9 = vld [vmem:[%s4478_s1 + $0x42c] ss:$16 sps:$4 sm:$0xff]  }
  0x54   : > { %1654 = vmatprep.subr.bf16.mxu0 %v3144_v10  ;;  %1826 = vmatprep.subr.bf16.mxu1 %v3147_v11  ;;  %v3235_v10 = vld [vmem:[%s4478_s1 + $0x420] ss:$16 sps:$4 sm:$0xff]   ;;  %v3238_v11 = vld [vmem:[%s4478_s1 + $0x428] ss:$16 sps:$4 sm:$0xff]  }
  0x57   : > { %1655 = vmatpush1.bf16.msra.mxu0 %v3142_v12  ;;  %1827 = vmatpush1.bf16.msra.mxu1 %v3145_v13  ;;  %v3327_v12 = vld [vmem:[%s3733_s17 + $0x14] ss:$28 sps:$4 sm:$0xff]  }
  0x58   : > { %1656 = vmatprep.subr.bf16.mxu0 %v3150_v14  ;;  %1828 = vmatprep.subr.bf16.mxu1 %v3153_v15  ;;  %v3243_v13 = vld [vmem:[%s4478_s1 + $0x444] ss:$16 sps:$4 sm:$0xff]   ;;  %v3246_v14 = vld [vmem:[%s4478_s1 + $0x44c] ss:$16 sps:$4 sm:$0xff]   ;;  %v3241_v15 = vld [vmem:[%s4478_s1 + $0x440] ss:$16 sps:$4 sm:$0xff]  }
  0x5b   : > { %1657 = vmatpush1.bf16.msra.mxu0 %v3148_v16  ;;  %1829 = vmatpush1.bf16.msra.mxu1 %v3151_v17  ;;  %v3244_v16 = vld [vmem:[%s4478_s1 + $0x448] ss:$16 sps:$4 sm:$0xff]   ;;  %v3249_v17 = vld [vmem:[%s4478_s1 + $0x464] ss:$16 sps:$4 sm:$0xff]  }
  0x5c   : > { %1658 = vmatprep.subr.bf16.mxu0 %v3156_v18  ;;  %1830 = vmatprep.subr.bf16.mxu1 %v3159_v19  ;;  %v3252_v18 = vld [vmem:[%s4478_s1 + $0x46c] ss:$16 sps:$4 sm:$0xff]   ;;  %v3247_v19 = vld [vmem:[%s4478_s1 + $0x460] ss:$16 sps:$4 sm:$0xff]  }
  0x5f   : > { %1659 = vmatpush1.bf16.msra.mxu0 %v3154_v20  ;;  %1831 = vmatpush1.bf16.msra.mxu1 %v3157_v21  ;;  %v3250_v20 = vld [vmem:[%s4478_s1 + $0x468] ss:$16 sps:$4 sm:$0xff]   ;;  %v3255_v21 = vld [vmem:[%s4478_s1 + $0x484] ss:$16 sps:$4 sm:$0xff]  }
  0x60   : > { %1660 = vmatprep.subr.bf16.mxu0 %v3162_v22  ;;  %1832 = vmatprep.subr.bf16.mxu1 %v3165_v23  ;;  %v3258_v22 = vld [vmem:[%s4478_s1 + $0x48c] ss:$16 sps:$4 sm:$0xff]   ;;  %v3253_v23 = vld [vmem:[%s4478_s1 + $0x480] ss:$16 sps:$4 sm:$0xff]  }
  0x63   : > { %1661 = vmatpush1.bf16.msra.mxu0 %v3160_v24  ;;  %1833 = vmatpush1.bf16.msra.mxu1 %v3163_v25  ;;  %v3256_v24 = vld [vmem:[%s4478_s1 + $0x488] ss:$16 sps:$4 sm:$0xff]   ;;  %v3261_v25 = vld [vmem:[%s4478_s1 + $0x4a4] ss:$16 sps:$4 sm:$0xff]  }
  0x64   : > { %1662 = vmatprep.subr.bf16.mxu0 %v3168_v26  ;;  %1834 = vmatprep.subr.bf16.mxu1 %v3171_v27  ;;  %v3264_v26 = vld [vmem:[%s4478_s1 + $0x4ac] ss:$16 sps:$4 sm:$0xff]   ;;  %v3259_v27 = vld [vmem:[%s4478_s1 + $0x4a0] ss:$16 sps:$4 sm:$0xff]  }
  0x67   : > { %1663 = vmatpush1.bf16.msra.mxu0 %v3166_v28  ;;  %1835 = vmatpush1.bf16.msra.mxu1 %v3169_v29  ;;  %v3262_v28 = vld [vmem:[%s4478_s1 + $0x4a8] ss:$16 sps:$4 sm:$0xff]   ;;  %v3267_v29 = vld [vmem:[%s4478_s1 + $0x4c4] ss:$16 sps:$4 sm:$0xff]  }
  0x68   : > { %1664 = vmatprep.subr.bf16.mxu0 %v3174_v31  ;;  %1836 = vmatprep.subr.bf16.mxu1 %v3177_v32  ;;  %v3265_v31 = vld [vmem:[%s4478_s1 + $0x4c0] ss:$16 sps:$4 sm:$0xff]   ;;  %v3268_v32 = vld [vmem:[%s4478_s1 + $0x4c8] ss:$16 sps:$4 sm:$0xff]  }
  0x6b   : > { %1665 = vmatpush1.bf16.msra.mxu0 %v3172_v33  ;;  %1837 = vmatpush1.bf16.msra.mxu1 %v3175_v34  ;;  %v3273_v33 = vld [vmem:[%s4478_s1 + $0x4e4] ss:$16 sps:$4 sm:$0xff]   ;;  %v3276_v34 = vld [vmem:[%s4478_s1 + $0x4ec] ss:$16 sps:$4 sm:$0xff]  }
  0x6c   : > { %1666 = vmatprep.subr.bf16.mxu0 %v3180_v35  ;;  %1838 = vmatprep.subr.bf16.mxu1 %v3183_v36  ;;  %v3271_v35 = vld [vmem:[%s4478_s1 + $0x4e0] ss:$16 sps:$4 sm:$0xff]   ;;  %v3274_v36 = vld [vmem:[%s4478_s1 + $0x4e8] ss:$16 sps:$4 sm:$0xff]  }
  0x6f   : > { %1667 = vmatpush1.bf16.msra.mxu0 %v3178_v37  ;;  %1839 = vmatpush1.bf16.msra.mxu1 %v3181_v38  ;;  %v3279_v37 = vld [vmem:[%s4478_s1 + $0x504] ss:$16 sps:$4 sm:$0xff]   ;;  %v3282_v38 = vld [vmem:[%s4478_s1 + $0x50c] ss:$16 sps:$4 sm:$0xff]  }
  0x70   : > { %1668 = vmatprep.subr.bf16.mxu0 %v3186_v39  ;;  %1840 = vmatprep.subr.bf16.mxu1 %v3189_v40  ;;  %v3277_v39 = vld [vmem:[%s4478_s1 + $0x500] ss:$16 sps:$4 sm:$0xff]   ;;  %v3280_v40 = vld [vmem:[%s4478_s1 + $0x508] ss:$16 sps:$4 sm:$0xff]  }
  0x73   : > { %1669 = vmatpush1.bf16.msra.mxu0 %v3184_v41  ;;  %1841 = vmatpush1.bf16.msra.mxu1 %v3187_v42  ;;  %v3285_v41 = vld [vmem:[%s4478_s1 + $0x524] ss:$16 sps:$4 sm:$0xff]   ;;  %v3288_v42 = vld [vmem:[%s4478_s1 + $0x52c] ss:$16 sps:$4 sm:$0xff]  }
  0x74   : > { %1670 = vmatprep.subr.bf16.mxu0 %v3192_v43  ;;  %1842 = vmatprep.subr.bf16.mxu1 %v3195_v44  ;;  %v3283_v43 = vld [vmem:[%s4478_s1 + $0x520] ss:$16 sps:$4 sm:$0xff]   ;;  %v3286_v44 = vld [vmem:[%s4478_s1 + $0x528] ss:$16 sps:$4 sm:$0xff]  }
  0x77   : > { %1671 = vmatpush1.bf16.msra.mxu0 %v3190_v45  ;;  %1843 = vmatpush1.bf16.msra.mxu1 %v3193_v46  ;;  %v3291_v45 = vld [vmem:[%s4478_s1 + $0x544] ss:$16 sps:$4 sm:$0xff]   ;;  %v3294_v46 = vld [vmem:[%s4478_s1 + $0x54c] ss:$16 sps:$4 sm:$0xff]  }
  0x78   : > { %1672 = vmatprep.subr.bf16.mxu0 %v3198_v47  ;;  %1844 = vmatprep.subr.bf16.mxu1 %v3201_v48  ;;  %v3289_v47 = vld [vmem:[%s4478_s1 + $0x540] ss:$16 sps:$4 sm:$0xff]   ;;  %v3292_v48 = vld [vmem:[%s4478_s1 + $0x548] ss:$16 sps:$4 sm:$0xff]  }
  0x7b   : > { %1673 = vmatpush1.bf16.msra.mxu0 %v3196_v49  ;;  %1845 = vmatpush1.bf16.msra.mxu1 %v3199_v50  ;;  %v3297_v49 = vld [vmem:[%s4478_s1 + $0x564] ss:$16 sps:$4 sm:$0xff]   ;;  %v3300_v50 = vld [vmem:[%s4478_s1 + $0x56c] ss:$16 sps:$4 sm:$0xff]  }
  0x7c   : > { %1674 = vmatprep.subr.bf16.mxu0 %v3204_v51  ;;  %1846 = vmatprep.subr.bf16.mxu1 %v3207_v52  ;;  %v3295_v51 = vld [vmem:[%s4478_s1 + $0x560] ss:$16 sps:$4 sm:$0xff]   ;;  %v3298_v52 = vld [vmem:[%s4478_s1 + $0x568] ss:$16 sps:$4 sm:$0xff]  }
  0x7f   : > { %1675 = vmatpush1.bf16.msra.mxu0 %v3202_v53  ;;  %1847 = vmatpush1.bf16.msra.mxu1 %v3205_v54  ;;  %v3303_v53 = vld [vmem:[%s4478_s1 + $0x584] ss:$16 sps:$4 sm:$0xff]   ;;  %v3306_v54 = vld [vmem:[%s4478_s1 + $0x58c] ss:$16 sps:$4 sm:$0xff]  }
  0x80   : > { %1676 = vmatprep.subr.bf16.mxu0 %v3210_v55  ;;  %1848 = vmatprep.subr.bf16.mxu1 %v3213_v56  ;;  %v3301_v55 = vld [vmem:[%s4478_s1 + $0x580] ss:$16 sps:$4 sm:$0xff]   ;;  %v3304_v56 = vld [vmem:[%s4478_s1 + $0x588] ss:$16 sps:$4 sm:$0xff]  }
  0x83   : > { %1677 = vmatpush1.bf16.msra.mxu0 %v3208_v57  ;;  %1849 = vmatpush1.bf16.msra.mxu1 %v3211_v58  ;;  %v3309_v57 = vld [vmem:[%s4478_s1 + $0x5a4] ss:$16 sps:$4 sm:$0xff]   ;;  %v3312_v58 = vld [vmem:[%s4478_s1 + $0x5ac] ss:$16 sps:$4 sm:$0xff]  }
  0x84   : > { %1678 = vmatprep.subr.bf16.mxu0 %v3216_v59  ;;  %1850 = vmatprep.subr.bf16.mxu1 %v3219_v60  ;;  %v3307_v59 = vld [vmem:[%s4478_s1 + $0x5a0] ss:$16 sps:$4 sm:$0xff]   ;;  %v3310_v60 = vld [vmem:[%s4478_s1 + $0x5a8] ss:$16 sps:$4 sm:$0xff]  }
  0x87   : > { %1679 = vmatpush1.bf16.msra.mxu0 %v3214_v61  ;;  %1851 = vmatpush1.bf16.msra.mxu1 %v3217_v62  ;;  %v3315_v61 = vld [vmem:[%s4478_s1 + $0x5c4] ss:$16 sps:$4 sm:$0xff]   ;;  %v3318_v62 = vld [vmem:[%s4478_s1 + $0x5cc] ss:$16 sps:$4 sm:$0xff]  }
  0x88   : > { %1680 = vmatprep.subr.bf16.mxu0 %v3222_v63  ;;  %1852 = vmatprep.subr.bf16.mxu1 %v3225_v0  ;;  %v3313_v63 = vld [vmem:[%s4478_s1 + $0x5c0] ss:$16 sps:$4 sm:$0xff]   ;;  %v3316_v0 = vld [vmem:[%s4478_s1 + $0x5c8] ss:$16 sps:$4 sm:$0xff]  }
  0x8b   : > { %1681 = vmatpush1.bf16.msra.mxu0 %v3220_v1  ;;  %1853 = vmatpush1.bf16.msra.mxu1 %v3223_v2  ;;  %v3321_v1 = vld [vmem:[%s4478_s1 + $0x5e4] ss:$16 sps:$4 sm:$0xff]   ;;  %v3324_v2 = vld [vmem:[%s4478_s1 + $0x5ec] ss:$16 sps:$4 sm:$0xff]  }
  0x8c   : > { %1693 = vmatprep.subr.bf16.mxu0 %v3231_v3  ;;  %1865 = vmatprep.subr.bf16.mxu1 %v3234_v4  ;;  %v3319_v3 = vld [vmem:[%s4478_s1 + $0x5e0] ss:$16 sps:$4 sm:$0xff]   ;;  %v3322_v4 = vld [vmem:[%s4478_s1 + $0x5e8] ss:$16 sps:$4 sm:$0xff]  }
  0x8e   : > { %1683 = vmatmul.mubr.bf16.vlgmr.msra.gmra.mrb[0].mxu0 %v3226_v5  ;;  %1855 = vmatmul.mubr.bf16.vlgmr.msra.gmra.mrb[0].mxu1 %v3226_v5  ;;  %v3330_v5 = vld [vmem:[%s4478_s1 + $0x604] ss:$16 sps:$4 sm:$0xff]  }
  0x8f   : > { %1694 = vmatpush1.bf16.msra.mxu0 %v3229_v6  ;;  %1866 = vmatpush1.bf16.msra.mxu1 %v3232_v7  ;;  %v3373_v6 = vld [vmem:[%s4480_s3 + $0x104] ss:$8 sps:$4 sm:$0xff]  }
  0x90   : > { %1695 = vmatprep.subr.bf16.mxu0 %v3237_v8  ;;  %1867 = vmatprep.subr.bf16.mxu1 %v3240_v9  ;;  %v3325_v7 = vld [vmem:[%s3733_s17 + $0x10] ss:$28 sps:$4 sm:$0xff]   ;;  %v3333_v9 = vld [vmem:[%s4478_s1 + $0x624] ss:$16 sps:$4 sm:$0xff]  }
  0x91   : > { %1725 = vmatprep.mubr.bf16.mxu0 %v3327_v12  ;;  %1897 = vmatprep.mubr.bf16.mxu1 %v3327_v12  ;;  %v3328_v8 = vld [vmem:[%s4478_s1 + $0x600] ss:$16 sps:$4 sm:$0xff]  }
  0x92   : > { %v3331_v12 = vld [vmem:[%s4478_s1 + $0x620] ss:$16 sps:$4 sm:$0xff]  }
  0x93   : > { %1696 = vmatpush1.bf16.msra.mxu0 %v3235_v10  ;;  %1868 = vmatpush1.bf16.msra.mxu1 %v3238_v11  ;;  %v3371_v10 = vld [vmem:[%s4480_s3 + $0x100] ss:$8 sps:$4 sm:$0xff]   ;;  %v3379_v11 = vld [vmem:[%s4480_s3 + $0x114] ss:$8 sps:$4 sm:$0xff]  }
  0x94   : > { %1697 = vmatprep.subr.bf16.mxu0 %v3243_v13  ;;  %1869 = vmatprep.subr.bf16.mxu1 %v3246_v14  ;;  %v3490_v13 = vmov 0   ;;  %v3337_v14 = vld [vmem:[%s4478_s1 + $0x60c] ss:$16 sps:$4 sm:$0xff]  }
  0x97   : > { %1698 = vmatpush1.bf16.msra.mxu0 %v3241_v15  ;;  %1870 = vmatpush1.bf16.msra.mxu1 %v3244_v16  ;;  %v3377_v15 = vld [vmem:[%s4480_s3 + $0x110] ss:$8 sps:$4 sm:$0xff]  }
  0x98   : > { %1699 = vmatprep.subr.bf16.mxu0 %v3249_v17  ;;  %1871 = vmatprep.subr.bf16.mxu1 %v3252_v18  ;;  %v3334_v16 = vld [vmem:[%s3733_s17 + $0x18] ss:$28 sps:$4 sm:$0xff]   ;;  %v3340_v18 = vld [vmem:[%s4478_s1 + $0x62c] ss:$16 sps:$4 sm:$0xff]  }
  0x99   : > { %v3335_v17 = vld [vmem:[%s4478_s1 + $0x608] ss:$16 sps:$4 sm:$0xff]  }
  0x9b   : > { %1700 = vmatpush1.bf16.msra.mxu0 %v3247_v19  ;;  %1872 = vmatpush1.bf16.msra.mxu1 %v3250_v20  ;;  %v3338_v19 = vld [vmem:[%s4478_s1 + $0x628] ss:$16 sps:$4 sm:$0xff]   ;;  %v3343_v20 = vld [vmem:[%s4480_s3 + $0x4] ss:$8 sps:$4 sm:$0xff]  }
  0x9c   : > { %1701 = vmatprep.subr.bf16.mxu0 %v3255_v21  ;;  %1873 = vmatprep.subr.bf16.mxu1 %v3258_v22  ;;  %v3341_v21 = vld [vmem:[%s4480_s3] ss:$8 sps:$4 sm:$0xff]   ;;  %v3346_v22 = vld [vmem:[%s4480_s3 + $0x14] ss:$8 sps:$4 sm:$0xff]  }
  0x9f   : > { %1702 = vmatpush1.bf16.msra.mxu0 %v3253_v23  ;;  %1874 = vmatpush1.bf16.msra.mxu1 %v3256_v24  ;;  %v3344_v23 = vld [vmem:[%s4480_s3 + $0x10] ss:$8 sps:$4 sm:$0xff]   ;;  %v3349_v24 = vld [vmem:[%s4480_s3 + $0x24] ss:$8 sps:$4 sm:$0xff]  }
  0xa0   : > { %1703 = vmatprep.subr.bf16.mxu0 %v3261_v25  ;;  %1875 = vmatprep.subr.bf16.mxu1 %v3264_v26  ;;  %v3347_v25 = vld [vmem:[%s4480_s3 + $0x20] ss:$8 sps:$4 sm:$0xff]   ;;  %v3352_v26 = vld [vmem:[%s4480_s3 + $0x34] ss:$8 sps:$4 sm:$0xff]  }
  0xa3   : > { %1704 = vmatpush1.bf16.msra.mxu0 %v3259_v27  ;;  %1876 = vmatpush1.bf16.msra.mxu1 %v3262_v28  ;;  %v3350_v27 = vld [vmem:[%s4480_s3 + $0x30] ss:$8 sps:$4 sm:$0xff]   ;;  %v3355_v28 = vld [vmem:[%s4480_s3 + $0x44] ss:$8 sps:$4 sm:$0xff]  }
  0xa4   : > { %1705 = vmatprep.subr.bf16.mxu0 %v3267_v29  ;;  %1877 = vmatprep.subr.bf16.mxu1 %v3270_v30  ;;  %v3353_v29 = vld [vmem:[%s4480_s3 + $0x40] ss:$8 sps:$4 sm:$0xff]   ;;  %v3358_v30 = vld [vmem:[%s4480_s3 + $0x54] ss:$8 sps:$4 sm:$0xff]  }
  0xa7   : > { %1706 = vmatpush1.bf16.msra.mxu0 %v3265_v31  ;;  %1878 = vmatpush1.bf16.msra.mxu1 %v3268_v32  ;;  %v3356_v31 = vld [vmem:[%s4480_s3 + $0x50] ss:$8 sps:$4 sm:$0xff]   ;;  %v3361_v32 = vld [vmem:[%s4480_s3 + $0x64] ss:$8 sps:$4 sm:$0xff]  }
  0xa8   : > { %1707 = vmatprep.subr.bf16.mxu0 %v3273_v33  ;;  %1879 = vmatprep.subr.bf16.mxu1 %v3276_v34  ;;  %v3359_v33 = vld [vmem:[%s4480_s3 + $0x60] ss:$8 sps:$4 sm:$0xff]   ;;  %v3364_v34 = vld [vmem:[%s4480_s3 + $0x74] ss:$8 sps:$4 sm:$0xff]  }
  0xab   : > { %1708 = vmatpush1.bf16.msra.mxu0 %v3271_v35  ;;  %1880 = vmatpush1.bf16.msra.mxu1 %v3274_v36  ;;  %v3362_v35 = vld [vmem:[%s4480_s3 + $0x70] ss:$8 sps:$4 sm:$0xff]   ;;  %v3367_v36 = vld [vmem:[%s4480_s3 + $0x84] ss:$8 sps:$4 sm:$0xff]  }
  0xac   : > { %1709 = vmatprep.subr.bf16.mxu0 %v3279_v37  ;;  %1881 = vmatprep.subr.bf16.mxu1 %v3282_v38  ;;  %v3365_v37 = vld [vmem:[%s4480_s3 + $0x80] ss:$8 sps:$4 sm:$0xff]   ;;  %v3370_v38 = vld [vmem:[%s4480_s3 + $0x94] ss:$8 sps:$4 sm:$0xff]  }
  0xaf   : > { %1710 = vmatpush1.bf16.msra.mxu0 %v3277_v39  ;;  %1882 = vmatpush1.bf16.msra.mxu1 %v3280_v40  ;;  %v3368_v39 = vld [vmem:[%s4480_s3 + $0x90] ss:$8 sps:$4 sm:$0xff]   ;;  %v3376_v40 = vld [vmem:[%s4480_s3 + $0xa4] ss:$8 sps:$4 sm:$0xff]  }
  0xb0   : > { %1711 = vmatprep.subr.bf16.mxu0 %v3285_v41  ;;  %1883 = vmatprep.subr.bf16.mxu1 %v3288_v42  ;;  %v3374_v41 = vld [vmem:[%s4480_s3 + $0xa0] ss:$8 sps:$4 sm:$0xff]   ;;  %v3382_v42 = vld [vmem:[%s4480_s3 + $0xb4] ss:$8 sps:$4 sm:$0xff]  }
  0xb3   : > { %1712 = vmatpush1.bf16.msra.mxu0 %v3283_v43  ;;  %1884 = vmatpush1.bf16.msra.mxu1 %v3286_v44  ;;  %v3385_v43 = vld [vmem:[%s4480_s3 + $0x124] ss:$8 sps:$4 sm:$0xff]   ;;  %v3380_v44 = vld [vmem:[%s4480_s3 + $0xb0] ss:$8 sps:$4 sm:$0xff]  }
  0xb4   : > { %1713 = vmatprep.subr.bf16.mxu0 %v3291_v45  ;;  %1885 = vmatprep.subr.bf16.mxu1 %v3294_v46  ;;  %v3383_v45 = vld [vmem:[%s4480_s3 + $0x120] ss:$8 sps:$4 sm:$0xff]  }
  0xb5   : > { %v3386_v46 = vld [vmem:[%s4480_s3 + $0xc0] ss:$8 sps:$4 sm:$0xff]  }
  0xb7   : > { %1714 = vmatpush1.bf16.msra.mxu0 %v3289_v47  ;;  %1886 = vmatpush1.bf16.msra.mxu1 %v3292_v48  ;;  %v3388_v47 = vld [vmem:[%s4480_s3 + $0xc4] ss:$8 sps:$4 sm:$0xff]   ;;  %v3389_v48 = vld [vmem:[%s4480_s3 + $0x130] ss:$8 sps:$4 sm:$0xff]  }
  0xb8   : > { %1715 = vmatprep.subr.bf16.mxu0 %v3297_v49  ;;  %1887 = vmatprep.subr.bf16.mxu1 %v3300_v50  ;;  %v3391_v49 = vld [vmem:[%s4480_s3 + $0x134] ss:$8 sps:$4 sm:$0xff]  }
  0xb9   : > { %v3394_v50 = vld [vmem:[%s4480_s3 + $0xd4] ss:$8 sps:$4 sm:$0xff]  }
  0xbb   : > { %1716 = vmatpush1.bf16.msra.mxu0 %v3295_v51  ;;  %1888 = vmatpush1.bf16.msra.mxu1 %v3298_v52  ;;  %v3397_v51 = vld [vmem:[%s4480_s3 + $0x144] ss:$8 sps:$4 sm:$0xff]   ;;  %v3392_v52 = vld [vmem:[%s4480_s3 + $0xd0] ss:$8 sps:$4 sm:$0xff]  }
  0xbc   : > { %1717 = vmatprep.subr.bf16.mxu0 %v3303_v53  ;;  %1889 = vmatprep.subr.bf16.mxu1 %v3306_v54  ;;  %v3395_v53 = vld [vmem:[%s4480_s3 + $0x140] ss:$8 sps:$4 sm:$0xff]   ;;  %v3400_v54 = vld [vmem:[%s4480_s3 + $0xe4] ss:$8 sps:$4 sm:$0xff]  }
  0xbf   : > { %1718 = vmatpush1.bf16.msra.mxu0 %v3301_v55  ;;  %1890 = vmatpush1.bf16.msra.mxu1 %v3304_v56  ;;  %v3403_v55 = vld [vmem:[%s4480_s3 + $0x154] ss:$8 sps:$4 sm:$0xff]   ;;  %v3398_v56 = vld [vmem:[%s4480_s3 + $0xe0] ss:$8 sps:$4 sm:$0xff]  }
  0xc0   : > { %1719 = vmatprep.subr.bf16.mxu0 %v3309_v57  ;;  %1891 = vmatprep.subr.bf16.mxu1 %v3312_v58  ;;  %v3401_v57 = vld [vmem:[%s4480_s3 + $0x150] ss:$8 sps:$4 sm:$0xff]   ;;  %v3406_v58 = vld [vmem:[%s4480_s3 + $0xf4] ss:$8 sps:$4 sm:$0xff]  }
  0xc3   : > { %1720 = vmatpush1.bf16.msra.mxu0 %v3307_v59  ;;  %1892 = vmatpush1.bf16.msra.mxu1 %v3310_v60  ;;  %v3409_v59 = vld [vmem:[%s4480_s3 + $0x164] ss:$8 sps:$4 sm:$0xff]   ;;  %v3404_v60 = vld [vmem:[%s4480_s3 + $0xf0] ss:$8 sps:$4 sm:$0xff]  }
  0xc4   : > { %1721 = vmatprep.subr.bf16.mxu0 %v3315_v61  ;;  %1893 = vmatprep.subr.bf16.mxu1 %v3318_v62  ;;  %v3407_v61 = vld [vmem:[%s4480_s3 + $0x160] ss:$8 sps:$4 sm:$0xff]   ;;  %v3412_v62 = vld [vmem:[%s4480_s3 + $0x174] ss:$8 sps:$4 sm:$0xff]  }
  0xc7   : > { %1722 = vmatpush1.bf16.msra.mxu0 %v3313_v63  ;;  %1894 = vmatpush1.bf16.msra.mxu1 %v3316_v0  ;;  %v3410_v63 = vld [vmem:[%s4480_s3 + $0x170] ss:$8 sps:$4 sm:$0xff]   ;;  %v3415_v0 = vld [vmem:[%s4480_s3 + $0x184] ss:$8 sps:$4 sm:$0xff]  }
  0xc8   : > { %1723 = vmatprep.subr.bf16.mxu0 %v3321_v1  ;;  %1895 = vmatprep.subr.bf16.mxu1 %v3324_v2  ;;  %v3413_v1 = vld [vmem:[%s4480_s3 + $0x180] ss:$8 sps:$4 sm:$0xff]   ;;  %v548_v2 = vlaneseq }
  0xcb   : > { %1724 = vmatpush1.bf16.msra.mxu0 %v3319_v3  ;;  %1896 = vmatpush1.bf16.msra.mxu1 %v3322_v4 }
  0xcc   : > { %1736 = vmatprep.subr.bf16.mxu0 %v3330_v5  ;;  %2322 = vmatprep.subr.bf16.mxu1 %v3373_v6  ;;  %v4360_v6 = vshrl.u32 %v548_v2, 7 }
  0xce   : > { %1726 = vmatmul.mubr.bf16.vlgmr.msra.gmra.mrb[0].mxu0 %v3325_v7  ;;  %1898 = vmatmul.mubr.bf16.vlgmr.msra.gmra.mrb[0].mxu1 %v3325_v7 }
  0xcf   : > { %1737 = vmatpush1.bf16.msra.mxu0 %v3328_v8  ;;  %1768 = vmatprep.mubr.bf16.mxu0 %v3490_v13  ;;  %v550_v8 = vsub.s32 0, %v4360_v6 }
  0xd0   : > { %1738 = vmatprep.subr.bf16.mxu0 %v3333_v9  ;;  %2323 = vmatpush1.bf16.msra.mxu1 %v3371_v10  ;;  %v554_v9 = vsub.s32 1, %v4360_v6  ;;  %v546_v10 = vld [vmem:[%s4479_s2] sm:$0xf] }
  0xd1   : > { %2324 = vmatprep.subr.bf16.mxu1 %v3379_v11  ;;  %v551_v11 = vrot.slane %v546_v10, %v550_v8 }
  0xd3   : > { %1739 = vmatpush1.bf16.msra.mxu0 %v3331_v12  ;;  %v555_v12 = vrot.slane %v546_v10, %v554_v9 }
  0xd4   : > { %1908 = vmatprep.subr.bf16.mxu0 %v3337_v14  ;;  %2325 = vmatpush1.bf16.msra.mxu1 %v3377_v15  ;;  %v558_v14 = vsub.s32 2, %v4360_v6  ;;  %v562_v15 = vsub.s32 3, %v4360_v6  ;;  %v3491_v6 = vmov 0.0  }
  0xd5   : > { %2326 = vmatprep.subr.bf16.mxu1 %v3385_v43 }
  0xd8   : > { %2327 = vmatpush1.bf16.msra.mxu1 %v3383_v45 }
  0xd9   : > { %2328 = vmatprep.subr.bf16.mxu1 %v3391_v49 }
  0xda   : > { %2856 = vmatmul.mubr.msk.bf16.vlgmr.msra.gmra.mrb[0].mxu0 %vm1603_vm0, %v3334_v16 }
  0xdb   : > { %1909 = vmatpush1.bf16.msra.mxu0 %v3335_v17  ;;  %1940 = vmatprep.mubr.bf16.mxu0 %v3490_v13 }
  0xdc   : > { %1910 = vmatprep.subr.bf16.mxu0 %v3340_v18  ;;  %2329 = vmatpush1.bf16.msra.mxu1 %v3389_v48 }
  0xdd   : > { %2330 = vmatprep.subr.bf16.mxu1 %v3397_v51  ;;  %v3417_v51 = vld [vmem:[%s4482_s5 + $0x8] sm:$0xff]  }
  0xdf   : > { %1911 = vmatpush1.bf16.msra.mxu0 %v3338_v19 }
  0xe0   : > { %2279 = vmatprep.subr.bf16.mxu0 %v3343_v20  ;;  %2331 = vmatpush1.bf16.msra.mxu1 %v3395_v53  ;;  %v3419_v53 = vld [vmem:[%s4482_s5 + $0x18] sm:$0xff]  }
  0xe1   : > { %2332 = vmatprep.subr.bf16.mxu1 %v3403_v55  ;;  %v3421_v55 = vld [vmem:[%s4482_s5 + $0x28] sm:$0xff]  }
  0xe2   : > { %2857 = vmatmul.mubr.msk.bf16.vlgmr.msra.gmra.mrb[4].mxu0 %vm1603_vm0, %v3334_v16 }
  0xe3   : > { %2280 = vmatpush1.bf16.msra.mxu0 %v3341_v21  ;;  %v559_v21 = vrot.slane %v546_v10, %v558_v14 }
  0xe4   : > { %2281 = vmatprep.subr.bf16.mxu0 %v3346_v22  ;;  %2333 = vmatpush1.bf16.msra.mxu1 %v3401_v57  ;;  %v3423_v57 = vld [vmem:[%s4482_s5 + $0x38] sm:$0xff]  }
  0xe5   : > { %2334 = vmatprep.subr.bf16.mxu1 %v3409_v59  ;;  %v2013_v59 = vld [vmem:[%s4481_s4] sm:$0x3] }
  0xe7   : > { %2282 = vmatpush1.bf16.msra.mxu0 %v3344_v23 }
  0xe8   : > { %2283 = vmatprep.subr.bf16.mxu0 %v3349_v24  ;;  %2335 = vmatpush1.bf16.msra.mxu1 %v3407_v61  ;;  %v563_v24 = vrot.slane %v546_v10, %v562_v15 }
  0xe9   : > { %2336 = vmatprep.subr.bf16.mxu1 %v3412_v62 }
  0xeb   : > { %2284 = vmatpush1.bf16.msra.mxu0 %v3347_v25 }
  0xec   : > { %2285 = vmatprep.subr.bf16.mxu0 %v3352_v26  ;;  %2337 = vmatpush1.bf16.msra.mxu1 %v3410_v63 }
  0xed   : > { %2338 = vmatprep.subr.bf16.mxu1 %v3415_v0 }
  0xef   : > { %2286 = vmatpush1.bf16.msra.mxu0 %v3350_v27 }
  0xf0   : > { %2287 = vmatprep.subr.bf16.mxu0 %v3355_v28  ;;  %2339 = vmatpush1.bf16.msra.mxu1 %v3413_v1 }
  0xf1   : > { %2453 = vmatprep.subr.bf16.mxu1 %v3490_v13 }
  0xf3   : > { %2288 = vmatpush1.bf16.msra.mxu0 %v3353_v29 }
  0xf4   : > { %2289 = vmatprep.subr.bf16.mxu0 %v3358_v30 }
  0xf7   : > { %2290 = vmatpush1.bf16.msra.mxu0 %v3356_v31 }
  0xf8   : > { %2291 = vmatprep.subr.bf16.mxu0 %v3361_v32 }
  0xfb   : > { %2292 = vmatpush1.bf16.msra.mxu0 %v3359_v33 }
  0xfc   : > { %2293 = vmatprep.subr.bf16.mxu0 %v3364_v34 }
  0xff   : > { %2294 = vmatpush1.bf16.msra.mxu0 %v3362_v35 }
 0x100   : > { %2295 = vmatprep.subr.bf16.mxu0 %v3367_v36 }
 0x103   : > { %2296 = vmatpush1.bf16.msra.mxu0 %v3365_v37 }
 0x104   : > { %2297 = vmatprep.subr.bf16.mxu0 %v3370_v38 }
 0x107   : > { %2298 = vmatpush1.bf16.msra.mxu0 %v3368_v39 }
 0x108   : > { %2299 = vmatprep.subr.bf16.mxu0 %v3376_v40 }
 0x10b   : > { %2300 = vmatpush1.bf16.msra.mxu0 %v3374_v41 }
 0x10c   : > { %2301 = vmatprep.subr.bf16.mxu0 %v3382_v42 }
 0x10f   : > { %2302 = vmatpush1.bf16.msra.mxu0 %v3380_v44 }
 0x110   : > { %2303 = vmatprep.subr.bf16.mxu0 %v3388_v47 }
 0x113   : > { %2304 = vmatpush1.bf16.msra.mxu0 %v3386_v46 }
 0x114   : > { %2305 = vmatprep.subr.bf16.mxu0 %v3394_v50  ;;  %v3416_v50 = vld [vmem:[%s4482_s5] sm:$0xff]  }
 0x117   : > { %2306 = vmatpush1.bf16.msra.mxu0 %v3392_v52  ;;  %v3418_v52 = vld [vmem:[%s4482_s5 + $0x10] sm:$0xff]  }
 0x118   : > { %2307 = vmatprep.subr.bf16.mxu0 %v3400_v54  ;;  %v3420_v54 = vld [vmem:[%s4482_s5 + $0x20] sm:$0xff]  }
 0x11b   : > { %2308 = vmatpush1.bf16.msra.mxu0 %v3398_v56  ;;  %v3422_v56 = vld [vmem:[%s4482_s5 + $0x30] sm:$0xff]  }
 0x11c   : > { %2309 = vmatprep.subr.bf16.mxu0 %v3406_v58  ;;  %v3424_v58 = vld [vmem:[%s4482_s5 + $0x40] sm:$0xff]  }
 0x11f   : > { %2310 = vmatpush1.bf16.msra.mxu0 %v3404_v60  ;;  %v2018_v60 = vrot.slane %v2013_v59, %v550_v8 }
 0x1a1   : > { %v1899_v3 = vpop.f32.mrb[0].mxu1 }
 0x1a2   : > { %v1901_v4 = vpop.f32.mrb[1].mxu1  ;;  %v2950_v30 = vadd.f32 %v1899_v3, %v559_v21 }
 0x1a3   : > { %v1903_v5 = vpop.f32.mrb[2].mxu1  ;;  %v2952_v32 = vadd.f32 %v1901_v4, %v563_v24 }
 0x1a4   : > { %v1905_v7 = vpop.f32.mrb[3].mxu1  ;;  %v2954_v35 = vadd.f32 %v1903_v5, %v559_v21 }
 0x1a5   : > { %v2956_v38 = vadd.f32 %v1905_v7, %v563_v24 }
 0x1ad   : > { %v1770_v16 = vpop.f32.mrb[0].mxu0 }
 0x1ae   : > { %v2946_v17 = vadd.f32 %v1770_v16, %v551_v11  ;;  %v1772_v18 = vpop.f32.mrb[1].mxu0 }
 0x1af   : > { %v2947_v19 = vadd.f32 %v1772_v18, %v555_v12  ;;  %v1774_v20 = vpop.f32.mrb[2].mxu0 }
 0x1b0   : > { %v2948_v22 = vadd.f32 %v1774_v20, %v551_v11  ;;  %v1776_v23 = vpop.f32.mrb[3].mxu0  ;;  %v1951_v26 = vmax.f32 %v2946_v17, 0.0 }
 0x1b1   : > { %v2949_v25 = vadd.f32 %v1776_v23, %v555_v12  ;;  %v1952_v28 = vmax.f32 %v2947_v19, 0.0 }
 0x1b2   : > { %v1955_v27 = vmax.f32 %v2948_v22, 0.0  ;;  %v2909_v22 = vld [vmem:[%s4483_s6] ss:$0 sm:$0xff] }
 0x1b3   : > { %v1956_v29 = vmax.f32 %v2949_v25, 0.0 }
 0x1b4   : > { %v1959_v31 = vpack.c.bf16 %v1955_v27, %v1951_v26 }
 0x1b5   : > { %v1960_v33 = vpack.c.bf16 %v1956_v29, %v1952_v28  ;;  %v1942_v34 = vpop.f32.mrb[4].mxu0 }
 0x1b6   : > { %v2951_v36 = vadd.f32 %v2950_v30, %v1942_v34  ;;  %v1944_v37 = vpop.f32.mrb[5].mxu0 }
 0x1b7   : > { %v2953_v39 = vadd.f32 %v2952_v32, %v1944_v37  ;;  %v1946_v40 = vpop.f32.mrb[6].mxu0  ;;  %2311 = vmatprep.mubr.bf16.mxu0 %v1960_v33  ;;  %v2920_v32 = vld [vmem:[%s4485_s8] ss:$0 sm:$0xff] }
 0x1b8   : > { %v2955_v41 = vadd.f32 %v2954_v35, %v1946_v40  ;;  %v1948_v42 = vpop.f32.mrb[7].mxu0  ;;  %2312 = vmatmul.mubr.bf16.vlgmr.msra.gmra.mrb[8].mxu0 %v1959_v31  ;;  %v1953_v44 = vmax.f32 %v2951_v36, 0.0 }
 0x1b9   : > { %v2957_v43 = vadd.f32 %v2956_v38, %v1948_v42  ;;  %v1954_v46 = vmax.f32 %v2953_v39, 0.0 }
 0x1ba   : > { %v1957_v45 = vmax.f32 %v2955_v41, 0.0 }
 0x1bb   : > { %v1958_v47 = vmax.f32 %v2957_v43, 0.0 }
 0x1bc   : > { %v1961_v48 = vpack.c.bf16 %v1957_v45, %v1953_v44 }
 0x1bd   : > { %v1962_v49 = vpack.c.bf16 %v1958_v47, %v1954_v46 }
 0x1bf   : > { %2908 = vmatprep.mubr.msk.bf16.mxu1 %vm2275_vm1, %v1962_v49 }
 0x1c0   : > { %2355 = vmatmul.mubr.bf16.vlgmr.msra.gmra.mrb[4].mxu1 %v1961_v48 }
 0x1c1   : > { %2454 = vmatpush1.bf16.msra.mxu1 %v3416_v50 }
 0x1c2   : > { %2455 = vmatprep.subr.bf16.mxu1 %v3490_v13 }
 0x1c5   : > { %2456 = vmatpush1.bf16.msra.mxu1 %v3417_v51 }
 0x1c6   : > { %2457 = vmatprep.subr.bf16.mxu1 %v3490_v13 }
 0x1c9   : > { %2458 = vmatpush1.bf16.msra.mxu1 %v3418_v52 }
 0x1ca   : > { %2459 = vmatprep.subr.bf16.mxu1 %v3490_v13 }
 0x1cd   : > { %2460 = vmatpush1.bf16.msra.mxu1 %v3419_v53 }
 0x1ce   : > { %2461 = vmatprep.subr.bf16.mxu1 %v3490_v13 }
 0x1d1   : > { %2462 = vmatpush1.bf16.msra.mxu1 %v3420_v54 }
 0x1d2   : > { %2463 = vmatprep.subr.bf16.mxu1 %v3490_v13 }
 0x1d5   : > { %2464 = vmatpush1.bf16.msra.mxu1 %v3421_v55 }
 0x1d6   : > { %2465 = vmatprep.subr.bf16.mxu1 %v3490_v13 }
 0x1d9   : > { %2466 = vmatpush1.bf16.msra.mxu1 %v3422_v56 }
 0x1da   : > { %2467 = vmatprep.subr.bf16.mxu1 %v3490_v13 }
 0x1dd   : > { %2468 = vmatpush1.bf16.msra.mxu1 %v3423_v57 }
 0x1de   : > { %2469 = vmatprep.subr.bf16.mxu1 %v3490_v13  ;;  %v2022_v13 = vrot.slane %v2013_v59, %v554_v9  ;;  %v3425_v9 = vld [vmem:[%s4484_s7] sm:$0xff]  }
 0x1e1   : > { %2470 = vmatpush1.bf16.msra.mxu1 %v3424_v58 }
 0x1e2   : > { %2940 = vmatprep.subr.bf16.mxu1 %v3491_v6 }
 0x28b   : > { %v2313_v61 = vpop.f32.mrb[8].mxu0 }
 0x28c   : > { %v2314_v62 = vadd.f32 %v2313_v61, %v2018_v60  ;;  %v2315_v63 = vpop.f32.mrb[9].mxu0 }
 0x28d   : > { %v2317_v0 = vpop.f32.mrb[10].mxu0  ;;  %v2316_v3 = vadd.f32 %v2315_v63, %v2022_v13 }
 0x28e   : > { %v2318_v1 = vadd.f32 %v2317_v0, %v2018_v60  ;;  %v2319_v2 = vpop.f32.mrb[11].mxu0 }
 0x28f   : > { %v2320_v10 = vadd.f32 %v2319_v2, %v2022_v13 }
 0x293   : > { %v2356_v4 = vpop.f32.mrb[4].mxu1 }
 0x294   : > { %v2357_v5 = vadd.f32 %v2356_v4, %v2314_v62  ;;  %v2358_v7 = vpop.f32.mrb[5].mxu1 }
 0x295   : > { %v2359_v11 = vadd.f32 %v2358_v7, %v2316_v3  ;;  %v2360_v12 = vpop.f32.mrb[6].mxu1 }
 0x296   : > { %v2361_v14 = vadd.f32 %v2360_v12, %v2318_v1  ;;  %v2362_v15 = vpop.f32.mrb[7].mxu1  ;;  %v2365_v8 = vmax.f32 %v2357_v5, 0.0 }
 0x297   : > { %v2363_v16 = vadd.f32 %v2362_v15, %v2320_v10  ;;  %v2366_v18 = vmax.f32 %v2359_v11, 0.0 }
 0x298   : > { %v2367_v17 = vmax.f32 %v2361_v14, 0.0 }
 0x299   : > { %v2368_v19 = vmax.f32 %v2363_v16, 0.0 }
 0x29a   : > { %v2369_v20 = vpack.c.bf16 %v2367_v17, %v2365_v8 }
 0x29b   : > { %v2370_v21 = vpack.c.bf16 %v2368_v19, %v2366_v18 }
 0x29d   : > { %2919 = vmatprep.mubr.msk.bf16.mxu1 %vm2275_vm1, %v2370_v21 }
 0x29e   : > { %2486 = vmatmul.mubr.bf16.vlgmr.msra.gmra.mrb[8].mxu1 %v2369_v20 }
 0x29f   : > { %2941 = vmatpush3.bf16.msra.mxu1 %v3425_v9  ;;  %2942 = vmatprep.mubr.msk.bf16.mxu1 %vm3492_vm2, %v3491_v6 }
 0x371   : > { %v2487_v23 = vpop.f32.mrb[8].mxu1 }
 0x372   : > { %v2488_v24 = vadd.f32 %v2909_v22, %v2487_v23  ;;  %v2489_v25 = vpop.f32.mrb[9].mxu1 }
 0x373   : > { %v2490_v26 = vpop.f32.mrb[10].mxu1 }
 0x374   : > { %v2491_v27 = vadd.f32 %v2909_v22, %v2490_v26  ;;  %v2492_v28 = vpop.f32.mrb[11].mxu1  ;;  %v2494_v29 = vmax.f32 %v2488_v24, 0.0 }
 0x376   : > { %v2495_v30 = vmax.f32 %v2491_v27, 0.0 }
 0x378   : > { %v2496_v31 = vpack.c.bf16 %v2495_v30, %v2494_v29 }
 0x37a   : > { %2943 = vmatmul.mubr.msk.bf16.vlgmr.msra.gmra.mrb[12].mxu1 %vm2275_vm1, %v2496_v31 }
 0x44d   : > { %v2549_v33 = vpop.f32.mrb[12].mxu1 }
 0x44e   : > { %v2944_v34 = vpop.f32.mrb[13].mxu1  ;;  %v2550_v36 = vadd.f32 %v2920_v32, %v2549_v33 }
 0x44f   : > { %v2552_v35 = vpop.f32.mrb[14].mxu1 }
 0x450   : > { %v2553_v37 = vadd.f32 %v2920_v32, %v2552_v35  ;;  %v2945_v38 = vpop.f32.mrb[15].mxu1 }
 0x452   : > { %v2936_v39 = vpack.c.bf16 %v2553_v37, %v2550_v36 }
 0x454   : > { %2937 = vst [vmem:[%s328_s23] sm:$0xff] %v2936_v39  }
 0x455   : > { %3439 = shalt.err (!%p3436_p3)
}
 0x456   : > { %s3440_s14 = scalar_lea.hbm %s4434_s28, 128  ;;  %s3444_s25 = scalar_lea.hbm %s4486_s9, 256 }
 0x457   : > { %p3441_p4 = scmp.ne.s32.totalorder %s4434_s28, %s3440_s14  ;;  %p3445_p9 = scmp.lt.u32.totalorder %s4434_s28, %s4486_s9 }
 0x458   : > { %p3446_p10 = scmp.lt.u32.totalorder %s3444_s25, %s3440_s14  ;;  %p3448_p12 = scmp.lt.u32.totalorder %s3440_s14, %s4434_s28 }
 0x459   : > { %p3442_p7 = pnand %p3441_p4, %p3584_p5 }
 0x45a   : > { %p3447_p11 = por %p3446_p10, %p3445_p9 }
 0x45b   : > { %p3443_p8 = pneg %p3442_p7 }
 0x45c   : > { %p3449_p13 = por %p3448_p12, %p3447_p11 }
 0x45e   : > { %p3450_p0 = pnand %p3449_p13, %p3443_p8 }
 0x460   : > { %3453 = shalt.err (!%p3450_p0)
}
 0x461   : > { %s3494_s29 = smov 64   ;;  %s3495_s13 = smov 4  }
 0x462   : > { %2987 = dma.vmem_to_hbm [thread:$0]  (%p3584_p5), %s4429_s24, 128, %s4434_s28, %s4436_s22, %s3494_s29, %s3494_s29, %s3495_s13  }
 0x463 PF: > { %p2993_p1 = scmp.ge.s32.totalorder %s3488_s12, 2  ;;  %s2595_s21 = sand.u32 1, %s3476_s30  }
 0x464   : > { %s2596_s16 = scalar_lea.sflag [#allocation3], %s2595_s21 }
 0x465   : > { %p2990_p2 = pnand %p2993_p1, %p3588_p6 }
 0x467   : > { %3471 = dma.done.wait (!%p2990_p2), %s2596_s16, 128  }
 0x468   : > { %3473 = vsyncadd (!%p2990_p2), %s2596_s16, 4294967168  ;;  %p19_p3 = scmp.ge.s32.totalorder %s3571_s15, 4   ;;  %s4489_s30 = smov %s3480_s10 }
 0x469   : > { %s4490_s10 = smov %s3484_s11  ;;  %s4491_s11 = smov %s3582_s18 }
 0x46a   : > { %s4492_s12 = smov %s3571_s15  ;;  %21 = sbr.rel (!%p19_p3) target bundleno = 3 (0x3), region = 91 }
 0x471   :  { %2601 = vsyncpa [#allocation3], 1 }
 0x472   :  { %2603 = vsyncpa [#allocation3 + $0x1], 1 }

// kernel: tpu_custom_call.1
= control target key start
LH: loop header
LB: loop body
LE: loop exit
PB: predicated region body
PF: predicated region fallthrough
CT: control target
= control target key end

     0   :  { %14 = vsyncpa [#allocation3], 0  ;;  %s4477_s0 = inlined_call_operand.vmem [shape: bf16[32,800], index: 0, kind: input, shape index: {}]   ;;  %s4478_s1 = inlined_call_operand.vmem [shape: bf16[800,400], index: 1, kind: input, shape index: {}]   ;;  %s4479_s2 = inlined_call_operand.vmem [shape: f32[1,400], index: 2, kind: input, shape index: {}]   ;;  %s4480_s3 = inlined_call_operand.vmem [shape: bf16[400,144], index: 3, kind: input, shape index: {}]   ;;  %s4481_s4 = inlined_call_operand.vmem [shape: f32[1,144], index: 4, kind: input, shape index: {}]   ;;  %s4482_s5 = inlined_call_operand.vmem [shape: bf16[144,16], index: 5, kind: input, shape index: {}]   ;;  %s4483_s6 = inlined_call_operand.vmem [shape: f32[1,16], index: 6, kind: input, shape index: {}]   ;;  %s4484_s7 = inlined_call_operand.vmem [shape: bf16[16,128], index: 7, kind: input, shape index: {}]   ;;  %s4485_s8 = inlined_call_operand.vmem [shape: f32[1,128], index: 8, kind: input, shape index: {}]   ;;  %s4486_s9 = inlined_call_operand.hbm [shape: bf16[32,128], index: 9, kind: output, shape index: {}]  }
   0x1   :  { %16 = vsyncpa [#allocation3 + $0x1], 0  ;;  %s3546_s30 = smov 0   ;;  %s3548_s10 = smov 0  }
   0x2   :  { %s3550_s11 = smov 0   ;;  %s3552_s12 = smov 0  }
   0x3 LB: > { %s3567_s13 = sadd.s32 4294967295, %s3488_s12   ;;  %s2642_s14 = sadd.s32 4294967294, %s3488_s12   ;;  %s3488_s12 = sphi %s3552_s12, %s4492_s12   ;;  %s3484_s11 = sphi %s3550_s11, %s4491_s11   ;;  %s3480_s10 = sphi %s3548_s10, %s4490_s10   ;;  %s3476_s30 = sphi %s3546_s30, %s4489_s30  }
   0x4   : > { %s3571_s15 = sadd.s32 1, %s3488_s12   ;;  %s223_s16 = sadd.s32 1, %s3484_s11 }
   0x5   : > { %s220_s17 = ssub.s32 %s3488_s12, %s3571_s15  ;;  %p233_p0 = scmp.ne.s32.totalorder %s3484_s11, %s3480_s10 }
   0x6   : > { %p221_p1 = scmp.eq.s32.totalorder %s220_s17, 0  ;;  %p234_p2 = scmp.eq.s32.totalorder %s3567_s13, 1 }
   0x7   : > { %p239_p3 = scmp.ne.s32.totalorder %s3480_s10, %s3476_s30  ;;  %p240_p4 = scmp.eq.s32.totalorder %s2642_s14, 1 }
   0x8   : > { %s3582_s18 = scalar_select %p221_p1, %s3484_s11, %s223_s16  }
   0x9   : > { %p3584_p5 = por %p234_p2, %p233_p0  ;;  %p3588_p6 = por %p240_p4, %p239_p3 }
   0xa   : > { %p2645_p7 = scmp.ge.s32.totalorder %s3488_s12, 1  ;;  %p292_p8 = scmp.lt.s32.totalorder %s3488_s12, 3 }
   0xc   : > { %p293_p9 = pnand %p2645_p7, %p292_p8 }
   0xd   : > { %v3031_v0 = vld [vmem:[%s4478_s1 + $0x4] ss:$16 sps:$4 sm:$0xff] (!%p293_p9)   ;;  %v3033_v1 = vld [vmem:[%s4478_s1 + $0xc] ss:$16 sps:$4 sm:$0xff] (!%p293_p9)   ;;  %v3035_v2 = vld [vmem:[%s4478_s1] ss:$16 sps:$4 sm:$0xff] (!%p293_p9)  }
   0xe   : > { %296 = sbr.rel (%p293_p9) target bundleno = 1123 (0x463), region = 56  ;;  %1607 = vmatprep.subr.bf16.mxu0 (!%p293_p9), %v3031_v0  ;;  %v3036_v3 = vld [vmem:[%s4478_s1 + $0x8] ss:$16 sps:$4 sm:$0xff] (!%p293_p9)   ;;  %1779 = vmatprep.subr.bf16.mxu1 (!%p293_p9), %v3033_v1  ;;  %v3037_v4 = vld [vmem:[%s4478_s1 + $0x24] ss:$16 sps:$4 sm:$0xff] (!%p293_p9)   ;;  %s2647_s21 = sshll.u32 (!%p293_p9), %s3567_s13, 1 }
   0xf   : > { %1608 = vmatpush1.bf16.msra.mxu0 (!%p293_p9), %v3035_v2  ;;  %1780 = vmatpush1.bf16.msra.mxu1 (!%p293_p9), %v3036_v3  ;;  %v3039_v5 = vld [vmem:[%s4478_s1 + $0x2c] ss:$16 sps:$4 sm:$0xff] (!%p293_p9)   ;;  %v3041_v6 = vld [vmem:[%s4478_s1 + $0x20] ss:$16 sps:$4 sm:$0xff] (!%p293_p9)   ;;  %v3042_v7 = vld [vmem:[%s4478_s1 + $0x28] ss:$16 sps:$4 sm:$0xff] (!%p293_p9)  }
  0x10   : > { %1609 = vmatprep.subr.bf16.mxu0 (!%p293_p9), %v3037_v4  ;;  %1781 = vmatprep.subr.bf16.mxu1 (!%p293_p9), %v3039_v5  ;;  %v3043_v8 = vld [vmem:[%s4478_s1 + $0x44] ss:$16 sps:$4 sm:$0xff] (!%p293_p9)   ;;  %v3045_v9 = vld [vmem:[%s4478_s1 + $0x4c] ss:$16 sps:$4 sm:$0xff] (!%p293_p9)   ;;  %v3047_v10 = vld [vmem:[%s4478_s1 + $0x40] ss:$16 sps:$4 sm:$0xff] (!%p293_p9)  }
  0x11   : > { %v3048_v11 = vld [vmem:[%s4478_s1 + $0x48] ss:$16 sps:$4 sm:$0xff] (!%p293_p9)   ;;  %v3049_v12 = vld [vmem:[%s4478_s1 + $0x64] ss:$16 sps:$4 sm:$0xff] (!%p293_p9)   ;;  %v3051_v13 = vld [vmem:[%s4478_s1 + $0x6c] ss:$16 sps:$4 sm:$0xff] (!%p293_p9)  }
  0x12   : > { %v3053_v14 = vld [vmem:[%s4478_s1 + $0x60] ss:$16 sps:$4 sm:$0xff] (!%p293_p9)   ;;  %v3054_v15 = vld [vmem:[%s4478_s1 + $0x68] ss:$16 sps:$4 sm:$0xff] (!%p293_p9)   ;;  %v3055_v16 = vld [vmem:[%s4478_s1 + $0x84] ss:$16 sps:$4 sm:$0xff] (!%p293_p9)  }
  0x13   : > { %1610 = vmatpush1.bf16.msra.mxu0 (!%p293_p9), %v3041_v6  ;;  %1782 = vmatpush1.bf16.msra.mxu1 (!%p293_p9), %v3042_v7  ;;  %v3057_v17 = vld [vmem:[%s4478_s1 + $0x8c] ss:$16 sps:$4 sm:$0xff] (!%p293_p9)   ;;  %v3059_v18 = vld [vmem:[%s4478_s1 + $0x80] ss:$16 sps:$4 sm:$0xff] (!%p293_p9)   ;;  %v3060_v19 = vld [vmem:[%s4478_s1 + $0x88] ss:$16 sps:$4 sm:$0xff] (!%p293_p9)  }
  0x14   : > { %1611 = vmatprep.subr.bf16.mxu0 (!%p293_p9), %v3043_v8  ;;  %1783 = vmatprep.subr.bf16.mxu1 (!%p293_p9), %v3045_v9  ;;  %v3061_v20 = vld [vmem:[%s4478_s1 + $0xa4] ss:$16 sps:$4 sm:$0xff] (!%p293_p9)   ;;  %v3063_v21 = vld [vmem:[%s4478_s1 + $0xac] ss:$16 sps:$4 sm:$0xff] (!%p293_p9)   ;;  %v3065_v22 = vld [vmem:[%s4478_s1 + $0xa0] ss:$16 sps:$4 sm:$0xff] (!%p293_p9)  }
  0x15   : > { %v3066_v23 = vld [vmem:[%s4478_s1 + $0xa8] ss:$16 sps:$4 sm:$0xff]   ;;  %v3067_v24 = vld [vmem:[%s4478_s1 + $0xc4] ss:$16 sps:$4 sm:$0xff]   ;;  %v3069_v25 = vld [vmem:[%s4478_s1 + $0xcc] ss:$16 sps:$4 sm:$0xff]  }
  0x16   : > { %v3071_v26 = vld [vmem:[%s4478_s1 + $0xc0] ss:$16 sps:$4 sm:$0xff]   ;;  %v3072_v27 = vld [vmem:[%s4478_s1 + $0xc8] ss:$16 sps:$4 sm:$0xff]   ;;  %v3073_v28 = vld [vmem:[%s4478_s1 + $0xe4] ss:$16 sps:$4 sm:$0xff]  }
  0x17   : > { %1612 = vmatpush1.bf16.msra.mxu0 %v3047_v10  ;;  %1784 = vmatpush1.bf16.msra.mxu1 %v3048_v11  ;;  %v3075_v29 = vld [vmem:[%s4478_s1 + $0xec] ss:$16 sps:$4 sm:$0xff]   ;;  %v3077_v30 = vld [vmem:[%s4478_s1 + $0xe0] ss:$16 sps:$4 sm:$0xff]   ;;  %v3078_v31 = vld [vmem:[%s4478_s1 + $0xe8] ss:$16 sps:$4 sm:$0xff]  }
  0x18   : > { %1613 = vmatprep.subr.bf16.mxu0 %v3049_v12  ;;  %1785 = vmatprep.subr.bf16.mxu1 %v3051_v13  ;;  %v3079_v32 = vld [vmem:[%s4478_s1 + $0x104] ss:$16 sps:$4 sm:$0xff]   ;;  %p330_p10 = scmp.lt.s32.totalorder %s2647_s21, 3  ;;  %v3081_v33 = vld [vmem:[%s4478_s1 + $0x10c] ss:$16 sps:$4 sm:$0xff]   ;;  %vm1603_vm0 = vcmask 261120  }
  0x19   : > { %v3083_v34 = vld [vmem:[%s4478_s1 + $0x100] ss:$16 sps:$4 sm:$0xff]   ;;  %v3084_v35 = vld [vmem:[%s4478_s1 + $0x108] ss:$16 sps:$4 sm:$0xff]   ;;  %v3085_v36 = vld [vmem:[%s4478_s1 + $0x124] ss:$16 sps:$4 sm:$0xff]  }
  0x1a   : > { %s4494_s21 = smov (!%p330_p10, %s2647_s21), 3  ;;  %v3087_v37 = vld [vmem:[%s4478_s1 + $0x12c] ss:$16 sps:$4 sm:$0xff]   ;;  %v3089_v38 = vld [vmem:[%s4478_s1 + $0x120] ss:$16 sps:$4 sm:$0xff]   ;;  %vm2275_vm1 = vcmask 130048  }
  0x1b   : > { %1614 = vmatpush1.bf16.msra.mxu0 %v3053_v14  ;;  %1786 = vmatpush1.bf16.msra.mxu1 %v3054_v15  ;;  %v3090_v39 = vld [vmem:[%s4478_s1 + $0x128] ss:$16 sps:$4 sm:$0xff]   ;;  %v3091_v40 = vld [vmem:[%s4478_s1 + $0x144] ss:$16 sps:$4 sm:$0xff]   ;;  %s2986_s22 = smul.u32 28, %s4494_s21  ;;  %vm3492_vm2 = vmmov 0  }
  0x1c   : > { %1615 = vmatprep.subr.bf16.mxu0 %v3055_v16  ;;  %1787 = vmatprep.subr.bf16.mxu1 %v3057_v17  ;;  %v3093_v41 = vld [vmem:[%s4478_s1 + $0x14c] ss:$16 sps:$4 sm:$0xff]   ;;  %v3095_v42 = vld [vmem:[%s4478_s1 + $0x140] ss:$16 sps:$4 sm:$0xff]   ;;  %v3096_v43 = vld [vmem:[%s4478_s1 + $0x148] ss:$16 sps:$4 sm:$0xff]  }
  0x1d   : > { %v3097_v44 = vld [vmem:[%s4478_s1 + $0x164] ss:$16 sps:$4 sm:$0xff]   ;;  %s3733_s17 = scalar_lea.vmem %s4477_s0, %s2986_s22  ;;  %v3099_v45 = vld [vmem:[%s4478_s1 + $0x16c] ss:$16 sps:$4 sm:$0xff]   ;;  %v3101_v46 = vld [vmem:[%s4478_s1 + $0x160] ss:$16 sps:$4 sm:$0xff]  }
  0x1e   : > { %v3102_v47 = vld [vmem:[%s4478_s1 + $0x168] ss:$16 sps:$4 sm:$0xff]   ;;  %v3129_v48 = vld [vmem:[%s3733_s17 + $0x4] ss:$28 sps:$4 sm:$0xff]   ;;  %v3105_v50 = vld [vmem:[%s4478_s1 + $0x18c] ss:$16 sps:$4 sm:$0xff]  }
  0x1f   : > { %1616 = vmatpush1.bf16.msra.mxu0 %v3059_v18  ;;  %1788 = vmatpush1.bf16.msra.mxu1 %v3060_v19  ;;  %v3103_v49 = vld [vmem:[%s4478_s1 + $0x184] ss:$16 sps:$4 sm:$0xff]   ;;  %v3107_v51 = vld [vmem:[%s4478_s1 + $0x180] ss:$16 sps:$4 sm:$0xff]   ;;  %v3108_v52 = vld [vmem:[%s4478_s1 + $0x188] ss:$16 sps:$4 sm:$0xff]  }
  0x20   : > { %1617 = vmatprep.subr.bf16.mxu0 %v3061_v20  ;;  %1789 = vmatprep.subr.bf16.mxu1 %v3063_v21  ;;  %v3109_v53 = vld [vmem:[%s4478_s1 + $0x1a4] ss:$16 sps:$4 sm:$0xff]   ;;  %v3111_v54 = vld [vmem:[%s4478_s1 + $0x1ac] ss:$16 sps:$4 sm:$0xff]   ;;  %v3113_v55 = vld [vmem:[%s4478_s1 + $0x1a0] ss:$16 sps:$4 sm:$0xff]  }
  0x21   : > { %1639 = vmatprep.mubr.bf16.mxu0 %v3129_v48  ;;  %1811 = vmatprep.mubr.bf16.mxu1 %v3129_v48  ;;  %v3114_v56 = vld [vmem:[%s4478_s1 + $0x1a8] ss:$16 sps:$4 sm:$0xff]   ;;  %v3115_v57 = vld [vmem:[%s4478_s1 + $0x1c4] ss:$16 sps:$4 sm:$0xff]   ;;  %v3117_v58 = vld [vmem:[%s4478_s1 + $0x1cc] ss:$16 sps:$4 sm:$0xff]  }
  0x22   : > { %v3119_v59 = vld [vmem:[%s4478_s1 + $0x1c0] ss:$16 sps:$4 sm:$0xff]   ;;  %v3120_v60 = vld [vmem:[%s4478_s1 + $0x1c8] ss:$16 sps:$4 sm:$0xff]   ;;  %v3121_v61 = vld [vmem:[%s4478_s1 + $0x1e4] ss:$16 sps:$4 sm:$0xff]  }
  0x23   : > { %1618 = vmatpush1.bf16.msra.mxu0 %v3065_v22  ;;  %1790 = vmatpush1.bf16.msra.mxu1 %v3066_v23  ;;  %v3123_v62 = vld [vmem:[%s4478_s1 + $0x1ec] ss:$16 sps:$4 sm:$0xff]   ;;  %v3125_v63 = vld [vmem:[%s4478_s1 + $0x1e0] ss:$16 sps:$4 sm:$0xff]   ;;  %v3126_v0 = vld [vmem:[%s4478_s1 + $0x1e8] ss:$16 sps:$4 sm:$0xff]  }
  0x24   : > { %1619 = vmatprep.subr.bf16.mxu0 %v3067_v24  ;;  %1791 = vmatprep.subr.bf16.mxu1 %v3069_v25  ;;  %v3132_v1 = vld [vmem:[%s4478_s1 + $0x204] ss:$16 sps:$4 sm:$0xff]   ;;  %v3135_v2 = vld [vmem:[%s4478_s1 + $0x20c] ss:$16 sps:$4 sm:$0xff]   ;;  %v3130_v4 = vld [vmem:[%s4478_s1 + $0x200] ss:$16 sps:$4 sm:$0xff]  }
  0x25   : > { %v3127_v3 = vld [vmem:[%s3733_s17] ss:$28 sps:$4 sm:$0xff]   ;;  %v3133_v5 = vld [vmem:[%s4478_s1 + $0x208] ss:$16 sps:$4 sm:$0xff]   ;;  %v3138_v6 = vld [vmem:[%s4478_s1 + $0x224] ss:$16 sps:$4 sm:$0xff]  }
  0x26   : > { %v3141_v7 = vld [vmem:[%s4478_s1 + $0x22c] ss:$16 sps:$4 sm:$0xff]   ;;  %v3136_v8 = vld [vmem:[%s4478_s1 + $0x220] ss:$16 sps:$4 sm:$0xff]   ;;  %v3139_v9 = vld [vmem:[%s4478_s1 + $0x228] ss:$16 sps:$4 sm:$0xff]  }
  0x27   : > { %1620 = vmatpush1.bf16.msra.mxu0 %v3071_v26  ;;  %1792 = vmatpush1.bf16.msra.mxu1 %v3072_v27  ;;  %v3144_v10 = vld [vmem:[%s4478_s1 + $0x244] ss:$16 sps:$4 sm:$0xff]   ;;  %v3147_v11 = vld [vmem:[%s4478_s1 + $0x24c] ss:$16 sps:$4 sm:$0xff]   ;;  %v3142_v12 = vld [vmem:[%s4478_s1 + $0x240] ss:$16 sps:$4 sm:$0xff]  }
  0x28   : > { %1621 = vmatprep.subr.bf16.mxu0 %v3073_v28  ;;  %1793 = vmatprep.subr.bf16.mxu1 %v3075_v29  ;;  %v3145_v13 = vld [vmem:[%s4478_s1 + $0x248] ss:$16 sps:$4 sm:$0xff]   ;;  %v3150_v14 = vld [vmem:[%s4478_s1 + $0x264] ss:$16 sps:$4 sm:$0xff]   ;;  %v3153_v15 = vld [vmem:[%s4478_s1 + $0x26c] ss:$16 sps:$4 sm:$0xff]  }
  0x29   : > { %v3148_v16 = vld [vmem:[%s4478_s1 + $0x260] ss:$16 sps:$4 sm:$0xff]   ;;  %v3151_v17 = vld [vmem:[%s4478_s1 + $0x268] ss:$16 sps:$4 sm:$0xff]   ;;  %v3156_v18 = vld [vmem:[%s4478_s1 + $0x284] ss:$16 sps:$4 sm:$0xff]  }
  0x2a   : > { %v3159_v19 = vld [vmem:[%s4478_s1 + $0x28c] ss:$16 sps:$4 sm:$0xff]   ;;  %v3154_v20 = vld [vmem:[%s4478_s1 + $0x280] ss:$16 sps:$4 sm:$0xff]   ;;  %v3157_v21 = vld [vmem:[%s4478_s1 + $0x288] ss:$16 sps:$4 sm:$0xff]  }
  0x2b   : > { %1622 = vmatpush1.bf16.msra.mxu0 %v3077_v30  ;;  %1794 = vmatpush1.bf16.msra.mxu1 %v3078_v31  ;;  %v3162_v22 = vld [vmem:[%s4478_s1 + $0x2a4] ss:$16 sps:$4 sm:$0xff]   ;;  %v3165_v23 = vld [vmem:[%s4478_s1 + $0x2ac] ss:$16 sps:$4 sm:$0xff]   ;;  %v3160_v24 = vld [vmem:[%s4478_s1 + $0x2a0] ss:$16 sps:$4 sm:$0xff]  }
  0x2c   : > { %1623 = vmatprep.subr.bf16.mxu0 %v3079_v32  ;;  %1795 = vmatprep.subr.bf16.mxu1 %v3081_v33  ;;  %v3163_v25 = vld [vmem:[%s4478_s1 + $0x2a8] ss:$16 sps:$4 sm:$0xff]   ;;  %v3168_v26 = vld [vmem:[%s4478_s1 + $0x2c4] ss:$16 sps:$4 sm:$0xff]   ;;  %v3171_v27 = vld [vmem:[%s4478_s1 + $0x2cc] ss:$16 sps:$4 sm:$0xff]  }
  0x2d   : > { %v3166_v28 = vld [vmem:[%s4478_s1 + $0x2c0] ss:$16 sps:$4 sm:$0xff]   ;;  %v3169_v29 = vld [vmem:[%s4478_s1 + $0x2c8] ss:$16 sps:$4 sm:$0xff]   ;;  %v3174_v31 = vld [vmem:[%s4478_s1 + $0x2e4] ss:$16 sps:$4 sm:$0xff]  }
  0x2e   : > { %v3228_v30 = vld [vmem:[%s3733_s17 + $0xc] ss:$28 sps:$4 sm:$0xff]   ;;  %v3172_v33 = vld [vmem:[%s4478_s1 + $0x2e0] ss:$16 sps:$4 sm:$0xff]   ;;  %s326_s14 = sand.u32 1, %s3480_s10   ;;  %s2932_s25 = sshll.u32 %s3567_s13, 7 }
  0x2f   : > { %1624 = vmatpush1.bf16.msra.mxu0 %v3083_v34  ;;  %1796 = vmatpush1.bf16.msra.mxu1 %v3084_v35  ;;  %v3177_v32 = vld [vmem:[%s4478_s1 + $0x2ec] ss:$16 sps:$4 sm:$0xff]   ;;  %v3175_v34 = vld [vmem:[%s4478_s1 + $0x2e8] ss:$16 sps:$4 sm:$0xff]   ;;  %v3180_v35 = vld [vmem:[%s4478_s1 + $0x304] ss:$16 sps:$4 sm:$0xff]   ;;  %s4434_s28 = scalar_lea.hbm %s4486_s9, %s2932_s25 }
  0x30   : > { %1625 = vmatprep.subr.bf16.mxu0 %v3085_v36  ;;  %1797 = vmatprep.subr.bf16.mxu1 %v3087_v37  ;;  %v3183_v36 = vld [vmem:[%s4478_s1 + $0x30c] ss:$16 sps:$4 sm:$0xff]   ;;  %v3178_v37 = vld [vmem:[%s4478_s1 + $0x300] ss:$16 sps:$4 sm:$0xff]   ;;  %s2646_s21 = sshll.u32 %s326_s14, 3  ;;  %s4436_s22 = scalar_lea.sflag [#allocation3], %s326_s14 }
  0x31   : > { %v3201_v48 = vld [vmem:[%s4478_s1 + $0x36c] ss:$16 sps:$4 sm:$0xff]   ;;  %s328_s23 = scalar_lea.vmem [#allocation2], %s2646_s21  ;;  %s3493_s13 = smov [#allocation2]  }
  0x32   : > { %s2580_s24 = sshll.u32 %s328_s23, 4  ;;  %s3430_s21 = sshll.u32 %s3493_s13, 4  ;;  %s4429_s24 = int_to_ptr.vmem [resolvable:$true] %s2580_s24  ;;  %s3431_s21 = int_to_ptr.vmem [resolvable:$false] %s3430_s21 }
  0x33   : > { %1626 = vmatpush1.bf16.msra.mxu0 %v3089_v38  ;;  %1798 = vmatpush1.bf16.msra.mxu1 %v3090_v39  ;;  %v3181_v38 = vld [vmem:[%s4478_s1 + $0x308] ss:$16 sps:$4 sm:$0xff]   ;;  %v3186_v39 = vld [vmem:[%s4478_s1 + $0x324] ss:$16 sps:$4 sm:$0xff]   ;;  %s3426_s29 = scalar_lea.vmem %s4429_s24, 128  ;;  %s3432_s16 = scalar_lea.vmem %s3431_s21, 256 }
  0x34   : > { %1627 = vmatprep.subr.bf16.mxu0 %v3091_v40  ;;  %1799 = vmatprep.subr.bf16.mxu1 %v3093_v41  ;;  %v3189_v40 = vld [vmem:[%s4478_s1 + $0x32c] ss:$16 sps:$4 sm:$0xff]   ;;  %v3184_v41 = vld [vmem:[%s4478_s1 + $0x320] ss:$16 sps:$4 sm:$0xff]   ;;  %p3427_p11 = scmp.ne.s32.totalorder %s4429_s24, %s3426_s29  ;;  %p3433_p0 = scmp.lt.s32.totalorder %s4429_s24, %s3431_s21 }
  0x35   : > { %p3434_p1 = scmp.lt.s32.totalorder %s3432_s16, %s3426_s29 }
  0x36   : > { %p3428_p12 = pnand %p3427_p11, %p3584_p5 }
  0x37   : > { %1628 = vmatpush1.bf16.msra.mxu0 %v3095_v42  ;;  %1800 = vmatpush1.bf16.msra.mxu1 %v3096_v43  ;;  %v3187_v42 = vld [vmem:[%s4478_s1 + $0x328] ss:$16 sps:$4 sm:$0xff]   ;;  %v3192_v43 = vld [vmem:[%s4478_s1 + $0x344] ss:$16 sps:$4 sm:$0xff]   ;;  %p3435_p2 = por %p3434_p1, %p3433_p0 }
  0x38   : > { %1629 = vmatprep.subr.bf16.mxu0 %v3097_v44  ;;  %1801 = vmatprep.subr.bf16.mxu1 %v3099_v45  ;;  %v3195_v44 = vld [vmem:[%s4478_s1 + $0x34c] ss:$16 sps:$4 sm:$0xff]   ;;  %v3190_v45 = vld [vmem:[%s4478_s1 + $0x340] ss:$16 sps:$4 sm:$0xff]   ;;  %p3429_p13 = pneg %p3428_p12 }
  0x3a   : > { %p3436_p3 = pnand %p3435_p2, %p3429_p13 }
  0x3b   : > { %1630 = vmatpush1.bf16.msra.mxu0 %v3101_v46  ;;  %1802 = vmatpush1.bf16.msra.mxu1 %v3102_v47  ;;  %v3193_v46 = vld [vmem:[%s4478_s1 + $0x348] ss:$16 sps:$4 sm:$0xff]   ;;  %v3198_v47 = vld [vmem:[%s4478_s1 + $0x364] ss:$16 sps:$4 sm:$0xff]  }
  0x3c   : > { %1631 = vmatprep.subr.bf16.mxu0 %v3103_v49  ;;  %1803 = vmatprep.subr.bf16.mxu1 %v3105_v50  ;;  %v3196_v49 = vld [vmem:[%s4478_s1 + $0x360] ss:$16 sps:$4 sm:$0xff]   ;;  %v3199_v50 = vld [vmem:[%s4478_s1 + $0x368] ss:$16 sps:$4 sm:$0xff]  }
  0x3f   : > { %1632 = vmatpush1.bf16.msra.mxu0 %v3107_v51  ;;  %1804 = vmatpush1.bf16.msra.mxu1 %v3108_v52  ;;  %v3204_v51 = vld [vmem:[%s4478_s1 + $0x384] ss:$16 sps:$4 sm:$0xff]   ;;  %v3207_v52 = vld [vmem:[%s4478_s1 + $0x38c] ss:$16 sps:$4 sm:$0xff]  }
  0x40   : > { %1633 = vmatprep.subr.bf16.mxu0 %v3109_v53  ;;  %1805 = vmatprep.subr.bf16.mxu1 %v3111_v54  ;;  %v3202_v53 = vld [vmem:[%s4478_s1 + $0x380] ss:$16 sps:$4 sm:$0xff]   ;;  %v3205_v54 = vld [vmem:[%s4478_s1 + $0x388] ss:$16 sps:$4 sm:$0xff]  }
  0x43   : > { %1634 = vmatpush1.bf16.msra.mxu0 %v3113_v55  ;;  %1806 = vmatpush1.bf16.msra.mxu1 %v3114_v56  ;;  %v3210_v55 = vld [vmem:[%s4478_s1 + $0x3a4] ss:$16 sps:$4 sm:$0xff]   ;;  %v3213_v56 = vld [vmem:[%s4478_s1 + $0x3ac] ss:$16 sps:$4 sm:$0xff]  }
  0x44   : > { %1635 = vmatprep.subr.bf16.mxu0 %v3115_v57  ;;  %1807 = vmatprep.subr.bf16.mxu1 %v3117_v58  ;;  %v3208_v57 = vld [vmem:[%s4478_s1 + $0x3a0] ss:$16 sps:$4 sm:$0xff]   ;;  %v3211_v58 = vld [vmem:[%s4478_s1 + $0x3a8] ss:$16 sps:$4 sm:$0xff]  }
  0x47   : > { %1636 = vmatpush1.bf16.msra.mxu0 %v3119_v59  ;;  %1808 = vmatpush1.bf16.msra.mxu1 %v3120_v60  ;;  %v3216_v59 = vld [vmem:[%s4478_s1 + $0x3c4] ss:$16 sps:$4 sm:$0xff]   ;;  %v3219_v60 = vld [vmem:[%s4478_s1 + $0x3cc] ss:$16 sps:$4 sm:$0xff]  }
  0x48   : > { %1637 = vmatprep.subr.bf16.mxu0 %v3121_v61  ;;  %1809 = vmatprep.subr.bf16.mxu1 %v3123_v62  ;;  %v3214_v61 = vld [vmem:[%s4478_s1 + $0x3c0] ss:$16 sps:$4 sm:$0xff]   ;;  %v3217_v62 = vld [vmem:[%s4478_s1 + $0x3c8] ss:$16 sps:$4 sm:$0xff]  }
  0x4b   : > { %1638 = vmatpush1.bf16.msra.mxu0 %v3125_v63  ;;  %1810 = vmatpush1.bf16.msra.mxu1 %v3126_v0  ;;  %v3222_v63 = vld [vmem:[%s4478_s1 + $0x3e4] ss:$16 sps:$4 sm:$0xff]   ;;  %v3225_v0 = vld [vmem:[%s4478_s1 + $0x3ec] ss:$16 sps:$4 sm:$0xff]  }
  0x4c   : > { %1650 = vmatprep.subr.bf16.mxu0 %v3132_v1  ;;  %1822 = vmatprep.subr.bf16.mxu1 %v3135_v2  ;;  %v3220_v1 = vld [vmem:[%s4478_s1 + $0x3e0] ss:$16 sps:$4 sm:$0xff]   ;;  %v3223_v2 = vld [vmem:[%s4478_s1 + $0x3e8] ss:$16 sps:$4 sm:$0xff]  }
  0x4e   : > { %1640 = vmatmul.mubr.bf16.vlgmr.msra.gmra.mrb[0].mxu0 %v3127_v3  ;;  %1812 = vmatmul.mubr.bf16.vlgmr.msra.gmra.mrb[0].mxu1 %v3127_v3  ;;  %v3231_v3 = vld [vmem:[%s4478_s1 + $0x404] ss:$16 sps:$4 sm:$0xff]  }
  0x4f   : > { %1651 = vmatpush1.bf16.msra.mxu0 %v3130_v4  ;;  %1823 = vmatpush1.bf16.msra.mxu1 %v3133_v5  ;;  %v3234_v4 = vld [vmem:[%s4478_s1 + $0x40c] ss:$16 sps:$4 sm:$0xff]   ;;  %v3226_v5 = vld [vmem:[%s3733_s17 + $0x8] ss:$28 sps:$4 sm:$0xff]  }
  0x50   : > { %1652 = vmatprep.subr.bf16.mxu0 %v3138_v6  ;;  %1824 = vmatprep.subr.bf16.mxu1 %v3141_v7  ;;  %v3229_v6 = vld [vmem:[%s4478_s1 + $0x400] ss:$16 sps:$4 sm:$0xff]   ;;  %v3232_v7 = vld [vmem:[%s4478_s1 + $0x408] ss:$16 sps:$4 sm:$0xff]  }
  0x51   : > { %1682 = vmatprep.mubr.bf16.mxu0 %v3228_v30  ;;  %1854 = vmatprep.mubr.bf16.mxu1 %v3228_v30  ;;  %v3270_v30 = vld [vmem:[%s4478_s1 + $0x4cc] ss:$16 sps:$4 sm:$0xff]  }
  0x53   : > { %1653 = vmatpush1.bf16.msra.mxu0 %v3136_v8  ;;  %1825 = vmatpush1.bf16.msra.mxu1 %v3139_v9  ;;  %v3237_v8 = vld [vmem:[%s4478_s1 + $0x424] ss:$16 sps:$4 sm:$0xff]   ;;  %v3240_v9 = vld [vmem:[%s4478_s1 + $0x42c] ss:$16 sps:$4 sm:$0xff]  }
  0x54   : > { %1654 = vmatprep.subr.bf16.mxu0 %v3144_v10  ;;  %1826 = vmatprep.subr.bf16.mxu1 %v3147_v11  ;;  %v3235_v10 = vld [vmem:[%s4478_s1 + $0x420] ss:$16 sps:$4 sm:$0xff]   ;;  %v3238_v11 = vld [vmem:[%s4478_s1 + $0x428] ss:$16 sps:$4 sm:$0xff]  }
  0x57   : > { %1655 = vmatpush1.bf16.msra.mxu0 %v3142_v12  ;;  %1827 = vmatpush1.bf16.msra.mxu1 %v3145_v13  ;;  %v3327_v12 = vld [vmem:[%s3733_s17 + $0x14] ss:$28 sps:$4 sm:$0xff]  }
  0x58   : > { %1656 = vmatprep.subr.bf16.mxu0 %v3150_v14  ;;  %1828 = vmatprep.subr.bf16.mxu1 %v3153_v15  ;;  %v3243_v13 = vld [vmem:[%s4478_s1 + $0x444] ss:$16 sps:$4 sm:$0xff]   ;;  %v3246_v14 = vld [vmem:[%s4478_s1 + $0x44c] ss:$16 sps:$4 sm:$0xff]   ;;  %v3241_v15 = vld [vmem:[%s4478_s1 + $0x440] ss:$16 sps:$4 sm:$0xff]  }
  0x5b   : > { %1657 = vmatpush1.bf16.msra.mxu0 %v3148_v16  ;;  %1829 = vmatpush1.bf16.msra.mxu1 %v3151_v17  ;;  %v3244_v16 = vld [vmem:[%s4478_s1 + $0x448] ss:$16 sps:$4 sm:$0xff]   ;;  %v3249_v17 = vld [vmem:[%s4478_s1 + $0x464] ss:$16 sps:$4 sm:$0xff]  }
  0x5c   : > { %1658 = vmatprep.subr.bf16.mxu0 %v3156_v18  ;;  %1830 = vmatprep.subr.bf16.mxu1 %v3159_v19  ;;  %v3252_v18 = vld [vmem:[%s4478_s1 + $0x46c] ss:$16 sps:$4 sm:$0xff]   ;;  %v3247_v19 = vld [vmem:[%s4478_s1 + $0x460] ss:$16 sps:$4 sm:$0xff]  }
  0x5f   : > { %1659 = vmatpush1.bf16.msra.mxu0 %v3154_v20  ;;  %1831 = vmatpush1.bf16.msra.mxu1 %v3157_v21  ;;  %v3250_v20 = vld [vmem:[%s4478_s1 + $0x468] ss:$16 sps:$4 sm:$0xff]   ;;  %v3255_v21 = vld [vmem:[%s4478_s1 + $0x484] ss:$16 sps:$4 sm:$0xff]  }
  0x60   : > { %1660 = vmatprep.subr.bf16.mxu0 %v3162_v22  ;;  %1832 = vmatprep.subr.bf16.mxu1 %v3165_v23  ;;  %v3258_v22 = vld [vmem:[%s4478_s1 + $0x48c] ss:$16 sps:$4 sm:$0xff]   ;;  %v3253_v23 = vld [vmem:[%s4478_s1 + $0x480] ss:$16 sps:$4 sm:$0xff]  }
  0x63   : > { %1661 = vmatpush1.bf16.msra.mxu0 %v3160_v24  ;;  %1833 = vmatpush1.bf16.msra.mxu1 %v3163_v25  ;;  %v3256_v24 = vld [vmem:[%s4478_s1 + $0x488] ss:$16 sps:$4 sm:$0xff]   ;;  %v3261_v25 = vld [vmem:[%s4478_s1 + $0x4a4] ss:$16 sps:$4 sm:$0xff]  }
  0x64   : > { %1662 = vmatprep.subr.bf16.mxu0 %v3168_v26  ;;  %1834 = vmatprep.subr.bf16.mxu1 %v3171_v27  ;;  %v3264_v26 = vld [vmem:[%s4478_s1 + $0x4ac] ss:$16 sps:$4 sm:$0xff]   ;;  %v3259_v27 = vld [vmem:[%s4478_s1 + $0x4a0] ss:$16 sps:$4 sm:$0xff]  }
  0x67   : > { %1663 = vmatpush1.bf16.msra.mxu0 %v3166_v28  ;;  %1835 = vmatpush1.bf16.msra.mxu1 %v3169_v29  ;;  %v3262_v28 = vld [vmem:[%s4478_s1 + $0x4a8] ss:$16 sps:$4 sm:$0xff]   ;;  %v3267_v29 = vld [vmem:[%s4478_s1 + $0x4c4] ss:$16 sps:$4 sm:$0xff]  }
  0x68   : > { %1664 = vmatprep.subr.bf16.mxu0 %v3174_v31  ;;  %1836 = vmatprep.subr.bf16.mxu1 %v3177_v32  ;;  %v3265_v31 = vld [vmem:[%s4478_s1 + $0x4c0] ss:$16 sps:$4 sm:$0xff]   ;;  %v3268_v32 = vld [vmem:[%s4478_s1 + $0x4c8] ss:$16 sps:$4 sm:$0xff]  }
  0x6b   : > { %1665 = vmatpush1.bf16.msra.mxu0 %v3172_v33  ;;  %1837 = vmatpush1.bf16.msra.mxu1 %v3175_v34  ;;  %v3273_v33 = vld [vmem:[%s4478_s1 + $0x4e4] ss:$16 sps:$4 sm:$0xff]   ;;  %v3276_v34 = vld [vmem:[%s4478_s1 + $0x4ec] ss:$16 sps:$4 sm:$0xff]  }
  0x6c   : > { %1666 = vmatprep.subr.bf16.mxu0 %v3180_v35  ;;  %1838 = vmatprep.subr.bf16.mxu1 %v3183_v36  ;;  %v3271_v35 = vld [vmem:[%s4478_s1 + $0x4e0] ss:$16 sps:$4 sm:$0xff]   ;;  %v3274_v36 = vld [vmem:[%s4478_s1 + $0x4e8] ss:$16 sps:$4 sm:$0xff]  }
  0x6f   : > { %1667 = vmatpush1.bf16.msra.mxu0 %v3178_v37  ;;  %1839 = vmatpush1.bf16.msra.mxu1 %v3181_v38  ;;  %v3279_v37 = vld [vmem:[%s4478_s1 + $0x504] ss:$16 sps:$4 sm:$0xff]   ;;  %v3282_v38 = vld [vmem:[%s4478_s1 + $0x50c] ss:$16 sps:$4 sm:$0xff]  }
  0x70   : > { %1668 = vmatprep.subr.bf16.mxu0 %v3186_v39  ;;  %1840 = vmatprep.subr.bf16.mxu1 %v3189_v40  ;;  %v3277_v39 = vld [vmem:[%s4478_s1 + $0x500] ss:$16 sps:$4 sm:$0xff]   ;;  %v3280_v40 = vld [vmem:[%s4478_s1 + $0x508] ss:$16 sps:$4 sm:$0xff]  }
  0x73   : > { %1669 = vmatpush1.bf16.msra.mxu0 %v3184_v41  ;;  %1841 = vmatpush1.bf16.msra.mxu1 %v3187_v42  ;;  %v3285_v41 = vld [vmem:[%s4478_s1 + $0x524] ss:$16 sps:$4 sm:$0xff]   ;;  %v3288_v42 = vld [vmem:[%s4478_s1 + $0x52c] ss:$16 sps:$4 sm:$0xff]  }
  0x74   : > { %1670 = vmatprep.subr.bf16.mxu0 %v3192_v43  ;;  %1842 = vmatprep.subr.bf16.mxu1 %v3195_v44  ;;  %v3283_v43 = vld [vmem:[%s4478_s1 + $0x520] ss:$16 sps:$4 sm:$0xff]   ;;  %v3286_v44 = vld [vmem:[%s4478_s1 + $0x528] ss:$16 sps:$4 sm:$0xff]  }
  0x77   : > { %1671 = vmatpush1.bf16.msra.mxu0 %v3190_v45  ;;  %1843 = vmatpush1.bf16.msra.mxu1 %v3193_v46  ;;  %v3291_v45 = vld [vmem:[%s4478_s1 + $0x544] ss:$16 sps:$4 sm:$0xff]   ;;  %v3294_v46 = vld [vmem:[%s4478_s1 + $0x54c] ss:$16 sps:$4 sm:$0xff]  }
  0x78   : > { %1672 = vmatprep.subr.bf16.mxu0 %v3198_v47  ;;  %1844 = vmatprep.subr.bf16.mxu1 %v3201_v48  ;;  %v3289_v47 = vld [vmem:[%s4478_s1 + $0x540] ss:$16 sps:$4 sm:$0xff]   ;;  %v3292_v48 = vld [vmem:[%s4478_s1 + $0x548] ss:$16 sps:$4 sm:$0xff]  }
  0x7b   : > { %1673 = vmatpush1.bf16.msra.mxu0 %v3196_v49  ;;  %1845 = vmatpush1.bf16.msra.mxu1 %v3199_v50  ;;  %v3297_v49 = vld [vmem:[%s4478_s1 + $0x564] ss:$16 sps:$4 sm:$0xff]   ;;  %v3300_v50 = vld [vmem:[%s4478_s1 + $0x56c] ss:$16 sps:$4 sm:$0xff]  }
  0x7c   : > { %1674 = vmatprep.subr.bf16.mxu0 %v3204_v51  ;;  %1846 = vmatprep.subr.bf16.mxu1 %v3207_v52  ;;  %v3295_v51 = vld [vmem:[%s4478_s1 + $0x560] ss:$16 sps:$4 sm:$0xff]   ;;  %v3298_v52 = vld [vmem:[%s4478_s1 + $0x568] ss:$16 sps:$4 sm:$0xff]  }
  0x7f   : > { %1675 = vmatpush1.bf16.msra.mxu0 %v3202_v53  ;;  %1847 = vmatpush1.bf16.msra.mxu1 %v3205_v54  ;;  %v3303_v53 = vld [vmem:[%s4478_s1 + $0x584] ss:$16 sps:$4 sm:$0xff]   ;;  %v3306_v54 = vld [vmem:[%s4478_s1 + $0x58c] ss:$16 sps:$4 sm:$0xff]  }
  0x80   : > { %1676 = vmatprep.subr.bf16.mxu0 %v3210_v55  ;;  %1848 = vmatprep.subr.bf16.mxu1 %v3213_v56  ;;  %v3301_v55 = vld [vmem:[%s4478_s1 + $0x580] ss:$16 sps:$4 sm:$0xff]   ;;  %v3304_v56 = vld [vmem:[%s4478_s1 + $0x588] ss:$16 sps:$4 sm:$0xff]  }
  0x83   : > { %1677 = vmatpush1.bf16.msra.mxu0 %v3208_v57  ;;  %1849 = vmatpush1.bf16.msra.mxu1 %v3211_v58  ;;  %v3309_v57 = vld [vmem:[%s4478_s1 + $0x5a4] ss:$16 sps:$4 sm:$0xff]   ;;  %v3312_v58 = vld [vmem:[%s4478_s1 + $0x5ac] ss:$16 sps:$4 sm:$0xff]  }
  0x84   : > { %1678 = vmatprep.subr.bf16.mxu0 %v3216_v59  ;;  %1850 = vmatprep.subr.bf16.mxu1 %v3219_v60  ;;  %v3307_v59 = vld [vmem:[%s4478_s1 + $0x5a0] ss:$16 sps:$4 sm:$0xff]   ;;  %v3310_v60 = vld [vmem:[%s4478_s1 + $0x5a8] ss:$16 sps:$4 sm:$0xff]  }
  0x87   : > { %1679 = vmatpush1.bf16.msra.mxu0 %v3214_v61  ;;  %1851 = vmatpush1.bf16.msra.mxu1 %v3217_v62  ;;  %v3315_v61 = vld [vmem:[%s4478_s1 + $0x5c4] ss:$16 sps:$4 sm:$0xff]   ;;  %v3318_v62 = vld [vmem:[%s4478_s1 + $0x5cc] ss:$16 sps:$4 sm:$0xff]  }
  0x88   : > { %1680 = vmatprep.subr.bf16.mxu0 %v3222_v63  ;;  %1852 = vmatprep.subr.bf16.mxu1 %v3225_v0  ;;  %v3313_v63 = vld [vmem:[%s4478_s1 + $0x5c0] ss:$16 sps:$4 sm:$0xff]   ;;  %v3316_v0 = vld [vmem:[%s4478_s1 + $0x5c8] ss:$16 sps:$4 sm:$0xff]  }
  0x8b   : > { %1681 = vmatpush1.bf16.msra.mxu0 %v3220_v1  ;;  %1853 = vmatpush1.bf16.msra.mxu1 %v3223_v2  ;;  %v3321_v1 = vld [vmem:[%s4478_s1 + $0x5e4] ss:$16 sps:$4 sm:$0xff]   ;;  %v3324_v2 = vld [vmem:[%s4478_s1 + $0x5ec] ss:$16 sps:$4 sm:$0xff]  }
  0x8c   : > { %1693 = vmatprep.subr.bf16.mxu0 %v3231_v3  ;;  %1865 = vmatprep.subr.bf16.mxu1 %v3234_v4  ;;  %v3319_v3 = vld [vmem:[%s4478_s1 + $0x5e0] ss:$16 sps:$4 sm:$0xff]   ;;  %v3322_v4 = vld [vmem:[%s4478_s1 + $0x5e8] ss:$16 sps:$4 sm:$0xff]  }
  0x8e   : > { %1683 = vmatmul.mubr.bf16.vlgmr.msra.gmra.mrb[0].mxu0 %v3226_v5  ;;  %1855 = vmatmul.mubr.bf16.vlgmr.msra.gmra.mrb[0].mxu1 %v3226_v5  ;;  %v3330_v5 = vld [vmem:[%s4478_s1 + $0x604] ss:$16 sps:$4 sm:$0xff]  }
  0x8f   : > { %1694 = vmatpush1.bf16.msra.mxu0 %v3229_v6  ;;  %1866 = vmatpush1.bf16.msra.mxu1 %v3232_v7  ;;  %v3373_v6 = vld [vmem:[%s4480_s3 + $0x104] ss:$8 sps:$4 sm:$0xff]  }
  0x90   : > { %1695 = vmatprep.subr.bf16.mxu0 %v3237_v8  ;;  %1867 = vmatprep.subr.bf16.mxu1 %v3240_v9  ;;  %v3325_v7 = vld [vmem:[%s3733_s17 + $0x10] ss:$28 sps:$4 sm:$0xff]   ;;  %v3333_v9 = vld [vmem:[%s4478_s1 + $0x624] ss:$16 sps:$4 sm:$0xff]  }
  0x91   : > { %1725 = vmatprep.mubr.bf16.mxu0 %v3327_v12  ;;  %1897 = vmatprep.mubr.bf16.mxu1 %v3327_v12  ;;  %v3328_v8 = vld [vmem:[%s4478_s1 + $0x600] ss:$16 sps:$4 sm:$0xff]  }
  0x92   : > { %v3331_v12 = vld [vmem:[%s4478_s1 + $0x620] ss:$16 sps:$4 sm:$0xff]  }
  0x93   : > { %1696 = vmatpush1.bf16.msra.mxu0 %v3235_v10  ;;  %1868 = vmatpush1.bf16.msra.mxu1 %v3238_v11  ;;  %v3371_v10 = vld [vmem:[%s4480_s3 + $0x100] ss:$8 sps:$4 sm:$0xff]   ;;  %v3379_v11 = vld [vmem:[%s4480_s3 + $0x114] ss:$8 sps:$4 sm:$0xff]  }
  0x94   : > { %1697 = vmatprep.subr.bf16.mxu0 %v3243_v13  ;;  %1869 = vmatprep.subr.bf16.mxu1 %v3246_v14  ;;  %v3490_v13 = vmov 0   ;;  %v3337_v14 = vld [vmem:[%s4478_s1 + $0x60c] ss:$16 sps:$4 sm:$0xff]  }
  0x97   : > { %1698 = vmatpush1.bf16.msra.mxu0 %v3241_v15  ;;  %1870 = vmatpush1.bf16.msra.mxu1 %v3244_v16  ;;  %v3377_v15 = vld [vmem:[%s4480_s3 + $0x110] ss:$8 sps:$4 sm:$0xff]  }
  0x98   : > { %1699 = vmatprep.subr.bf16.mxu0 %v3249_v17  ;;  %1871 = vmatprep.subr.bf16.mxu1 %v3252_v18  ;;  %v3334_v16 = vld [vmem:[%s3733_s17 + $0x18] ss:$28 sps:$4 sm:$0xff]   ;;  %v3340_v18 = vld [vmem:[%s4478_s1 + $0x62c] ss:$16 sps:$4 sm:$0xff]  }
  0x99   : > { %v3335_v17 = vld [vmem:[%s4478_s1 + $0x608] ss:$16 sps:$4 sm:$0xff]  }
  0x9b   : > { %1700 = vmatpush1.bf16.msra.mxu0 %v3247_v19  ;;  %1872 = vmatpush1.bf16.msra.mxu1 %v3250_v20  ;;  %v3338_v19 = vld [vmem:[%s4478_s1 + $0x628] ss:$16 sps:$4 sm:$0xff]   ;;  %v3343_v20 = vld [vmem:[%s4480_s3 + $0x4] ss:$8 sps:$4 sm:$0xff]  }
  0x9c   : > { %1701 = vmatprep.subr.bf16.mxu0 %v3255_v21  ;;  %1873 = vmatprep.subr.bf16.mxu1 %v3258_v22  ;;  %v3341_v21 = vld [vmem:[%s4480_s3] ss:$8 sps:$4 sm:$0xff]   ;;  %v3346_v22 = vld [vmem:[%s4480_s3 + $0x14] ss:$8 sps:$4 sm:$0xff]  }
  0x9f   : > { %1702 = vmatpush1.bf16.msra.mxu0 %v3253_v23  ;;  %1874 = vmatpush1.bf16.msra.mxu1 %v3256_v24  ;;  %v3344_v23 = vld [vmem:[%s4480_s3 + $0x10] ss:$8 sps:$4 sm:$0xff]   ;;  %v3349_v24 = vld [vmem:[%s4480_s3 + $0x24] ss:$8 sps:$4 sm:$0xff]  }
  0xa0   : > { %1703 = vmatprep.subr.bf16.mxu0 %v3261_v25  ;;  %1875 = vmatprep.subr.bf16.mxu1 %v3264_v26  ;;  %v3347_v25 = vld [vmem:[%s4480_s3 + $0x20] ss:$8 sps:$4 sm:$0xff]   ;;  %v3352_v26 = vld [vmem:[%s4480_s3 + $0x34] ss:$8 sps:$4 sm:$0xff]  }
  0xa3   : > { %1704 = vmatpush1.bf16.msra.mxu0 %v3259_v27  ;;  %1876 = vmatpush1.bf16.msra.mxu1 %v3262_v28  ;;  %v3350_v27 = vld [vmem:[%s4480_s3 + $0x30] ss:$8 sps:$4 sm:$0xff]   ;;  %v3355_v28 = vld [vmem:[%s4480_s3 + $0x44] ss:$8 sps:$4 sm:$0xff]  }
  0xa4   : > { %1705 = vmatprep.subr.bf16.mxu0 %v3267_v29  ;;  %1877 = vmatprep.subr.bf16.mxu1 %v3270_v30  ;;  %v3353_v29 = vld [vmem:[%s4480_s3 + $0x40] ss:$8 sps:$4 sm:$0xff]   ;;  %v3358_v30 = vld [vmem:[%s4480_s3 + $0x54] ss:$8 sps:$4 sm:$0xff]  }
  0xa7   : > { %1706 = vmatpush1.bf16.msra.mxu0 %v3265_v31  ;;  %1878 = vmatpush1.bf16.msra.mxu1 %v3268_v32  ;;  %v3356_v31 = vld [vmem:[%s4480_s3 + $0x50] ss:$8 sps:$4 sm:$0xff]   ;;  %v3361_v32 = vld [vmem:[%s4480_s3 + $0x64] ss:$8 sps:$4 sm:$0xff]  }
  0xa8   : > { %1707 = vmatprep.subr.bf16.mxu0 %v3273_v33  ;;  %1879 = vmatprep.subr.bf16.mxu1 %v3276_v34  ;;  %v3359_v33 = vld [vmem:[%s4480_s3 + $0x60] ss:$8 sps:$4 sm:$0xff]   ;;  %v3364_v34 = vld [vmem:[%s4480_s3 + $0x74] ss:$8 sps:$4 sm:$0xff]  }
  0xab   : > { %1708 = vmatpush1.bf16.msra.mxu0 %v3271_v35  ;;  %1880 = vmatpush1.bf16.msra.mxu1 %v3274_v36  ;;  %v3362_v35 = vld [vmem:[%s4480_s3 + $0x70] ss:$8 sps:$4 sm:$0xff]   ;;  %v3367_v36 = vld [vmem:[%s4480_s3 + $0x84] ss:$8 sps:$4 sm:$0xff]  }
  0xac   : > { %1709 = vmatprep.subr.bf16.mxu0 %v3279_v37  ;;  %1881 = vmatprep.subr.bf16.mxu1 %v3282_v38  ;;  %v3365_v37 = vld [vmem:[%s4480_s3 + $0x80] ss:$8 sps:$4 sm:$0xff]   ;;  %v3370_v38 = vld [vmem:[%s4480_s3 + $0x94] ss:$8 sps:$4 sm:$0xff]  }
  0xaf   : > { %1710 = vmatpush1.bf16.msra.mxu0 %v3277_v39  ;;  %1882 = vmatpush1.bf16.msra.mxu1 %v3280_v40  ;;  %v3368_v39 = vld [vmem:[%s4480_s3 + $0x90] ss:$8 sps:$4 sm:$0xff]   ;;  %v3376_v40 = vld [vmem:[%s4480_s3 + $0xa4] ss:$8 sps:$4 sm:$0xff]  }
  0xb0   : > { %1711 = vmatprep.subr.bf16.mxu0 %v3285_v41  ;;  %1883 = vmatprep.subr.bf16.mxu1 %v3288_v42  ;;  %v3374_v41 = vld [vmem:[%s4480_s3 + $0xa0] ss:$8 sps:$4 sm:$0xff]   ;;  %v3382_v42 = vld [vmem:[%s4480_s3 + $0xb4] ss:$8 sps:$4 sm:$0xff]  }
  0xb3   : > { %1712 = vmatpush1.bf16.msra.mxu0 %v3283_v43  ;;  %1884 = vmatpush1.bf16.msra.mxu1 %v3286_v44  ;;  %v3385_v43 = vld [vmem:[%s4480_s3 + $0x124] ss:$8 sps:$4 sm:$0xff]   ;;  %v3380_v44 = vld [vmem:[%s4480_s3 + $0xb0] ss:$8 sps:$4 sm:$0xff]  }
  0xb4   : > { %1713 = vmatprep.subr.bf16.mxu0 %v3291_v45  ;;  %1885 = vmatprep.subr.bf16.mxu1 %v3294_v46  ;;  %v3383_v45 = vld [vmem:[%s4480_s3 + $0x120] ss:$8 sps:$4 sm:$0xff]  }
  0xb5   : > { %v3386_v46 = vld [vmem:[%s4480_s3 + $0xc0] ss:$8 sps:$4 sm:$0xff]  }
  0xb7   : > { %1714 = vmatpush1.bf16.msra.mxu0 %v3289_v47  ;;  %1886 = vmatpush1.bf16.msra.mxu1 %v3292_v48  ;;  %v3388_v47 = vld [vmem:[%s4480_s3 + $0xc4] ss:$8 sps:$4 sm:$0xff]   ;;  %v3389_v48 = vld [vmem:[%s4480_s3 + $0x130] ss:$8 sps:$4 sm:$0xff]  }
  0xb8   : > { %1715 = vmatprep.subr.bf16.mxu0 %v3297_v49  ;;  %1887 = vmatprep.subr.bf16.mxu1 %v3300_v50  ;;  %v3391_v49 = vld [vmem:[%s4480_s3 + $0x134] ss:$8 sps:$4 sm:$0xff]  }
  0xb9   : > { %v3394_v50 = vld [vmem:[%s4480_s3 + $0xd4] ss:$8 sps:$4 sm:$0xff]  }
  0xbb   : > { %1716 = vmatpush1.bf16.msra.mxu0 %v3295_v51  ;;  %1888 = vmatpush1.bf16.msra.mxu1 %v3298_v52  ;;  %v3397_v51 = vld [vmem:[%s4480_s3 + $0x144] ss:$8 sps:$4 sm:$0xff]   ;;  %v3392_v52 = vld [vmem:[%s4480_s3 + $0xd0] ss:$8 sps:$4 sm:$0xff]  }
  0xbc   : > { %1717 = vmatprep.subr.bf16.mxu0 %v3303_v53  ;;  %1889 = vmatprep.subr.bf16.mxu1 %v3306_v54  ;;  %v3395_v53 = vld [vmem:[%s4480_s3 + $0x140] ss:$8 sps:$4 sm:$0xff]   ;;  %v3400_v54 = vld [vmem:[%s4480_s3 + $0xe4] ss:$8 sps:$4 sm:$0xff]  }
  0xbf   : > { %1718 = vmatpush1.bf16.msra.mxu0 %v3301_v55  ;;  %1890 = vmatpush1.bf16.msra.mxu1 %v3304_v56  ;;  %v3403_v55 = vld [vmem:[%s4480_s3 + $0x154] ss:$8 sps:$4 sm:$0xff]   ;;  %v3398_v56 = vld [vmem:[%s4480_s3 + $0xe0] ss:$8 sps:$4 sm:$0xff]  }
  0xc0   : > { %1719 = vmatprep.subr.bf16.mxu0 %v3309_v57  ;;  %1891 = vmatprep.subr.bf16.mxu1 %v3312_v58  ;;  %v3401_v57 = vld [vmem:[%s4480_s3 + $0x150] ss:$8 sps:$4 sm:$0xff]   ;;  %v3406_v58 = vld [vmem:[%s4480_s3 + $0xf4] ss:$8 sps:$4 sm:$0xff]  }
  0xc3   : > { %1720 = vmatpush1.bf16.msra.mxu0 %v3307_v59  ;;  %1892 = vmatpush1.bf16.msra.mxu1 %v3310_v60  ;;  %v3409_v59 = vld [vmem:[%s4480_s3 + $0x164] ss:$8 sps:$4 sm:$0xff]   ;;  %v3404_v60 = vld [vmem:[%s4480_s3 + $0xf0] ss:$8 sps:$4 sm:$0xff]  }
  0xc4   : > { %1721 = vmatprep.subr.bf16.mxu0 %v3315_v61  ;;  %1893 = vmatprep.subr.bf16.mxu1 %v3318_v62  ;;  %v3407_v61 = vld [vmem:[%s4480_s3 + $0x160] ss:$8 sps:$4 sm:$0xff]   ;;  %v3412_v62 = vld [vmem:[%s4480_s3 + $0x174] ss:$8 sps:$4 sm:$0xff]  }
  0xc7   : > { %1722 = vmatpush1.bf16.msra.mxu0 %v3313_v63  ;;  %1894 = vmatpush1.bf16.msra.mxu1 %v3316_v0  ;;  %v3410_v63 = vld [vmem:[%s4480_s3 + $0x170] ss:$8 sps:$4 sm:$0xff]   ;;  %v3415_v0 = vld [vmem:[%s4480_s3 + $0x184] ss:$8 sps:$4 sm:$0xff]  }
  0xc8   : > { %1723 = vmatprep.subr.bf16.mxu0 %v3321_v1  ;;  %1895 = vmatprep.subr.bf16.mxu1 %v3324_v2  ;;  %v3413_v1 = vld [vmem:[%s4480_s3 + $0x180] ss:$8 sps:$4 sm:$0xff]   ;;  %v548_v2 = vlaneseq }
  0xcb   : > { %1724 = vmatpush1.bf16.msra.mxu0 %v3319_v3  ;;  %1896 = vmatpush1.bf16.msra.mxu1 %v3322_v4 }
  0xcc   : > { %1736 = vmatprep.subr.bf16.mxu0 %v3330_v5  ;;  %2322 = vmatprep.subr.bf16.mxu1 %v3373_v6  ;;  %v4360_v6 = vshrl.u32 %v548_v2, 7 }
  0xce   : > { %1726 = vmatmul.mubr.bf16.vlgmr.msra.gmra.mrb[0].mxu0 %v3325_v7  ;;  %1898 = vmatmul.mubr.bf16.vlgmr.msra.gmra.mrb[0].mxu1 %v3325_v7 }
  0xcf   : > { %1737 = vmatpush1.bf16.msra.mxu0 %v3328_v8  ;;  %1768 = vmatprep.mubr.bf16.mxu0 %v3490_v13  ;;  %v550_v8 = vsub.s32 0, %v4360_v6 }
  0xd0   : > { %1738 = vmatprep.subr.bf16.mxu0 %v3333_v9  ;;  %2323 = vmatpush1.bf16.msra.mxu1 %v3371_v10  ;;  %v554_v9 = vsub.s32 1, %v4360_v6  ;;  %v546_v10 = vld [vmem:[%s4479_s2] sm:$0xf] }
  0xd1   : > { %2324 = vmatprep.subr.bf16.mxu1 %v3379_v11  ;;  %v551_v11 = vrot.slane %v546_v10, %v550_v8 }
  0xd3   : > { %1739 = vmatpush1.bf16.msra.mxu0 %v3331_v12  ;;  %v555_v12 = vrot.slane %v546_v10, %v554_v9 }
  0xd4   : > { %1908 = vmatprep.subr.bf16.mxu0 %v3337_v14  ;;  %2325 = vmatpush1.bf16.msra.mxu1 %v3377_v15  ;;  %v558_v14 = vsub.s32 2, %v4360_v6  ;;  %v562_v15 = vsub.s32 3, %v4360_v6  ;;  %v3491_v6 = vmov 0.0  }
  0xd5   : > { %2326 = vmatprep.subr.bf16.mxu1 %v3385_v43 }
  0xd8   : > { %2327 = vmatpush1.bf16.msra.mxu1 %v3383_v45 }
  0xd9   : > { %2328 = vmatprep.subr.bf16.mxu1 %v3391_v49 }
  0xda   : > { %2856 = vmatmul.mubr.msk.bf16.vlgmr.msra.gmra.mrb[0].mxu0 %vm1603_vm0, %v3334_v16 }
  0xdb   : > { %1909 = vmatpush1.bf16.msra.mxu0 %v3335_v17  ;;  %1940 = vmatprep.mubr.bf16.mxu0 %v3490_v13 }
  0xdc   : > { %1910 = vmatprep.subr.bf16.mxu0 %v3340_v18  ;;  %2329 = vmatpush1.bf16.msra.mxu1 %v3389_v48 }
  0xdd   : > { %2330 = vmatprep.subr.bf16.mxu1 %v3397_v51  ;;  %v3417_v51 = vld [vmem:[%s4482_s5 + $0x8] sm:$0xff]  }
  0xdf   : > { %1911 = vmatpush1.bf16.msra.mxu0 %v3338_v19 }
  0xe0   : > { %2279 = vmatprep.subr.bf16.mxu0 %v3343_v20  ;;  %2331 = vmatpush1.bf16.msra.mxu1 %v3395_v53  ;;  %v3419_v53 = vld [vmem:[%s4482_s5 + $0x18] sm:$0xff]  }
  0xe1   : > { %2332 = vmatprep.subr.bf16.mxu1 %v3403_v55  ;;  %v3421_v55 = vld [vmem:[%s4482_s5 + $0x28] sm:$0xff]  }
  0xe2   : > { %2857 = vmatmul.mubr.msk.bf16.vlgmr.msra.gmra.mrb[4].mxu0 %vm1603_vm0, %v3334_v16 }
  0xe3   : > { %2280 = vmatpush1.bf16.msra.mxu0 %v3341_v21  ;;  %v559_v21 = vrot.slane %v546_v10, %v558_v14 }
  0xe4   : > { %2281 = vmatprep.subr.bf16.mxu0 %v3346_v22  ;;  %2333 = vmatpush1.bf16.msra.mxu1 %v3401_v57  ;;  %v3423_v57 = vld [vmem:[%s4482_s5 + $0x38] sm:$0xff]  }
  0xe5   : > { %2334 = vmatprep.subr.bf16.mxu1 %v3409_v59  ;;  %v2013_v59 = vld [vmem:[%s4481_s4] sm:$0x3] }
  0xe7   : > { %2282 = vmatpush1.bf16.msra.mxu0 %v3344_v23 }
  0xe8   : > { %2283 = vmatprep.subr.bf16.mxu0 %v3349_v24  ;;  %2335 = vmatpush1.bf16.msra.mxu1 %v3407_v61  ;;  %v563_v24 = vrot.slane %v546_v10, %v562_v15 }
  0xe9   : > { %2336 = vmatprep.subr.bf16.mxu1 %v3412_v62 }
  0xeb   : > { %2284 = vmatpush1.bf16.msra.mxu0 %v3347_v25 }
  0xec   : > { %2285 = vmatprep.subr.bf16.mxu0 %v3352_v26  ;;  %2337 = vmatpush1.bf16.msra.mxu1 %v3410_v63 }
  0xed   : > { %2338 = vmatprep.subr.bf16.mxu1 %v3415_v0 }
  0xef   : > { %2286 = vmatpush1.bf16.msra.mxu0 %v3350_v27 }
  0xf0   : > { %2287 = vmatprep.subr.bf16.mxu0 %v3355_v28  ;;  %2339 = vmatpush1.bf16.msra.mxu1 %v3413_v1 }
  0xf1   : > { %2453 = vmatprep.subr.bf16.mxu1 %v3490_v13 }
  0xf3   : > { %2288 = vmatpush1.bf16.msra.mxu0 %v3353_v29 }
  0xf4   : > { %2289 = vmatprep.subr.bf16.mxu0 %v3358_v30 }
  0xf7   : > { %2290 = vmatpush1.bf16.msra.mxu0 %v3356_v31 }
  0xf8   : > { %2291 = vmatprep.subr.bf16.mxu0 %v3361_v32 }
  0xfb   : > { %2292 = vmatpush1.bf16.msra.mxu0 %v3359_v33 }
  0xfc   : > { %2293 = vmatprep.subr.bf16.mxu0 %v3364_v34 }
  0xff   : > { %2294 = vmatpush1.bf16.msra.mxu0 %v3362_v35 }
 0x100   : > { %2295 = vmatprep.subr.bf16.mxu0 %v3367_v36 }
 0x103   : > { %2296 = vmatpush1.bf16.msra.mxu0 %v3365_v37 }
 0x104   : > { %2297 = vmatprep.subr.bf16.mxu0 %v3370_v38 }
 0x107   : > { %2298 = vmatpush1.bf16.msra.mxu0 %v3368_v39 }
 0x108   : > { %2299 = vmatprep.subr.bf16.mxu0 %v3376_v40 }
 0x10b   : > { %2300 = vmatpush1.bf16.msra.mxu0 %v3374_v41 }
 0x10c   : > { %2301 = vmatprep.subr.bf16.mxu0 %v3382_v42 }
 0x10f   : > { %2302 = vmatpush1.bf16.msra.mxu0 %v3380_v44 }
 0x110   : > { %2303 = vmatprep.subr.bf16.mxu0 %v3388_v47 }
 0x113   : > { %2304 = vmatpush1.bf16.msra.mxu0 %v3386_v46 }
 0x114   : > { %2305 = vmatprep.subr.bf16.mxu0 %v3394_v50  ;;  %v3416_v50 = vld [vmem:[%s4482_s5] sm:$0xff]  }
 0x117   : > { %2306 = vmatpush1.bf16.msra.mxu0 %v3392_v52  ;;  %v3418_v52 = vld [vmem:[%s4482_s5 + $0x10] sm:$0xff]  }
 0x118   : > { %2307 = vmatprep.subr.bf16.mxu0 %v3400_v54  ;;  %v3420_v54 = vld [vmem:[%s4482_s5 + $0x20] sm:$0xff]  }
 0x11b   : > { %2308 = vmatpush1.bf16.msra.mxu0 %v3398_v56  ;;  %v3422_v56 = vld [vmem:[%s4482_s5 + $0x30] sm:$0xff]  }
 0x11c   : > { %2309 = vmatprep.subr.bf16.mxu0 %v3406_v58  ;;  %v3424_v58 = vld [vmem:[%s4482_s5 + $0x40] sm:$0xff]  }
 0x11f   : > { %2310 = vmatpush1.bf16.msra.mxu0 %v3404_v60  ;;  %v2018_v60 = vrot.slane %v2013_v59, %v550_v8 }
 0x1a1   : > { %v1899_v3 = vpop.f32.mrb[0].mxu1 }
 0x1a2   : > { %v1901_v4 = vpop.f32.mrb[1].mxu1  ;;  %v2950_v30 = vadd.f32 %v1899_v3, %v559_v21 }
 0x1a3   : > { %v1903_v5 = vpop.f32.mrb[2].mxu1  ;;  %v2952_v32 = vadd.f32 %v1901_v4, %v563_v24 }
 0x1a4   : > { %v1905_v7 = vpop.f32.mrb[3].mxu1  ;;  %v2954_v35 = vadd.f32 %v1903_v5, %v559_v21 }
 0x1a5   : > { %v2956_v38 = vadd.f32 %v1905_v7, %v563_v24 }
 0x1ad   : > { %v1770_v16 = vpop.f32.mrb[0].mxu0 }
 0x1ae   : > { %v2946_v17 = vadd.f32 %v1770_v16, %v551_v11  ;;  %v1772_v18 = vpop.f32.mrb[1].mxu0 }
 0x1af   : > { %v2947_v19 = vadd.f32 %v1772_v18, %v555_v12  ;;  %v1774_v20 = vpop.f32.mrb[2].mxu0 }
 0x1b0   : > { %v2948_v22 = vadd.f32 %v1774_v20, %v551_v11  ;;  %v1776_v23 = vpop.f32.mrb[3].mxu0  ;;  %v1951_v26 = vmax.f32 %v2946_v17, 0.0 }
 0x1b1   : > { %v2949_v25 = vadd.f32 %v1776_v23, %v555_v12  ;;  %v1952_v28 = vmax.f32 %v2947_v19, 0.0 }
 0x1b2   : > { %v1955_v27 = vmax.f32 %v2948_v22, 0.0  ;;  %v2909_v22 = vld [vmem:[%s4483_s6] ss:$0 sm:$0xff] }
 0x1b3   : > { %v1956_v29 = vmax.f32 %v2949_v25, 0.0 }
 0x1b4   : > { %v1959_v31 = vpack.c.bf16 %v1955_v27, %v1951_v26 }
 0x1b5   : > { %v1960_v33 = vpack.c.bf16 %v1956_v29, %v1952_v28  ;;  %v1942_v34 = vpop.f32.mrb[4].mxu0 }
 0x1b6   : > { %v2951_v36 = vadd.f32 %v2950_v30, %v1942_v34  ;;  %v1944_v37 = vpop.f32.mrb[5].mxu0 }
 0x1b7   : > { %v2953_v39 = vadd.f32 %v2952_v32, %v1944_v37  ;;  %v1946_v40 = vpop.f32.mrb[6].mxu0  ;;  %2311 = vmatprep.mubr.bf16.mxu0 %v1960_v33  ;;  %v2920_v32 = vld [vmem:[%s4485_s8] ss:$0 sm:$0xff] }
 0x1b8   : > { %v2955_v41 = vadd.f32 %v2954_v35, %v1946_v40  ;;  %v1948_v42 = vpop.f32.mrb[7].mxu0  ;;  %2312 = vmatmul.mubr.bf16.vlgmr.msra.gmra.mrb[8].mxu0 %v1959_v31  ;;  %v1953_v44 = vmax.f32 %v2951_v36, 0.0 }
 0x1b9   : > { %v2957_v43 = vadd.f32 %v2956_v38, %v1948_v42  ;;  %v1954_v46 = vmax.f32 %v2953_v39, 0.0 }
 0x1ba   : > { %v1957_v45 = vmax.f32 %v2955_v41, 0.0 }
 0x1bb   : > { %v1958_v47 = vmax.f32 %v2957_v43, 0.0 }
 0x1bc   : > { %v1961_v48 = vpack.c.bf16 %v1957_v45, %v1953_v44 }
 0x1bd   : > { %v1962_v49 = vpack.c.bf16 %v1958_v47, %v1954_v46 }
 0x1bf   : > { %2908 = vmatprep.mubr.msk.bf16.mxu1 %vm2275_vm1, %v1962_v49 }
 0x1c0   : > { %2355 = vmatmul.mubr.bf16.vlgmr.msra.gmra.mrb[4].mxu1 %v1961_v48 }
 0x1c1   : > { %2454 = vmatpush1.bf16.msra.mxu1 %v3416_v50 }
 0x1c2   : > { %2455 = vmatprep.subr.bf16.mxu1 %v3490_v13 }
 0x1c5   : > { %2456 = vmatpush1.bf16.msra.mxu1 %v3417_v51 }
 0x1c6   : > { %2457 = vmatprep.subr.bf16.mxu1 %v3490_v13 }
 0x1c9   : > { %2458 = vmatpush1.bf16.msra.mxu1 %v3418_v52 }
 0x1ca   : > { %2459 = vmatprep.subr.bf16.mxu1 %v3490_v13 }
 0x1cd   : > { %2460 = vmatpush1.bf16.msra.mxu1 %v3419_v53 }
 0x1ce   : > { %2461 = vmatprep.subr.bf16.mxu1 %v3490_v13 }
 0x1d1   : > { %2462 = vmatpush1.bf16.msra.mxu1 %v3420_v54 }
 0x1d2   : > { %2463 = vmatprep.subr.bf16.mxu1 %v3490_v13 }
 0x1d5   : > { %2464 = vmatpush1.bf16.msra.mxu1 %v3421_v55 }
 0x1d6   : > { %2465 = vmatprep.subr.bf16.mxu1 %v3490_v13 }
 0x1d9   : > { %2466 = vmatpush1.bf16.msra.mxu1 %v3422_v56 }
 0x1da   : > { %2467 = vmatprep.subr.bf16.mxu1 %v3490_v13 }
 0x1dd   : > { %2468 = vmatpush1.bf16.msra.mxu1 %v3423_v57 }
 0x1de   : > { %2469 = vmatprep.subr.bf16.mxu1 %v3490_v13  ;;  %v2022_v13 = vrot.slane %v2013_v59, %v554_v9  ;;  %v3425_v9 = vld [vmem:[%s4484_s7] sm:$0xff]  }
 0x1e1   : > { %2470 = vmatpush1.bf16.msra.mxu1 %v3424_v58 }
 0x1e2   : > { %2940 = vmatprep.subr.bf16.mxu1 %v3491_v6 }
 0x28b   : > { %v2313_v61 = vpop.f32.mrb[8].mxu0 }
 0x28c   : > { %v2314_v62 = vadd.f32 %v2313_v61, %v2018_v60  ;;  %v2315_v63 = vpop.f32.mrb[9].mxu0 }
 0x28d   : > { %v2317_v0 = vpop.f32.mrb[10].mxu0  ;;  %v2316_v3 = vadd.f32 %v2315_v63, %v2022_v13 }
 0x28e   : > { %v2318_v1 = vadd.f32 %v2317_v0, %v2018_v60  ;;  %v2319_v2 = vpop.f32.mrb[11].mxu0 }
 0x28f   : > { %v2320_v10 = vadd.f32 %v2319_v2, %v2022_v13 }
 0x293   : > { %v2356_v4 = vpop.f32.mrb[4].mxu1 }
 0x294   : > { %v2357_v5 = vadd.f32 %v2356_v4, %v2314_v62  ;;  %v2358_v7 = vpop.f32.mrb[5].mxu1 }
 0x295   : > { %v2359_v11 = vadd.f32 %v2358_v7, %v2316_v3  ;;  %v2360_v12 = vpop.f32.mrb[6].mxu1 }
 0x296   : > { %v2361_v14 = vadd.f32 %v2360_v12, %v2318_v1  ;;  %v2362_v15 = vpop.f32.mrb[7].mxu1  ;;  %v2365_v8 = vmax.f32 %v2357_v5, 0.0 }
 0x297   : > { %v2363_v16 = vadd.f32 %v2362_v15, %v2320_v10  ;;  %v2366_v18 = vmax.f32 %v2359_v11, 0.0 }
 0x298   : > { %v2367_v17 = vmax.f32 %v2361_v14, 0.0 }
 0x299   : > { %v2368_v19 = vmax.f32 %v2363_v16, 0.0 }
 0x29a   : > { %v2369_v20 = vpack.c.bf16 %v2367_v17, %v2365_v8 }
 0x29b   : > { %v2370_v21 = vpack.c.bf16 %v2368_v19, %v2366_v18 }
 0x29d   : > { %2919 = vmatprep.mubr.msk.bf16.mxu1 %vm2275_vm1, %v2370_v21 }
 0x29e   : > { %2486 = vmatmul.mubr.bf16.vlgmr.msra.gmra.mrb[8].mxu1 %v2369_v20 }
 0x29f   : > { %2941 = vmatpush3.bf16.msra.mxu1 %v3425_v9  ;;  %2942 = vmatprep.mubr.msk.bf16.mxu1 %vm3492_vm2, %v3491_v6 }
 0x371   : > { %v2487_v23 = vpop.f32.mrb[8].mxu1 }
 0x372   : > { %v2488_v24 = vadd.f32 %v2909_v22, %v2487_v23  ;;  %v2489_v25 = vpop.f32.mrb[9].mxu1 }
 0x373   : > { %v2490_v26 = vpop.f32.mrb[10].mxu1 }
 0x374   : > { %v2491_v27 = vadd.f32 %v2909_v22, %v2490_v26  ;;  %v2492_v28 = vpop.f32.mrb[11].mxu1  ;;  %v2494_v29 = vmax.f32 %v2488_v24, 0.0 }
 0x376   : > { %v2495_v30 = vmax.f32 %v2491_v27, 0.0 }
 0x378   : > { %v2496_v31 = vpack.c.bf16 %v2495_v30, %v2494_v29 }
 0x37a   : > { %2943 = vmatmul.mubr.msk.bf16.vlgmr.msra.gmra.mrb[12].mxu1 %vm2275_vm1, %v2496_v31 }
 0x44d   : > { %v2549_v33 = vpop.f32.mrb[12].mxu1 }
 0x44e   : > { %v2944_v34 = vpop.f32.mrb[13].mxu1  ;;  %v2550_v36 = vadd.f32 %v2920_v32, %v2549_v33 }
 0x44f   : > { %v2552_v35 = vpop.f32.mrb[14].mxu1 }
 0x450   : > { %v2553_v37 = vadd.f32 %v2920_v32, %v2552_v35  ;;  %v2945_v38 = vpop.f32.mrb[15].mxu1 }
 0x452   : > { %v2936_v39 = vpack.c.bf16 %v2553_v37, %v2550_v36 }
 0x454   : > { %2937 = vst [vmem:[%s328_s23] sm:$0xff] %v2936_v39  }
 0x455   : > { %3439 = shalt.err (!%p3436_p3)
}
 0x456   : > { %s3440_s14 = scalar_lea.hbm %s4434_s28, 128  ;;  %s3444_s25 = scalar_lea.hbm %s4486_s9, 256 }
 0x457   : > { %p3441_p4 = scmp.ne.s32.totalorder %s4434_s28, %s3440_s14  ;;  %p3445_p9 = scmp.lt.u32.totalorder %s4434_s28, %s4486_s9 }
 0x458   : > { %p3446_p10 = scmp.lt.u32.totalorder %s3444_s25, %s3440_s14  ;;  %p3448_p12 = scmp.lt.u32.totalorder %s3440_s14, %s4434_s28 }
 0x459   : > { %p3442_p7 = pnand %p3441_p4, %p3584_p5 }
 0x45a   : > { %p3447_p11 = por %p3446_p10, %p3445_p9 }
 0x45b   : > { %p3443_p8 = pneg %p3442_p7 }
 0x45c   : > { %p3449_p13 = por %p3448_p12, %p3447_p11 }
 0x45e   : > { %p3450_p0 = pnand %p3449_p13, %p3443_p8 }
 0x460   : > { %3453 = shalt.err (!%p3450_p0)
}
 0x461   : > { %s3494_s29 = smov 64   ;;  %s3495_s13 = smov 4  }
 0x462   : > { %2987 = dma.vmem_to_hbm [thread:$0]  (%p3584_p5), %s4429_s24, 128, %s4434_s28, %s4436_s22, %s3494_s29, %s3494_s29, %s3495_s13  }
 0x463 PF: > { %p2993_p1 = scmp.ge.s32.totalorder %s3488_s12, 2  ;;  %s2595_s21 = sand.u32 1, %s3476_s30  }
 0x464   : > { %s2596_s16 = scalar_lea.sflag [#allocation3], %s2595_s21 }
 0x465   : > { %p2990_p2 = pnand %p2993_p1, %p3588_p6 }
 0x467   : > { %3471 = dma.done.wait (!%p2990_p2), %s2596_s16, 128  }
 0x468   : > { %3473 = vsyncadd (!%p2990_p2), %s2596_s16, 4294967168  ;;  %p19_p3 = scmp.ge.s32.totalorder %s3571_s15, 4   ;;  %s4489_s30 = smov %s3480_s10 }
 0x469   : > { %s4490_s10 = smov %s3484_s11  ;;  %s4491_s11 = smov %s3582_s18 }
 0x46a   : > { %s4492_s12 = smov %s3571_s15  ;;  %21 = sbr.rel (!%p19_p3) target bundleno = 3 (0x3), region = 91 }
 0x471   :  { %2601 = vsyncpa [#allocation3], 1 }
 0x472   :  { %2603 = vsyncpa [#allocation3 + $0x1], 1 }

</bundles_post_ra>
